<compile_context>
chip_gen: v7x
topology: tpu7x:2x2x1
jax: 0.10.0
libtpu: 0.0.40
codegen_flags: <defaults>
</compile_context>

<pallas_src>
import functools

import jax
import jax.numpy as jnp
from jax.experimental import pallas as pl
from jax.experimental.pallas import tpu as pltpu


_TM_CAP = 512                       # safe on v7x (64 MiB VMEM); v5e/v6e can use 1024+
_VMEM_LIMIT = 32 * 1024 * 1024      # explicit scoped-VMEM limit, safe on all gens


# ----------------------------- Pallas kernels ------------------------------ #

def _matmul_bias_kernel(x_ref, w_ref, b_ref, o_ref, *, relu):
    acc = jnp.dot(x_ref[...], w_ref[...], preferred_element_type=jnp.float32)
    acc = acc + b_ref[...]
    if relu:
        acc = jnp.maximum(acc, 0.0)
    o_ref[...] = acc


def _matmul_bias_res_kernel(x_ref, w_ref, b_ref, r_ref, o_ref, *, relu):
    acc = jnp.dot(x_ref[...], w_ref[...], preferred_element_type=jnp.float32)
    acc = acc + b_ref[...] + r_ref[...]
    if relu:
        acc = jnp.maximum(acc, 0.0)
    o_ref[...] = acc


def _round_up(x, m):
    return (x + m - 1) // m * m


def fused_matmul_bn(x2d, w2d_bf16, bias, residual=None, relu=True):
    """(M,K)bf16 @ (K,Cout)bf16 (BN scale pre-folded) + bias [+ residual][+ReLU].

    Gridded over M with double-buffered BlockSpec pipelining; W/bias resident.
    """
    M, K = x2d.shape
    Cout = w2d_bf16.shape[1]

    tm = min(_TM_CAP, _round_up(M, 8))
    m_pad = _round_up(M, tm)
    if m_pad != M:
        x2d = jnp.pad(x2d, ((0, m_pad - M), (0, 0)))
        if residual is not None:
            residual = jnp.pad(residual, ((0, m_pad - M), (0, 0)))
    grid = (m_pad // tm,)

    bias2 = bias.reshape(1, Cout).astype(jnp.float32)

    in_specs = [
        pl.BlockSpec((tm, K), lambda m: (m, 0)),      # activation tile (streamed)
        pl.BlockSpec((K, Cout), lambda m: (0, 0)),    # weights (resident)
        pl.BlockSpec((1, Cout), lambda m: (0, 0)),    # folded-BN bias (resident)
    ]
    args = [x2d, w2d_bf16, bias2]
    bytes_accessed = m_pad * K * 2 + K * Cout * 2 + Cout * 4 + m_pad * Cout * 4
    if residual is not None:
        in_specs.append(pl.BlockSpec((tm, Cout), lambda m: (m, 0)))
        args.append(residual.astype(jnp.float32))
        bytes_accessed += m_pad * Cout * 4
        kernel = functools.partial(_matmul_bias_res_kernel, relu=relu)
    else:
        kernel = functools.partial(_matmul_bias_kernel, relu=relu)

    out = pl.pallas_call(
        kernel,
        out_shape=jax.ShapeDtypeStruct((m_pad, Cout), jnp.float32),
        grid=grid,
        in_specs=in_specs,
        out_specs=pl.BlockSpec((tm, Cout), lambda m: (m, 0)),
        compiler_params=pltpu.CompilerParams(
            dimension_semantics=("parallel",),
            vmem_limit_bytes=_VMEM_LIMIT,
        ),
        cost_estimate=pl.CostEstimate(
            flops=2 * m_pad * K * Cout,
            transcendentals=0,
            bytes_accessed=bytes_accessed,
        ),
    )(*args)
    return out[:M] if m_pad != M else out


# ------------------------------- JAX glue ---------------------------------- #

def im2col(x_nhwc, kh, kw, stride, dilation, padding):
    """Conv patches -> (N*Ho*Wo, kh*kw*Cin), tap-major / Cin-minor ordering."""
    N, H, W, C = x_nhwc.shape
    if padding:
        x_nhwc = jnp.pad(
            x_nhwc, ((0, 0), (padding, padding), (padding, padding), (0, 0)))
    Hp, Wp = H + 2 * padding, W + 2 * padding
    Ho = (Hp - dilation * (kh - 1) - 1) // stride + 1
    Wo = (Wp - dilation * (kw - 1) - 1) // stride + 1
    taps = []
    for i in range(kh):
        for j in range(kw):
            taps.append(jax.lax.slice(
                x_nhwc,
                (0, i * dilation, j * dilation, 0),
                (N, i * dilation + (Ho - 1) * stride + 1,
                 j * dilation + (Wo - 1) * stride + 1, C),
                (1, stride, stride, 1)))                 # (N, Ho, Wo, C)
    patches = taps[0] if len(taps) == 1 else jnp.concatenate(taps, axis=-1)
    return patches.reshape(N * Ho * Wo, kh * kw * C), (N, Ho, Wo)


def conv_bn(x_nhwc, params, stride, dilation, padding, relu=True, residual=None):
    """conv2d (no bias) + folded BatchNorm + optional residual + optional ReLU."""
    w, scale, bias = params                      # w: (KH, KW, Cin, Cout)
    KH, KW, Cin, Cout = w.shape
    patches, (N, Ho, Wo) = im2col(
        x_nhwc.astype(jnp.bfloat16), KH, KW, stride, dilation, padding)
    # Fold the BN scale into the (bf16) matmul weights.
    w2d = (w.reshape(KH * KW * Cin, Cout) * scale[None, :]).astype(jnp.bfloat16)
    res2d = None if residual is None else residual.reshape(N * Ho * Wo, Cout)
    out2d = fused_matmul_bn(patches, w2d, bias, residual=res2d, relu=relu)
    return out2d.reshape(N, Ho, Wo, Cout)


def maxpool3x3_s2_p1(x_nhwc):
    """MaxPool2d(kernel_size=3, stride=2, padding=1) as an XLA max tree."""
    N, H, W, C = x_nhwc.shape
    xp = jnp.pad(x_nhwc, ((0, 0), (1, 1), (1, 1), (0, 0)),
                 constant_values=-jnp.inf)
    Hp, Wp = H + 2, W + 2
    Ho = (Hp - 3) // 2 + 1
    Wo = (Wp - 3) // 2 + 1
    out = None
    for i in range(3):
        for j in range(3):
            v = jax.lax.slice(
                xp, (0, i, j, 0),
                (N, i + (Ho - 1) * 2 + 1, j + (Wo - 1) * 2 + 1, C),
                (1, 2, 2, 1))
            out = v if out is None else jnp.maximum(out, v)
    return out


def basic_block(x, blk, stride, dilation):
    """Shared forward of torchvision BasicBlock / BasicBlock_2."""
    out = conv_bn(x, blk["conv1"], stride=stride, dilation=dilation,
                  padding=dilation, relu=True)
    if blk["downsample"] is not None:
        identity = conv_bn(x, blk["downsample"], stride=stride, dilation=1,
                           padding=0, relu=False)
    else:
        identity = x
    # out = relu(bn2(conv2(out)) + identity) -- fused residual + relu in-kernel
    out = conv_bn(out, blk["conv2"], stride=1, dilation=dilation,
                  padding=dilation, relu=True, residual=identity)
    return out


def resnet_basicblock_os8_forward(x_nchw, params):
    x = jnp.transpose(x_nchw, (0, 2, 3, 1))  # -> NHWC

    # Merge the module conv1/bn1 with the resnet-stem conv1/bn1: same input,
    # same geometry (7x7 / s2 / p3) -> one lane-dense Cout=128 matmul.
    w_a, s_a, b_a = params["conv1"]
    w_b, s_b, b_b = params["stem_conv1"]
    merged = conv_bn(
        x,
        (jnp.concatenate([w_a, w_b], axis=-1),
         jnp.concatenate([s_a, s_b], axis=0),
         jnp.concatenate([b_a, b_b], axis=0)),
        stride=2, dilation=1, padding=3, relu=True)
    c1 = merged[..., :64]                     # relu(bn1(conv1(x)))
    s = merged[..., 64:]                      # resnet-18 stem conv output

    # c2 = resnet stem (conv1,bn1,relu,maxpool) + layer1
    s = maxpool3x3_s2_p1(s)
    for blk in params["layer1"]:
        s = basic_block(s, blk, stride=1, dilation=1)
    c2 = s

    # layer3: BasicBlock_2(64->128, s=2, d=1), BasicBlock_2(128->128, s=1, d=1)
    s = basic_block(c2, params["layer3"][0], stride=2, dilation=1)
    s = basic_block(s, params["layer3"][1], stride=1, dilation=1)
    c3 = s

    # layer4: BasicBlock_2(128->256, s=1, d=2), BasicBlock_2(256->256, s=1, d=2)
    s = basic_block(c3, params["layer4"][0], stride=1, dilation=2)
    s = basic_block(s, params["layer4"][1], stride=1, dilation=2)
    c4 = s

    to_nchw = lambda t: jnp.transpose(t, (0, 3, 1, 2))
    return [to_nchw(c1), to_nchw(c2), to_nchw(c3), to_nchw(c4)]


# --------------------------- parameter init -------------------------------- #

def init_conv_bn(key, kh, kw, cin, cout):
    k1, k2, k3, k4, k5 = jax.random.split(key, 5)
    fan_in = kh * kw * cin
    w = jax.random.normal(k1, (kh, kw, cin, cout), jnp.float32) * (2.0 / fan_in) ** 0.5
    gamma = 1.0 + 0.1 * jax.random.normal(k2, (cout,), jnp.float32)
    beta = 0.1 * jax.random.normal(k3, (cout,), jnp.float32)
    mean = 0.1 * jax.random.normal(k4, (cout,), jnp.float32)
    var = 1.0 + 0.1 * jnp.abs(jax.random.normal(k5, (cout,), jnp.float32))
    eps = 1e-5
    scale = gamma / jnp.sqrt(var + eps)
    bias = beta - mean * scale
    return (w, scale, bias)


def init_params(key):
    keys = iter(jax.random.split(key, 64))
    p = {}
    p["conv1"] = init_conv_bn(next(keys), 7, 7, 3, 64)       # module conv1/bn1
    p["stem_conv1"] = init_conv_bn(next(keys), 7, 7, 3, 64)  # resnet18 stem conv1/bn1
    # resnet18 layer1: 2 x BasicBlock(64->64, stride 1, no downsample)
    p["layer1"] = [
        {"conv1": init_conv_bn(next(keys), 3, 3, 64, 64),
         "conv2": init_conv_bn(next(keys), 3, 3, 64, 64),
         "downsample": None}
        for _ in range(2)
    ]
    # layer3: BasicBlock_2(64->128, s=2) then (128->128, s=1)
    p["layer3"] = [
        {"conv1": init_conv_bn(next(keys), 3, 3, 64, 128),
         "conv2": init_conv_bn(next(keys), 3, 3, 128, 128),
         "downsample": init_conv_bn(next(keys), 1, 1, 64, 128)},
        {"conv1": init_conv_bn(next(keys), 3, 3, 128, 128),
         "conv2": init_conv_bn(next(keys), 3, 3, 128, 128),
         "downsample": None},
    ]
    # layer4: BasicBlock_2(128->256, s=1, d=2) then (256->256, s=1, d=2)
    p["layer4"] = [
        {"conv1": init_conv_bn(next(keys), 3, 3, 128, 256),
         "conv2": init_conv_bn(next(keys), 3, 3, 256, 256),
         "downsample": init_conv_bn(next(keys), 1, 1, 128, 256)},
        {"conv1": init_conv_bn(next(keys), 3, 3, 256, 256),
         "conv2": init_conv_bn(next(keys), 3, 3, 256, 256),
         "downsample": None},
    ]
    return p


# --------------------------------- main ------------------------------------ #

if __name__ == "__main__":
    key = jax.random.PRNGKey(0)
    kx, kp = jax.random.split(key)
    # PyTorch-style NCHW input
    x = jax.random.normal(kx, (2, 3, 16, 16), jnp.float32)
    params = init_params(kp)

    fwd = jax.jit(resnet_basicblock_os8_forward)
    c1, c2, c3, c4 = fwd(x, params)
    jax.block_until_ready((c1, c2, c3, c4))

    assert c1.shape == (2, 64, 8, 8), c1.shape
    assert c2.shape == (2, 64, 4, 4), c2.shape
    assert c3.shape == (2, 128, 2, 2), c3.shape
    assert c4.shape == (2, 256, 2, 2), c4.shape
    assert all(bool(jnp.isfinite(t).all()) for t in (c1, c2, c3, c4))

    print("KERNEL_OK")
</pallas_src>

<mosaic_0001>
module attributes {stable_mosaic.version = 11 : i64} {
  func.func @_matmul_bias_kernel(%arg0: i32, %arg1: memref<128x147xbf16, #tpu.memory_space<vmem>>, %arg2: memref<147x128xbf16, #tpu.memory_space<vmem>>, %arg3: memref<1x128xf32, #tpu.memory_space<vmem>>, %arg4: memref<128x128xf32, #tpu.memory_space<vmem>>) attributes {dimension_semantics = [#tpu.dimension_semantics<parallel>], iteration_bounds = array<i64: 1>, scalar_prefetch = 0 : i64, scratch_operands = 0 : i64, tpu.core_type = #tpu.core_type<tc>, window_params = [{transform_indices = @transform_0, window_bounds = array<i64: 128, 147>}, {pipeline_mode = #tpu.pipeline_mode<synchronous>, transform_indices = @transform_1, window_bounds = array<i64: 147, 128>}, {pipeline_mode = #tpu.pipeline_mode<synchronous>, transform_indices = @transform_2, window_bounds = array<i64: 1, 128>}, {transform_indices = @transform_3, window_bounds = array<i64: 128, 128>}]} {
    %c0 = arith.constant 0 : index
    %c0_0 = arith.constant 0 : index
    %0 = vector.load %arg1[%c0, %c0_0] : memref<128x147xbf16, #tpu.memory_space<vmem>>, vector<128x147xbf16>
    %c0_1 = arith.constant 0 : index
    %c0_2 = arith.constant 0 : index
    %1 = vector.load %arg2[%c0_1, %c0_2] : memref<147x128xbf16, #tpu.memory_space<vmem>>, vector<147x128xbf16>
    %cst = arith.constant dense<0.000000e+00> : vector<128x128xf32>
    %2 = tpu.matmul %0, %1, %cst {dimension_numbers = #tpu.dot_dimension_numbers<[1], [0], [0], [1], [0, 0, 1, 1], [], []>} : vector<128x147xbf16>, vector<147x128xbf16>, vector<128x128xf32> -> vector<128x128xf32>
    %c0_3 = arith.constant 0 : index
    %c0_4 = arith.constant 0 : index
    %3 = vector.load %arg3[%c0_3, %c0_4] : memref<1x128xf32, #tpu.memory_space<vmem>>, vector<1x128xf32>
    %4 = vector.broadcast %3 : vector<1x128xf32> to vector<128x128xf32>
    %5 = arith.addf %2, %4 : vector<128x128xf32>
    %cst_5 = arith.constant 0.000000e+00 : f32
    %6 = vector.broadcast %cst_5 : f32 to vector<128x128xf32>
    %7 = arith.maximumf %5, %6 : vector<128x128xf32>
    %c0_6 = arith.constant 0 : index
    %c0_7 = arith.constant 0 : index
    %8 = vector.load %arg4[%c0_6, %c0_7] : memref<128x128xf32, #tpu.memory_space<vmem>>, vector<128x128xf32>
    tpu.vector_store %arg4[%c0_6, %c0_7], %7 {strides = array<i32>} : memref<128x128xf32, #tpu.memory_space<vmem>>, vector<128x128xf32>,
    return
  }
  func.func @transform_0(%arg0: i32) -> (i32, i32) {
    %c0_i32 = arith.constant 0 : i32
    %c0_i32_0 = arith.constant 0 : i32
    return %arg0, %c0_i32 : i32, i32
  }
  func.func @transform_1(%arg0: i32) -> (i32, i32) {
    %c0_i32 = arith.constant 0 : i32
    %c0_i32_0 = arith.constant 0 : i32
    %c0_i32_1 = arith.constant 0 : i32
    return %c0_i32, %c0_i32_0 : i32, i32
  }
  func.func @transform_2(%arg0: i32) -> (i32, i32) {
    %c0_i32 = arith.constant 0 : i32
    %c0_i32_0 = arith.constant 0 : i32
    %c0_i32_1 = arith.constant 0 : i32
    return %c0_i32, %c0_i32_0 : i32, i32
  }
  func.func @transform_3(%arg0: i32) -> (i32, i32) {
    %c0_i32 = arith.constant 0 : i32
    %c0_i32_0 = arith.constant 0 : i32
    return %arg0, %c0_i32 : i32, i32
  }
}

module attributes {stable_mosaic.version = 11 : i64} {
  func.func @_matmul_bias_kernel(%arg0: i32, %arg1: memref<32x576xbf16, #tpu.memory_space<vmem>>, %arg2: memref<576x64xbf16, #tpu.memory_space<vmem>>, %arg3: memref<1x64xf32, #tpu.memory_space<vmem>>, %arg4: memref<32x64xf32, #tpu.memory_space<vmem>>) attributes {dimension_semantics = [#tpu.dimension_semantics<parallel>], iteration_bounds = array<i64: 1>, scalar_prefetch = 0 : i64, scratch_operands = 0 : i64, tpu.core_type = #tpu.core_type<tc>, window_params = [{transform_indices = @transform_0, window_bounds = array<i64: 32, 576>}, {pipeline_mode = #tpu.pipeline_mode<synchronous>, transform_indices = @transform_1, window_bounds = array<i64: 576, 64>}, {pipeline_mode = #tpu.pipeline_mode<synchronous>, transform_indices = @transform_2, window_bounds = array<i64: 1, 64>}, {transform_indices = @transform_3, window_bounds = array<i64: 32, 64>}]} {
    %c0 = arith.constant 0 : index
    %c0_0 = arith.constant 0 : index
    %0 = vector.load %arg1[%c0, %c0_0] : memref<32x576xbf16, #tpu.memory_space<vmem>>, vector<32x576xbf16>
    %c0_1 = arith.constant 0 : index
    %c0_2 = arith.constant 0 : index
    %1 = vector.load %arg2[%c0_1, %c0_2] : memref<576x64xbf16, #tpu.memory_space<vmem>>, vector<576x64xbf16>
    %cst = arith.constant dense<0.000000e+00> : vector<32x64xf32>
    %2 = tpu.matmul %0, %1, %cst {dimension_numbers = #tpu.dot_dimension_numbers<[1], [0], [0], [1], [0, 0, 1, 1], [], []>} : vector<32x576xbf16>, vector<576x64xbf16>, vector<32x64xf32> -> vector<32x64xf32>
    %c0_3 = arith.constant 0 : index
    %c0_4 = arith.constant 0 : index
    %3 = vector.load %arg3[%c0_3, %c0_4] : memref<1x64xf32, #tpu.memory_space<vmem>>, vector<1x64xf32>
    %4 = vector.broadcast %3 : vector<1x64xf32> to vector<32x64xf32>
    %5 = arith.addf %2, %4 : vector<32x64xf32>
    %cst_5 = arith.constant 0.000000e+00 : f32
    %6 = vector.broadcast %cst_5 : f32 to vector<32x64xf32>
    %7 = arith.maximumf %5, %6 : vector<32x64xf32>
    %c0_6 = arith.constant 0 : index
    %c0_7 = arith.constant 0 : index
    %8 = vector.load %arg4[%c0_6, %c0_7] : memref<32x64xf32, #tpu.memory_space<vmem>>, vector<32x64xf32>
    tpu.vector_store %arg4[%c0_6, %c0_7], %7 {strides = array<i32>} : memref<32x64xf32, #tpu.memory_space<vmem>>, vector<32x64xf32>,
    return
  }
  func.func @transform_0(%arg0: i32) -> (i32, i32) {
    %c0_i32 = arith.constant 0 : i32
    %c0_i32_0 = arith.constant 0 : i32
    return %arg0, %c0_i32 : i32, i32
  }
  func.func @transform_1(%arg0: i32) -> (i32, i32) {
    %c0_i32 = arith.constant 0 : i32
    %c0_i32_0 = arith.constant 0 : i32
    %c0_i32_1 = arith.constant 0 : i32
    return %c0_i32, %c0_i32_0 : i32, i32
  }
  func.func @transform_2(%arg0: i32) -> (i32, i32) {
    %c0_i32 = arith.constant 0 : i32
    %c0_i32_0 = arith.constant 0 : i32
    %c0_i32_1 = arith.constant 0 : i32
    return %c0_i32, %c0_i32_0 : i32, i32
  }
  func.func @transform_3(%arg0: i32) -> (i32, i32) {
    %c0_i32 = arith.constant 0 : i32
    %c0_i32_0 = arith.constant 0 : i32
    return %arg0, %c0_i32 : i32, i32
  }
}

module attributes {stable_mosaic.version = 11 : i64} {
  func.func @_matmul_bias_res_kernel(%arg0: i32, %arg1: memref<32x576xbf16, #tpu.memory_space<vmem>>, %arg2: memref<576x64xbf16, #tpu.memory_space<vmem>>, %arg3: memref<1x64xf32, #tpu.memory_space<vmem>>, %arg4: memref<32x64xf32, #tpu.memory_space<vmem>>, %arg5: memref<32x64xf32, #tpu.memory_space<vmem>>) attributes {dimension_semantics = [#tpu.dimension_semantics<parallel>], iteration_bounds = array<i64: 1>, scalar_prefetch = 0 : i64, scratch_operands = 0 : i64, tpu.core_type = #tpu.core_type<tc>, window_params = [{transform_indices = @transform_0, window_bounds = array<i64: 32, 576>}, {pipeline_mode = #tpu.pipeline_mode<synchronous>, transform_indices = @transform_1, window_bounds = array<i64: 576, 64>}, {pipeline_mode = #tpu.pipeline_mode<synchronous>, transform_indices = @transform_2, window_bounds = array<i64: 1, 64>}, {transform_indices = @transform_3, window_bounds = array<i64: 32, 64>}, {transform_indices = @transform_4, window_bounds = array<i64: 32, 64>}]} {
    %c0 = arith.constant 0 : index
    %c0_0 = arith.constant 0 : index
    %0 = vector.load %arg1[%c0, %c0_0] : memref<32x576xbf16, #tpu.memory_space<vmem>>, vector<32x576xbf16>
    %c0_1 = arith.constant 0 : index
    %c0_2 = arith.constant 0 : index
    %1 = vector.load %arg2[%c0_1, %c0_2] : memref<576x64xbf16, #tpu.memory_space<vmem>>, vector<576x64xbf16>
    %cst = arith.constant dense<0.000000e+00> : vector<32x64xf32>
    %2 = tpu.matmul %0, %1, %cst {dimension_numbers = #tpu.dot_dimension_numbers<[1], [0], [0], [1], [0, 0, 1, 1], [], []>} : vector<32x576xbf16>, vector<576x64xbf16>, vector<32x64xf32> -> vector<32x64xf32>
    %c0_3 = arith.constant 0 : index
    %c0_4 = arith.constant 0 : index
    %3 = vector.load %arg3[%c0_3, %c0_4] : memref<1x64xf32, #tpu.memory_space<vmem>>, vector<1x64xf32>
    %4 = vector.broadcast %3 : vector<1x64xf32> to vector<32x64xf32>
    %5 = arith.addf %2, %4 : vector<32x64xf32>
    %c0_5 = arith.constant 0 : index
    %c0_6 = arith.constant 0 : index
    %6 = vector.load %arg4[%c0_5, %c0_6] : memref<32x64xf32, #tpu.memory_space<vmem>>, vector<32x64xf32>
    %7 = arith.addf %5, %6 : vector<32x64xf32>
    %cst_7 = arith.constant 0.000000e+00 : f32
    %8 = vector.broadcast %cst_7 : f32 to vector<32x64xf32>
    %9 = arith.maximumf %7, %8 : vector<32x64xf32>
    %c0_8 = arith.constant 0 : index
    %c0_9 = arith.constant 0 : index
    %10 = vector.load %arg5[%c0_8, %c0_9] : memref<32x64xf32, #tpu.memory_space<vmem>>, vector<32x64xf32>
    tpu.vector_store %arg5[%c0_8, %c0_9], %9 {strides = array<i32>} : memref<32x64xf32, #tpu.memory_space<vmem>>, vector<32x64xf32>,
    return
  }
  func.func @transform_0(%arg0: i32) -> (i32, i32) {
    %c0_i32 = arith.constant 0 : i32
    %c0_i32_0 = arith.constant 0 : i32
    return %arg0, %c0_i32 : i32, i32
  }
  func.func @transform_1(%arg0: i32) -> (i32, i32) {
    %c0_i32 = arith.constant 0 : i32
    %c0_i32_0 = arith.constant 0 : i32
    %c0_i32_1 = arith.constant 0 : i32
    return %c0_i32, %c0_i32_0 : i32, i32
  }
  func.func @transform_2(%arg0: i32) -> (i32, i32) {
    %c0_i32 = arith.constant 0 : i32
    %c0_i32_0 = arith.constant 0 : i32
    %c0_i32_1 = arith.constant 0 : i32
    return %c0_i32, %c0_i32_0 : i32, i32
  }
  func.func @transform_3(%arg0: i32) -> (i32, i32) {
    %c0_i32 = arith.constant 0 : i32
    %c0_i32_0 = arith.constant 0 : i32
    return %arg0, %c0_i32 : i32, i32
  }
  func.func @transform_4(%arg0: i32) -> (i32, i32) {
    %c0_i32 = arith.constant 0 : i32
    %c0_i32_0 = arith.constant 0 : i32
    return %arg0, %c0_i32 : i32, i32
  }
}

module attributes {stable_mosaic.version = 11 : i64} {
  func.func @_matmul_bias_kernel(%arg0: i32, %arg1: memref<8x576xbf16, #tpu.memory_space<vmem>>, %arg2: memref<576x128xbf16, #tpu.memory_space<vmem>>, %arg3: memref<1x128xf32, #tpu.memory_space<vmem>>, %arg4: memref<8x128xf32, #tpu.memory_space<vmem>>) attributes {dimension_semantics = [#tpu.dimension_semantics<parallel>], iteration_bounds = array<i64: 1>, scalar_prefetch = 0 : i64, scratch_operands = 0 : i64, tpu.core_type = #tpu.core_type<tc>, window_params = [{transform_indices = @transform_0, window_bounds = array<i64: 8, 576>}, {pipeline_mode = #tpu.pipeline_mode<synchronous>, transform_indices = @transform_1, window_bounds = array<i64: 576, 128>}, {pipeline_mode = #tpu.pipeline_mode<synchronous>, transform_indices = @transform_2, window_bounds = array<i64: 1, 128>}, {transform_indices = @transform_3, window_bounds = array<i64: 8, 128>}]} {
    %c0 = arith.constant 0 : index
    %c0_0 = arith.constant 0 : index
    %0 = vector.load %arg1[%c0, %c0_0] : memref<8x576xbf16, #tpu.memory_space<vmem>>, vector<8x576xbf16>
    %c0_1 = arith.constant 0 : index
    %c0_2 = arith.constant 0 : index
    %1 = vector.load %arg2[%c0_1, %c0_2] : memref<576x128xbf16, #tpu.memory_space<vmem>>, vector<576x128xbf16>
    %cst = arith.constant dense<0.000000e+00> : vector<8x128xf32>
    %2 = tpu.matmul %0, %1, %cst {dimension_numbers = #tpu.dot_dimension_numbers<[1], [0], [0], [1], [0, 0, 1, 1], [], []>} : vector<8x576xbf16>, vector<576x128xbf16>, vector<8x128xf32> -> vector<8x128xf32>
    %c0_3 = arith.constant 0 : index
    %c0_4 = arith.constant 0 : index
    %3 = vector.load %arg3[%c0_3, %c0_4] : memref<1x128xf32, #tpu.memory_space<vmem>>, vector<1x128xf32>
    %4 = vector.broadcast %3 : vector<1x128xf32> to vector<8x128xf32>
    %5 = arith.addf %2, %4 : vector<8x128xf32>
    %cst_5 = arith.constant 0.000000e+00 : f32
    %6 = vector.broadcast %cst_5 : f32 to vector<8x128xf32>
    %7 = arith.maximumf %5, %6 : vector<8x128xf32>
    %c0_6 = arith.constant 0 : index
    %c0_7 = arith.constant 0 : index
    %8 = vector.load %arg4[%c0_6, %c0_7] : memref<8x128xf32, #tpu.memory_space<vmem>>, vector<8x128xf32>
    tpu.vector_store %arg4[%c0_6, %c0_7], %7 {strides = array<i32>} : memref<8x128xf32, #tpu.memory_space<vmem>>, vector<8x128xf32>,
    return
  }
  func.func @transform_0(%arg0: i32) -> (i32, i32) {
    %c0_i32 = arith.constant 0 : i32
    %c0_i32_0 = arith.constant 0 : i32
    return %arg0, %c0_i32 : i32, i32
  }
  func.func @transform_1(%arg0: i32) -> (i32, i32) {
    %c0_i32 = arith.constant 0 : i32
    %c0_i32_0 = arith.constant 0 : i32
    %c0_i32_1 = arith.constant 0 : i32
    return %c0_i32, %c0_i32_0 : i32, i32
  }
  func.func @transform_2(%arg0: i32) -> (i32, i32) {
    %c0_i32 = arith.constant 0 : i32
    %c0_i32_0 = arith.constant 0 : i32
    %c0_i32_1 = arith.constant 0 : i32
    return %c0_i32, %c0_i32_0 : i32, i32
  }
  func.func @transform_3(%arg0: i32) -> (i32, i32) {
    %c0_i32 = arith.constant 0 : i32
    %c0_i32_0 = arith.constant 0 : i32
    return %arg0, %c0_i32 : i32, i32
  }
}

module attributes {stable_mosaic.version = 11 : i64} {
  func.func @_matmul_bias_kernel(%arg0: i32, %arg1: memref<8x64xbf16, #tpu.memory_space<vmem>>, %arg2: memref<64x128xbf16, #tpu.memory_space<vmem>>, %arg3: memref<1x128xf32, #tpu.memory_space<vmem>>, %arg4: memref<8x128xf32, #tpu.memory_space<vmem>>) attributes {dimension_semantics = [#tpu.dimension_semantics<parallel>], iteration_bounds = array<i64: 1>, scalar_prefetch = 0 : i64, scratch_operands = 0 : i64, tpu.core_type = #tpu.core_type<tc>, window_params = [{transform_indices = @transform_0, window_bounds = array<i64: 8, 64>}, {pipeline_mode = #tpu.pipeline_mode<synchronous>, transform_indices = @transform_1, window_bounds = array<i64: 64, 128>}, {pipeline_mode = #tpu.pipeline_mode<synchronous>, transform_indices = @transform_2, window_bounds = array<i64: 1, 128>}, {transform_indices = @transform_3, window_bounds = array<i64: 8, 128>}]} {
    %c0 = arith.constant 0 : index
    %c0_0 = arith.constant 0 : index
    %0 = vector.load %arg1[%c0, %c0_0] : memref<8x64xbf16, #tpu.memory_space<vmem>>, vector<8x64xbf16>
    %c0_1 = arith.constant 0 : index
    %c0_2 = arith.constant 0 : index
    %1 = vector.load %arg2[%c0_1, %c0_2] : memref<64x128xbf16, #tpu.memory_space<vmem>>, vector<64x128xbf16>
    %cst = arith.constant dense<0.000000e+00> : vector<8x128xf32>
    %2 = tpu.matmul %0, %1, %cst {dimension_numbers = #tpu.dot_dimension_numbers<[1], [0], [0], [1], [0, 0, 1, 1], [], []>} : vector<8x64xbf16>, vector<64x128xbf16>, vector<8x128xf32> -> vector<8x128xf32>
    %c0_3 = arith.constant 0 : index
    %c0_4 = arith.constant 0 : index
    %3 = vector.load %arg3[%c0_3, %c0_4] : memref<1x128xf32, #tpu.memory_space<vmem>>, vector<1x128xf32>
    %4 = vector.broadcast %3 : vector<1x128xf32> to vector<8x128xf32>
    %5 = arith.addf %2, %4 : vector<8x128xf32>
    %c0_5 = arith.constant 0 : index
    %c0_6 = arith.constant 0 : index
    %6 = vector.load %arg4[%c0_5, %c0_6] : memref<8x128xf32, #tpu.memory_space<vmem>>, vector<8x128xf32>
    tpu.vector_store %arg4[%c0_5, %c0_6], %5 {strides = array<i32>} : memref<8x128xf32, #tpu.memory_space<vmem>>, vector<8x128xf32>,
    return
  }
  func.func @transform_0(%arg0: i32) -> (i32, i32) {
    %c0_i32 = arith.constant 0 : i32
    %c0_i32_0 = arith.constant 0 : i32
    return %arg0, %c0_i32 : i32, i32
  }
  func.func @transform_1(%arg0: i32) -> (i32, i32) {
    %c0_i32 = arith.constant 0 : i32
    %c0_i32_0 = arith.constant 0 : i32
    %c0_i32_1 = arith.constant 0 : i32
    return %c0_i32, %c0_i32_0 : i32, i32
  }
  func.func @transform_2(%arg0: i32) -> (i32, i32) {
    %c0_i32 = arith.constant 0 : i32
    %c0_i32_0 = arith.constant 0 : i32
    %c0_i32_1 = arith.constant 0 : i32
    return %c0_i32, %c0_i32_0 : i32, i32
  }
  func.func @transform_3(%arg0: i32) -> (i32, i32) {
    %c0_i32 = arith.constant 0 : i32
    %c0_i32_0 = arith.constant 0 : i32
    return %arg0, %c0_i32 : i32, i32
  }
}

module attributes {stable_mosaic.version = 11 : i64} {
  func.func @_matmul_bias_res_kernel(%arg0: i32, %arg1: memref<8x1152xbf16, #tpu.memory_space<vmem>>, %arg2: memref<1152x128xbf16, #tpu.memory_space<vmem>>, %arg3: memref<1x128xf32, #tpu.memory_space<vmem>>, %arg4: memref<8x128xf32, #tpu.memory_space<vmem>>, %arg5: memref<8x128xf32, #tpu.memory_space<vmem>>) attributes {dimension_semantics = [#tpu.dimension_semantics<parallel>], iteration_bounds = array<i64: 1>, scalar_prefetch = 0 : i64, scratch_operands = 0 : i64, tpu.core_type = #tpu.core_type<tc>, window_params = [{transform_indices = @transform_0, window_bounds = array<i64: 8, 1152>}, {pipeline_mode = #tpu.pipeline_mode<synchronous>, transform_indices = @transform_1, window_bounds = array<i64: 1152, 128>}, {pipeline_mode = #tpu.pipeline_mode<synchronous>, transform_indices = @transform_2, window_bounds = array<i64: 1, 128>}, {transform_indices = @transform_3, window_bounds = array<i64: 8, 128>}, {transform_indices = @transform_4, window_bounds = array<i64: 8, 128>}]} {
    %c0 = arith.constant 0 : index
    %c0_0 = arith.constant 0 : index
    %0 = vector.load %arg1[%c0, %c0_0] : memref<8x1152xbf16, #tpu.memory_space<vmem>>, vector<8x1152xbf16>
    %c0_1 = arith.constant 0 : index
    %c0_2 = arith.constant 0 : index
    %1 = vector.load %arg2[%c0_1, %c0_2] : memref<1152x128xbf16, #tpu.memory_space<vmem>>, vector<1152x128xbf16>
    %cst = arith.constant dense<0.000000e+00> : vector<8x128xf32>
    %2 = tpu.matmul %0, %1, %cst {dimension_numbers = #tpu.dot_dimension_numbers<[1], [0], [0], [1], [0, 0, 1, 1], [], []>} : vector<8x1152xbf16>, vector<1152x128xbf16>, vector<8x128xf32> -> vector<8x128xf32>
    %c0_3 = arith.constant 0 : index
    %c0_4 = arith.constant 0 : index
    %3 = vector.load %arg3[%c0_3, %c0_4] : memref<1x128xf32, #tpu.memory_space<vmem>>, vector<1x128xf32>
    %4 = vector.broadcast %3 : vector<1x128xf32> to vector<8x128xf32>
    %5 = arith.addf %2, %4 : vector<8x128xf32>
    %c0_5 = arith.constant 0 : index
    %c0_6 = arith.constant 0 : index
    %6 = vector.load %arg4[%c0_5, %c0_6] : memref<8x128xf32, #tpu.memory_space<vmem>>, vector<8x128xf32>
    %7 = arith.addf %5, %6 : vector<8x128xf32>
    %cst_7 = arith.constant 0.000000e+00 : f32
    %8 = vector.broadcast %cst_7 : f32 to vector<8x128xf32>
    %9 = arith.maximumf %7, %8 : vector<8x128xf32>
    %c0_8 = arith.constant 0 : index
    %c0_9 = arith.constant 0 : index
    %10 = vector.load %arg5[%c0_8, %c0_9] : memref<8x128xf32, #tpu.memory_space<vmem>>, vector<8x128xf32>
    tpu.vector_store %arg5[%c0_8, %c0_9], %9 {strides = array<i32>} : memref<8x128xf32, #tpu.memory_space<vmem>>, vector<8x128xf32>,
    return
  }
  func.func @transform_0(%arg0: i32) -> (i32, i32) {
    %c0_i32 = arith.constant 0 : i32
    %c0_i32_0 = arith.constant 0 : i32
    return %arg0, %c0_i32 : i32, i32
  }
  func.func @transform_1(%arg0: i32) -> (i32, i32) {
    %c0_i32 = arith.constant 0 : i32
    %c0_i32_0 = arith.constant 0 : i32
    %c0_i32_1 = arith.constant 0 : i32
    return %c0_i32, %c0_i32_0 : i32, i32
  }
  func.func @transform_2(%arg0: i32) -> (i32, i32) {
    %c0_i32 = arith.constant 0 : i32
    %c0_i32_0 = arith.constant 0 : i32
    %c0_i32_1 = arith.constant 0 : i32
    return %c0_i32, %c0_i32_0 : i32, i32
  }
  func.func @transform_3(%arg0: i32) -> (i32, i32) {
    %c0_i32 = arith.constant 0 : i32
    %c0_i32_0 = arith.constant 0 : i32
    return %arg0, %c0_i32 : i32, i32
  }
  func.func @transform_4(%arg0: i32) -> (i32, i32) {
    %c0_i32 = arith.constant 0 : i32
    %c0_i32_0 = arith.constant 0 : i32
    return %arg0, %c0_i32 : i32, i32
  }
}

module attributes {stable_mosaic.version = 11 : i64} {
  func.func @_matmul_bias_kernel(%arg0: i32, %arg1: memref<8x1152xbf16, #tpu.memory_space<vmem>>, %arg2: memref<1152x128xbf16, #tpu.memory_space<vmem>>, %arg3: memref<1x128xf32, #tpu.memory_space<vmem>>, %arg4: memref<8x128xf32, #tpu.memory_space<vmem>>) attributes {dimension_semantics = [#tpu.dimension_semantics<parallel>], iteration_bounds = array<i64: 1>, scalar_prefetch = 0 : i64, scratch_operands = 0 : i64, tpu.core_type = #tpu.core_type<tc>, window_params = [{transform_indices = @transform_0, window_bounds = array<i64: 8, 1152>}, {pipeline_mode = #tpu.pipeline_mode<synchronous>, transform_indices = @transform_1, window_bounds = array<i64: 1152, 128>}, {pipeline_mode = #tpu.pipeline_mode<synchronous>, transform_indices = @transform_2, window_bounds = array<i64: 1, 128>}, {transform_indices = @transform_3, window_bounds = array<i64: 8, 128>}]} {
    %c0 = arith.constant 0 : index
    %c0_0 = arith.constant 0 : index
    %0 = vector.load %arg1[%c0, %c0_0] : memref<8x1152xbf16, #tpu.memory_space<vmem>>, vector<8x1152xbf16>
    %c0_1 = arith.constant 0 : index
    %c0_2 = arith.constant 0 : index
    %1 = vector.load %arg2[%c0_1, %c0_2] : memref<1152x128xbf16, #tpu.memory_space<vmem>>, vector<1152x128xbf16>
    %cst = arith.constant dense<0.000000e+00> : vector<8x128xf32>
    %2 = tpu.matmul %0, %1, %cst {dimension_numbers = #tpu.dot_dimension_numbers<[1], [0], [0], [1], [0, 0, 1, 1], [], []>} : vector<8x1152xbf16>, vector<1152x128xbf16>, vector<8x128xf32> -> vector<8x128xf32>
    %c0_3 = arith.constant 0 : index
    %c0_4 = arith.constant 0 : index
    %3 = vector.load %arg3[%c0_3, %c0_4] : memref<1x128xf32, #tpu.memory_space<vmem>>, vector<1x128xf32>
    %4 = vector.broadcast %3 : vector<1x128xf32> to vector<8x128xf32>
    %5 = arith.addf %2, %4 : vector<8x128xf32>
    %cst_5 = arith.constant 0.000000e+00 : f32
    %6 = vector.broadcast %cst_5 : f32 to vector<8x128xf32>
    %7 = arith.maximumf %5, %6 : vector<8x128xf32>
    %c0_6 = arith.constant 0 : index
    %c0_7 = arith.constant 0 : index
    %8 = vector.load %arg4[%c0_6, %c0_7] : memref<8x128xf32, #tpu.memory_space<vmem>>, vector<8x128xf32>
    tpu.vector_store %arg4[%c0_6, %c0_7], %7 {strides = array<i32>} : memref<8x128xf32, #tpu.memory_space<vmem>>, vector<8x128xf32>,
    return
  }
  func.func @transform_0(%arg0: i32) -> (i32, i32) {
    %c0_i32 = arith.constant 0 : i32
    %c0_i32_0 = arith.constant 0 : i32
    return %arg0, %c0_i32 : i32, i32
  }
  func.func @transform_1(%arg0: i32) -> (i32, i32) {
    %c0_i32 = arith.constant 0 : i32
    %c0_i32_0 = arith.constant 0 : i32
    %c0_i32_1 = arith.constant 0 : i32
    return %c0_i32, %c0_i32_0 : i32, i32
  }
  func.func @transform_2(%arg0: i32) -> (i32, i32) {
    %c0_i32 = arith.constant 0 : i32
    %c0_i32_0 = arith.constant 0 : i32
    %c0_i32_1 = arith.constant 0 : i32
    return %c0_i32, %c0_i32_0 : i32, i32
  }
  func.func @transform_3(%arg0: i32) -> (i32, i32) {
    %c0_i32 = arith.constant 0 : i32
    %c0_i32_0 = arith.constant 0 : i32
    return %arg0, %c0_i32 : i32, i32
  }
}

module attributes {stable_mosaic.version = 11 : i64} {
  func.func @_matmul_bias_kernel(%arg0: i32, %arg1: memref<8x1152xbf16, #tpu.memory_space<vmem>>, %arg2: memref<1152x256xbf16, #tpu.memory_space<vmem>>, %arg3: memref<1x256xf32, #tpu.memory_space<vmem>>, %arg4: memref<8x256xf32, #tpu.memory_space<vmem>>) attributes {dimension_semantics = [#tpu.dimension_semantics<parallel>], iteration_bounds = array<i64: 1>, scalar_prefetch = 0 : i64, scratch_operands = 0 : i64, tpu.core_type = #tpu.core_type<tc>, window_params = [{transform_indices = @transform_0, window_bounds = array<i64: 8, 1152>}, {pipeline_mode = #tpu.pipeline_mode<synchronous>, transform_indices = @transform_1, window_bounds = array<i64: 1152, 256>}, {pipeline_mode = #tpu.pipeline_mode<synchronous>, transform_indices = @transform_2, window_bounds = array<i64: 1, 256>}, {transform_indices = @transform_3, window_bounds = array<i64: 8, 256>}]} {
    %c0 = arith.constant 0 : index
    %c0_0 = arith.constant 0 : index
    %0 = vector.load %arg1[%c0, %c0_0] : memref<8x1152xbf16, #tpu.memory_space<vmem>>, vector<8x1152xbf16>
    %c0_1 = arith.constant 0 : index
    %c0_2 = arith.constant 0 : index
    %1 = vector.load %arg2[%c0_1, %c0_2] : memref<1152x256xbf16, #tpu.memory_space<vmem>>, vector<1152x256xbf16>
    %cst = arith.constant dense<0.000000e+00> : vector<8x256xf32>
    %2 = tpu.matmul %0, %1, %cst {dimension_numbers = #tpu.dot_dimension_numbers<[1], [0], [0], [1], [0, 0, 1, 1], [], []>} : vector<8x1152xbf16>, vector<1152x256xbf16>, vector<8x256xf32> -> vector<8x256xf32>
    %c0_3 = arith.constant 0 : index
    %c0_4 = arith.constant 0 : index
    %3 = vector.load %arg3[%c0_3, %c0_4] : memref<1x256xf32, #tpu.memory_space<vmem>>, vector<1x256xf32>
    %4 = vector.broadcast %3 : vector<1x256xf32> to vector<8x256xf32>
    %5 = arith.addf %2, %4 : vector<8x256xf32>
    %cst_5 = arith.constant 0.000000e+00 : f32
    %6 = vector.broadcast %cst_5 : f32 to vector<8x256xf32>
    %7 = arith.maximumf %5, %6 : vector<8x256xf32>
    %c0_6 = arith.constant 0 : index
    %c0_7 = arith.constant 0 : index
    %8 = vector.load %arg4[%c0_6, %c0_7] : memref<8x256xf32, #tpu.memory_space<vmem>>, vector<8x256xf32>
    tpu.vector_store %arg4[%c0_6, %c0_7], %7 {strides = array<i32>} : memref<8x256xf32, #tpu.memory_space<vmem>>, vector<8x256xf32>,
    return
  }
  func.func @transform_0(%arg0: i32) -> (i32, i32) {
    %c0_i32 = arith.constant 0 : i32
    %c0_i32_0 = arith.constant 0 : i32
    return %arg0, %c0_i32 : i32, i32
  }
  func.func @transform_1(%arg0: i32) -> (i32, i32) {
    %c0_i32 = arith.constant 0 : i32
    %c0_i32_0 = arith.constant 0 : i32
    %c0_i32_1 = arith.constant 0 : i32
    return %c0_i32, %c0_i32_0 : i32, i32
  }
  func.func @transform_2(%arg0: i32) -> (i32, i32) {
    %c0_i32 = arith.constant 0 : i32
    %c0_i32_0 = arith.constant 0 : i32
    %c0_i32_1 = arith.constant 0 : i32
    return %c0_i32, %c0_i32_0 : i32, i32
  }
  func.func @transform_3(%arg0: i32) -> (i32, i32) {
    %c0_i32 = arith.constant 0 : i32
    %c0_i32_0 = arith.constant 0 : i32
    return %arg0, %c0_i32 : i32, i32
  }
}

module attributes {stable_mosaic.version = 11 : i64} {
  func.func @_matmul_bias_kernel(%arg0: i32, %arg1: memref<8x128xbf16, #tpu.memory_space<vmem>>, %arg2: memref<128x256xbf16, #tpu.memory_space<vmem>>, %arg3: memref<1x256xf32, #tpu.memory_space<vmem>>, %arg4: memref<8x256xf32, #tpu.memory_space<vmem>>) attributes {dimension_semantics = [#tpu.dimension_semantics<parallel>], iteration_bounds = array<i64: 1>, scalar_prefetch = 0 : i64, scratch_operands = 0 : i64, tpu.core_type = #tpu.core_type<tc>, window_params = [{transform_indices = @transform_0, window_bounds = array<i64: 8, 128>}, {pipeline_mode = #tpu.pipeline_mode<synchronous>, transform_indices = @transform_1, window_bounds = array<i64: 128, 256>}, {pipeline_mode = #tpu.pipeline_mode<synchronous>, transform_indices = @transform_2, window_bounds = array<i64: 1, 256>}, {transform_indices = @transform_3, window_bounds = array<i64: 8, 256>}]} {
    %c0 = arith.constant 0 : index
    %c0_0 = arith.constant 0 : index
    %0 = vector.load %arg1[%c0, %c0_0] : memref<8x128xbf16, #tpu.memory_space<vmem>>, vector<8x128xbf16>
    %c0_1 = arith.constant 0 : index
    %c0_2 = arith.constant 0 : index
    %1 = vector.load %arg2[%c0_1, %c0_2] : memref<128x256xbf16, #tpu.memory_space<vmem>>, vector<128x256xbf16>
    %cst = arith.constant dense<0.000000e+00> : vector<8x256xf32>
    %2 = tpu.matmul %0, %1, %cst {dimension_numbers = #tpu.dot_dimension_numbers<[1], [0], [0], [1], [0, 0, 1, 1], [], []>} : vector<8x128xbf16>, vector<128x256xbf16>, vector<8x256xf32> -> vector<8x256xf32>
    %c0_3 = arith.constant 0 : index
    %c0_4 = arith.constant 0 : index
    %3 = vector.load %arg3[%c0_3, %c0_4] : memref<1x256xf32, #tpu.memory_space<vmem>>, vector<1x256xf32>
    %4 = vector.broadcast %3 : vector<1x256xf32> to vector<8x256xf32>
    %5 = arith.addf %2, %4 : vector<8x256xf32>
    %c0_5 = arith.constant 0 : index
    %c0_6 = arith.constant 0 : index
    %6 = vector.load %arg4[%c0_5, %c0_6] : memref<8x256xf32, #tpu.memory_space<vmem>>, vector<8x256xf32>
    tpu.vector_store %arg4[%c0_5, %c0_6], %5 {strides = array<i32>} : memref<8x256xf32, #tpu.memory_space<vmem>>, vector<8x256xf32>,
    return
  }
  func.func @transform_0(%arg0: i32) -> (i32, i32) {
    %c0_i32 = arith.constant 0 : i32
    %c0_i32_0 = arith.constant 0 : i32
    return %arg0, %c0_i32 : i32, i32
  }
  func.func @transform_1(%arg0: i32) -> (i32, i32) {
    %c0_i32 = arith.constant 0 : i32
    %c0_i32_0 = arith.constant 0 : i32
    %c0_i32_1 = arith.constant 0 : i32
    return %c0_i32, %c0_i32_0 : i32, i32
  }
  func.func @transform_2(%arg0: i32) -> (i32, i32) {
    %c0_i32 = arith.constant 0 : i32
    %c0_i32_0 = arith.constant 0 : i32
    %c0_i32_1 = arith.constant 0 : i32
    return %c0_i32, %c0_i32_0 : i32, i32
  }
  func.func @transform_3(%arg0: i32) -> (i32, i32) {
    %c0_i32 = arith.constant 0 : i32
    %c0_i32_0 = arith.constant 0 : i32
    return %arg0, %c0_i32 : i32, i32
  }
}

module attributes {stable_mosaic.version = 11 : i64} {
  func.func @_matmul_bias_res_kernel(%arg0: i32, %arg1: memref<8x2304xbf16, #tpu.memory_space<vmem>>, %arg2: memref<2304x256xbf16, #tpu.memory_space<vmem>>, %arg3: memref<1x256xf32, #tpu.memory_space<vmem>>, %arg4: memref<8x256xf32, #tpu.memory_space<vmem>>, %arg5: memref<8x256xf32, #tpu.memory_space<vmem>>) attributes {dimension_semantics = [#tpu.dimension_semantics<parallel>], iteration_bounds = array<i64: 1>, scalar_prefetch = 0 : i64, scratch_operands = 0 : i64, tpu.core_type = #tpu.core_type<tc>, window_params = [{transform_indices = @transform_0, window_bounds = array<i64: 8, 2304>}, {pipeline_mode = #tpu.pipeline_mode<synchronous>, transform_indices = @transform_1, window_bounds = array<i64: 2304, 256>}, {pipeline_mode = #tpu.pipeline_mode<synchronous>, transform_indices = @transform_2, window_bounds = array<i64: 1, 256>}, {transform_indices = @transform_3, window_bounds = array<i64: 8, 256>}, {transform_indices = @transform_4, window_bounds = array<i64: 8, 256>}]} {
    %c0 = arith.constant 0 : index
    %c0_0 = arith.constant 0 : index
    %0 = vector.load %arg1[%c0, %c0_0] : memref<8x2304xbf16, #tpu.memory_space<vmem>>, vector<8x2304xbf16>
    %c0_1 = arith.constant 0 : index
    %c0_2 = arith.constant 0 : index
    %1 = vector.load %arg2[%c0_1, %c0_2] : memref<2304x256xbf16, #tpu.memory_space<vmem>>, vector<2304x256xbf16>
    %cst = arith.constant dense<0.000000e+00> : vector<8x256xf32>
    %2 = tpu.matmul %0, %1, %cst {dimension_numbers = #tpu.dot_dimension_numbers<[1], [0], [0], [1], [0, 0, 1, 1], [], []>} : vector<8x2304xbf16>, vector<2304x256xbf16>, vector<8x256xf32> -> vector<8x256xf32>
    %c0_3 = arith.constant 0 : index
    %c0_4 = arith.constant 0 : index
    %3 = vector.load %arg3[%c0_3, %c0_4] : memref<1x256xf32, #tpu.memory_space<vmem>>, vector<1x256xf32>
    %4 = vector.broadcast %3 : vector<1x256xf32> to vector<8x256xf32>
    %5 = arith.addf %2, %4 : vector<8x256xf32>
    %c0_5 = arith.constant 0 : index
    %c0_6 = arith.constant 0 : index
    %6 = vector.load %arg4[%c0_5, %c0_6] : memref<8x256xf32, #tpu.memory_space<vmem>>, vector<8x256xf32>
    %7 = arith.addf %5, %6 : vector<8x256xf32>
    %cst_7 = arith.constant 0.000000e+00 : f32
    %8 = vector.broadcast %cst_7 : f32 to vector<8x256xf32>
    %9 = arith.maximumf %7, %8 : vector<8x256xf32>
    %c0_8 = arith.constant 0 : index
    %c0_9 = arith.constant 0 : index
    %10 = vector.load %arg5[%c0_8, %c0_9] : memref<8x256xf32, #tpu.memory_space<vmem>>, vector<8x256xf32>
    tpu.vector_store %arg5[%c0_8, %c0_9], %9 {strides = array<i32>} : memref<8x256xf32, #tpu.memory_space<vmem>>, vector<8x256xf32>,
    return
  }
  func.func @transform_0(%arg0: i32) -> (i32, i32) {
    %c0_i32 = arith.constant 0 : i32
    %c0_i32_0 = arith.constant 0 : i32
    return %arg0, %c0_i32 : i32, i32
  }
  func.func @transform_1(%arg0: i32) -> (i32, i32) {
    %c0_i32 = arith.constant 0 : i32
    %c0_i32_0 = arith.constant 0 : i32
    %c0_i32_1 = arith.constant 0 : i32
    return %c0_i32, %c0_i32_0 : i32, i32
  }
  func.func @transform_2(%arg0: i32) -> (i32, i32) {
    %c0_i32 = arith.constant 0 : i32
    %c0_i32_0 = arith.constant 0 : i32
    %c0_i32_1 = arith.constant 0 : i32
    return %c0_i32, %c0_i32_0 : i32, i32
  }
  func.func @transform_3(%arg0: i32) -> (i32, i32) {
    %c0_i32 = arith.constant 0 : i32
    %c0_i32_0 = arith.constant 0 : i32
    return %arg0, %c0_i32 : i32, i32
  }
  func.func @transform_4(%arg0: i32) -> (i32, i32) {
    %c0_i32 = arith.constant 0 : i32
    %c0_i32_0 = arith.constant 0 : i32
    return %arg0, %c0_i32 : i32, i32
  }
}

module attributes {stable_mosaic.version = 11 : i64} {
  func.func @_matmul_bias_kernel(%arg0: i32, %arg1: memref<8x2304xbf16, #tpu.memory_space<vmem>>, %arg2: memref<2304x256xbf16, #tpu.memory_space<vmem>>, %arg3: memref<1x256xf32, #tpu.memory_space<vmem>>, %arg4: memref<8x256xf32, #tpu.memory_space<vmem>>) attributes {dimension_semantics = [#tpu.dimension_semantics<parallel>], iteration_bounds = array<i64: 1>, scalar_prefetch = 0 : i64, scratch_operands = 0 : i64, tpu.core_type = #tpu.core_type<tc>, window_params = [{transform_indices = @transform_0, window_bounds = array<i64: 8, 2304>}, {pipeline_mode = #tpu.pipeline_mode<synchronous>, transform_indices = @transform_1, window_bounds = array<i64: 2304, 256>}, {pipeline_mode = #tpu.pipeline_mode<synchronous>, transform_indices = @transform_2, window_bounds = array<i64: 1, 256>}, {transform_indices = @transform_3, window_bounds = array<i64: 8, 256>}]} {
    %c0 = arith.constant 0 : index
    %c0_0 = arith.constant 0 : index
    %0 = vector.load %arg1[%c0, %c0_0] : memref<8x2304xbf16, #tpu.memory_space<vmem>>, vector<8x2304xbf16>
    %c0_1 = arith.constant 0 : index
    %c0_2 = arith.constant 0 : index
    %1 = vector.load %arg2[%c0_1, %c0_2] : memref<2304x256xbf16, #tpu.memory_space<vmem>>, vector<2304x256xbf16>
    %cst = arith.constant dense<0.000000e+00> : vector<8x256xf32>
    %2 = tpu.matmul %0, %1, %cst {dimension_numbers = #tpu.dot_dimension_numbers<[1], [0], [0], [1], [0, 0, 1, 1], [], []>} : vector<8x2304xbf16>, vector<2304x256xbf16>, vector<8x256xf32> -> vector<8x256xf32>
    %c0_3 = arith.constant 0 : index
    %c0_4 = arith.constant 0 : index
    %3 = vector.load %arg3[%c0_3, %c0_4] : memref<1x256xf32, #tpu.memory_space<vmem>>, vector<1x256xf32>
    %4 = vector.broadcast %3 : vector<1x256xf32> to vector<8x256xf32>
    %5 = arith.addf %2, %4 : vector<8x256xf32>
    %cst_5 = arith.constant 0.000000e+00 : f32
    %6 = vector.broadcast %cst_5 : f32 to vector<8x256xf32>
    %7 = arith.maximumf %5, %6 : vector<8x256xf32>
    %c0_6 = arith.constant 0 : index
    %c0_7 = arith.constant 0 : index
    %8 = vector.load %arg4[%c0_6, %c0_7] : memref<8x256xf32, #tpu.memory_space<vmem>>, vector<8x256xf32>
    tpu.vector_store %arg4[%c0_6, %c0_7], %7 {strides = array<i32>} : memref<8x256xf32, #tpu.memory_space<vmem>>, vector<8x256xf32>,
    return
  }
  func.func @transform_0(%arg0: i32) -> (i32, i32) {
    %c0_i32 = arith.constant 0 : i32
    %c0_i32_0 = arith.constant 0 : i32
    return %arg0, %c0_i32 : i32, i32
  }
  func.func @transform_1(%arg0: i32) -> (i32, i32) {
    %c0_i32 = arith.constant 0 : i32
    %c0_i32_0 = arith.constant 0 : i32
    %c0_i32_1 = arith.constant 0 : i32
    return %c0_i32, %c0_i32_0 : i32, i32
  }
  func.func @transform_2(%arg0: i32) -> (i32, i32) {
    %c0_i32 = arith.constant 0 : i32
    %c0_i32_0 = arith.constant 0 : i32
    %c0_i32_1 = arith.constant 0 : i32
    return %c0_i32, %c0_i32_0 : i32, i32
  }
  func.func @transform_3(%arg0: i32) -> (i32, i32) {
    %c0_i32 = arith.constant 0 : i32
    %c0_i32_0 = arith.constant 0 : i32
    return %arg0, %c0_i32 : i32, i32
  }
}

</mosaic_0001>

<bundles_post_ra>
// kernel: resnet_basicblock_os8_forward.15
= control target key start
LH: loop header
LB: loop body
LE: loop exit
PB: predicated region body
PF: predicated region fallthrough
CT: control target
= control target key end

     0   :  { %v442_v0 = vmov 0   ;;  %vm186_vm0 = vcmask 154624   ;;  %vm211_vm1 = vcmask 1040384   ;;  %vm212_vm2 = vcmask 1041408   ;;  %s619_s1 = inlined_call_operand.vmem [shape: bf16[147,128], index: 1, kind: input, shape index: {}]   ;;  %s620_s0 = inlined_call_operand.vmem [shape: bf16[128,147], index: 0, kind: input, shape index: {}]   ;;  %s621_s2 = inlined_call_operand.vmem [shape: f32[1,128], index: 2, kind: input, shape index: {}]   ;;  %s622_s3 = inlined_call_operand.vmem [shape: f32[128,128], index: 3, kind: output, shape index: {}]  }
   0x1   :  { %218 = vmatprep.subr.bf16.mxu0 %v442_v0  ;;  %386 = vmatprep.subr.bf16.mxu1 %v442_v0  ;;  %v408_v1 = vld [vmem:[%s619_s1] sm:$0xff]   ;;  %v409_v2 = vld [vmem:[%s619_s1 + $0x8] sm:$0xff]   ;;  %v410_v3 = vld [vmem:[%s619_s1 + $0x10] sm:$0xff]   ;;  %v443_v11 = vmov 65535  }
   0x2   :  { %219 = vmatpush1.bf16.msra.mxu0 %v408_v1  ;;  %396 = vmatpush1.bf16.msra.mxu1 %v408_v1  ;;  %v411_v4 = vld [vmem:[%s619_s1 + $0x18] sm:$0xff]   ;;  %v420_v5 = vld [vmem:[%s620_s0 + $0x4] ss:$8 sps:$4 sm:$0xff]   ;;  %v414_v9 = vld [vmem:[%s619_s1 + $0x30] sm:$0xff]   ;;  %v213_v12 = vsel %vm211_vm1, 4294967295, %v443_v11 }
   0x3   :  { %220 = vmatprep.subr.bf16.mxu0 %v442_v0  ;;  %387 = vmatprep.subr.bf16.mxu1 %v442_v0  ;;  %v423_v6 = vld [vmem:[%s620_s0 + $0x44] ss:$8 sps:$4 sm:$0xff]   ;;  %v415_v10 = vld [vmem:[%s619_s1 + $0x38] sm:$0xff]   ;;  %v417_v14 = vld [vmem:[%s619_s1 + $0x48] ss:$0 sps:$4 sm:$0x33]  }
   0x4   :  { %378 = vmatprep.mubr.msk.bf16.mxu0 %vm186_vm0, %v420_v5  ;;  %v412_v7 = vld [vmem:[%s619_s1 + $0x20] sm:$0xff]   ;;  %382 = vmatprep.mubr.msk.bf16.mxu1 %vm186_vm0, %v423_v6  ;;  %v413_v8 = vld [vmem:[%s619_s1 + $0x28] sm:$0xff]   ;;  %v214_v15 = vsel %vm212_vm2, %v213_v12, 0  ;;  %v424_v19 = vld [vmem:[%s620_s0 + $0x14] ss:$8 sps:$4 sm:$0xff]  }
   0x5   :  { %v416_v13 = vld [vmem:[%s619_s1 + $0x40] sm:$0xff]   ;;  %v216_v16 = vand.u32 %v417_v14, %v214_v15  ;;  %v426_v20 = vld [vmem:[%s620_s0 + $0x54] ss:$8 sps:$4 sm:$0xff]   ;;  %v428_v21 = vld [vmem:[%s620_s0 + $0x10] ss:$8 sps:$4 sm:$0xff]  }
   0x6   :  { %221 = vmatpush1.bf16.msra.mxu0 %v409_v2  ;;  %397 = vmatpush1.bf16.msra.mxu1 %v409_v2  ;;  %v418_v17 = vld [vmem:[%s620_s0] ss:$8 sps:$4 sm:$0xff]   ;;  %v429_v22 = vld [vmem:[%s620_s0 + $0x50] ss:$8 sps:$4 sm:$0xff]   ;;  %v430_v23 = vld [vmem:[%s620_s0 + $0x24] ss:$8 sps:$4 sm:$0xff]  }
   0x7   :  { %222 = vmatprep.subr.bf16.mxu0 %v442_v0  ;;  %388 = vmatprep.subr.bf16.mxu1 %v442_v0  ;;  %v421_v18 = vld [vmem:[%s620_s0 + $0x40] ss:$8 sps:$4 sm:$0xff]   ;;  %v432_v24 = vld [vmem:[%s620_s0 + $0x64] ss:$8 sps:$4 sm:$0xff]   ;;  %v436_v27 = vld [vmem:[%s620_s0 + $0x34] ss:$8 sps:$4 sm:$0xff]  }
   0x8   :  { %v434_v25 = vld [vmem:[%s620_s0 + $0x20] ss:$8 sps:$4 sm:$0xff]   ;;  %v438_v28 = vld [vmem:[%s620_s0 + $0x74] ss:$8 sps:$4 sm:$0xff]   ;;  %v440_v29 = vld [vmem:[%s620_s0 + $0x30] ss:$8 sps:$4 sm:$0xff]  }
   0x9   :  { %v435_v26 = vld [vmem:[%s620_s0 + $0x60] ss:$8 sps:$4 sm:$0xff]   ;;  %v441_v30 = vld [vmem:[%s620_s0 + $0x70] ss:$8 sps:$4 sm:$0xff]  }
   0xa   :  { %223 = vmatpush1.bf16.msra.mxu0 %v410_v3  ;;  %398 = vmatpush1.bf16.msra.mxu1 %v410_v3  ;;  %v553_v31 = vld [vmem:[%s621_s2] ss:$0 sm:$0xff] }
   0xb   :  { %224 = vmatprep.subr.bf16.mxu0 %v442_v0  ;;  %389 = vmatprep.subr.bf16.mxu1 %v442_v0 }
   0xe   :  { %225 = vmatpush1.bf16.msra.mxu0 %v411_v4  ;;  %399 = vmatpush1.bf16.msra.mxu1 %v411_v4 }
   0xf   :  { %226 = vmatprep.subr.bf16.mxu0 %v442_v0  ;;  %390 = vmatprep.subr.bf16.mxu1 %v442_v0 }
  0x12   :  { %227 = vmatpush1.bf16.msra.mxu0 %v412_v7  ;;  %400 = vmatpush1.bf16.msra.mxu1 %v412_v7 }
  0x13   :  { %228 = vmatprep.subr.bf16.mxu0 %v442_v0  ;;  %391 = vmatprep.subr.bf16.mxu1 %v442_v0 }
  0x16   :  { %229 = vmatpush1.bf16.msra.mxu0 %v413_v8  ;;  %401 = vmatpush1.bf16.msra.mxu1 %v413_v8 }
  0x17   :  { %230 = vmatprep.subr.bf16.mxu0 %v442_v0  ;;  %392 = vmatprep.subr.bf16.mxu1 %v442_v0 }
  0x1a   :  { %231 = vmatpush1.bf16.msra.mxu0 %v414_v9  ;;  %402 = vmatpush1.bf16.msra.mxu1 %v414_v9 }
  0x1b   :  { %232 = vmatprep.subr.bf16.mxu0 %v442_v0  ;;  %393 = vmatprep.subr.bf16.mxu1 %v442_v0 }
  0x1e   :  { %233 = vmatpush1.bf16.msra.mxu0 %v415_v10  ;;  %403 = vmatpush1.bf16.msra.mxu1 %v415_v10 }
  0x1f   :  { %234 = vmatprep.subr.bf16.mxu0 %v442_v0  ;;  %394 = vmatprep.subr.bf16.mxu1 %v442_v0 }
  0x22   :  { %235 = vmatpush1.bf16.msra.mxu0 %v416_v13  ;;  %404 = vmatpush1.bf16.msra.mxu1 %v416_v13 }
  0x23   :  { %236 = vmatprep.subr.bf16.mxu0 %v442_v0  ;;  %395 = vmatprep.subr.bf16.mxu1 %v442_v0 }
  0x26   :  { %237 = vmatpush1.bf16.msra.mxu0 %v216_v16  ;;  %405 = vmatpush1.bf16.msra.mxu1 %v216_v16 }
  0x29   :  { %251 = vmatmul.mubr.bf16.vlgmr.msra.gmra.mrb[0].mxu0 %v418_v17  ;;  %283 = vmatmul.mubr.bf16.vlgmr.msra.gmra.mrb[0].mxu1 %v421_v18 }
  0x2a   :  { %379 = vmatprep.mubr.msk.bf16.mxu0 %vm186_vm0, %v424_v19  ;;  %383 = vmatprep.mubr.msk.bf16.mxu1 %vm186_vm0, %v426_v20 }
  0x31   :  { %259 = vmatmul.mubr.bf16.gmra.mrb[4].mxu0 %v428_v21  ;;  %291 = vmatmul.mubr.bf16.gmra.mrb[4].mxu1 %v429_v22 }
  0x32   :  { %380 = vmatprep.mubr.msk.bf16.mxu0 %vm186_vm0, %v430_v23  ;;  %384 = vmatprep.mubr.msk.bf16.mxu1 %vm186_vm0, %v432_v24 }
  0x39   :  { %267 = vmatmul.mubr.bf16.gmra.mrb[8].mxu0 %v434_v25  ;;  %299 = vmatmul.mubr.bf16.gmra.mrb[8].mxu1 %v435_v26 }
  0x3a   :  { %381 = vmatprep.mubr.msk.bf16.mxu0 %vm186_vm0, %v436_v27  ;;  %385 = vmatprep.mubr.msk.bf16.mxu1 %vm186_vm0, %v438_v28 }
  0x41   :  { %275 = vmatmul.mubr.bf16.gmra.mrb[12].mxu0 %v440_v29  ;;  %307 = vmatmul.mubr.bf16.gmra.mrb[12].mxu1 %v441_v30 }
  0xfc   :  { %v252_v32 = vpop.f32.mrb[0].mxu0  ;;  %v284_v33 = vpop.f32.mrb[0].mxu1 }
  0xfd   :  { %v253_v34 = vadd.f32 %v553_v31, %v252_v32  ;;  %v285_v35 = vadd.f32 %v553_v31, %v284_v33  ;;  %v254_v36 = vpop.f32.mrb[1].mxu0  ;;  %v286_v37 = vpop.f32.mrb[1].mxu1 }
  0xfe   :  { %v255_v38 = vpop.f32.mrb[2].mxu0  ;;  %v287_v39 = vpop.f32.mrb[2].mxu1 }
  0xff   :  { %v315_v40 = vmax.f32 %v253_v34, 0.0  ;;  %v323_v41 = vmax.f32 %v285_v35, 0.0  ;;  %v256_v42 = vadd.f32 %v553_v31, %v255_v38  ;;  %v288_v43 = vadd.f32 %v553_v31, %v287_v39  ;;  %v257_v44 = vpop.f32.mrb[3].mxu0  ;;  %v289_v45 = vpop.f32.mrb[3].mxu1 }
 0x101   :  { %331 = vst [vmem:[%s622_s3] sm:$0xff] %v315_v40  ;;  %339 = vst [vmem:[%s622_s3 + $0x40] sm:$0xff] %v323_v41  ;;  %v316_v46 = vmax.f32 %v256_v42, 0.0  ;;  %v324_v47 = vmax.f32 %v288_v43, 0.0 }
 0x103   :  { %332 = vst [vmem:[%s622_s3 + $0x8] sm:$0xff] %v316_v46  ;;  %340 = vst [vmem:[%s622_s3 + $0x48] sm:$0xff] %v324_v47 }
 0x104   :  { %v260_v48 = vpop.f32.mrb[4].mxu0  ;;  %v292_v49 = vpop.f32.mrb[4].mxu1 }
 0x105   :  { %v261_v50 = vadd.f32 %v553_v31, %v260_v48  ;;  %v293_v51 = vadd.f32 %v553_v31, %v292_v49  ;;  %v262_v52 = vpop.f32.mrb[5].mxu0  ;;  %v294_v53 = vpop.f32.mrb[5].mxu1 }
 0x106   :  { %v263_v54 = vpop.f32.mrb[6].mxu0  ;;  %v295_v55 = vpop.f32.mrb[6].mxu1 }
 0x107   :  { %v317_v56 = vmax.f32 %v261_v50, 0.0  ;;  %v325_v57 = vmax.f32 %v293_v51, 0.0  ;;  %v264_v58 = vadd.f32 %v553_v31, %v263_v54  ;;  %v296_v59 = vadd.f32 %v553_v31, %v295_v55  ;;  %v265_v60 = vpop.f32.mrb[7].mxu0  ;;  %v297_v61 = vpop.f32.mrb[7].mxu1 }
 0x109   :  { %333 = vst [vmem:[%s622_s3 + $0x10] sm:$0xff] %v317_v56  ;;  %341 = vst [vmem:[%s622_s3 + $0x50] sm:$0xff] %v325_v57  ;;  %v318_v62 = vmax.f32 %v264_v58, 0.0  ;;  %v326_v63 = vmax.f32 %v296_v59, 0.0 }
 0x10b   :  { %334 = vst [vmem:[%s622_s3 + $0x18] sm:$0xff] %v318_v62  ;;  %342 = vst [vmem:[%s622_s3 + $0x58] sm:$0xff] %v326_v63 }
 0x10c   :  { %v268_v0 = vpop.f32.mrb[8].mxu0  ;;  %v300_v1 = vpop.f32.mrb[8].mxu1 }
 0x10d   :  { %v269_v2 = vadd.f32 %v553_v31, %v268_v0  ;;  %v301_v3 = vadd.f32 %v553_v31, %v300_v1  ;;  %v270_v4 = vpop.f32.mrb[9].mxu0  ;;  %v302_v5 = vpop.f32.mrb[9].mxu1 }
 0x10e   :  { %v271_v6 = vpop.f32.mrb[10].mxu0  ;;  %v303_v7 = vpop.f32.mrb[10].mxu1 }
 0x10f   :  { %v319_v8 = vmax.f32 %v269_v2, 0.0  ;;  %v327_v9 = vmax.f32 %v301_v3, 0.0  ;;  %v272_v10 = vadd.f32 %v553_v31, %v271_v6  ;;  %v304_v11 = vadd.f32 %v553_v31, %v303_v7  ;;  %v273_v12 = vpop.f32.mrb[11].mxu0  ;;  %v305_v13 = vpop.f32.mrb[11].mxu1 }
 0x111   :  { %335 = vst [vmem:[%s622_s3 + $0x20] sm:$0xff] %v319_v8  ;;  %343 = vst [vmem:[%s622_s3 + $0x60] sm:$0xff] %v327_v9  ;;  %v320_v14 = vmax.f32 %v272_v10, 0.0  ;;  %v328_v15 = vmax.f32 %v304_v11, 0.0 }
 0x113   :  { %336 = vst [vmem:[%s622_s3 + $0x28] sm:$0xff] %v320_v14  ;;  %344 = vst [vmem:[%s622_s3 + $0x68] sm:$0xff] %v328_v15 }
 0x114   :  { %v276_v16 = vpop.f32.mrb[12].mxu0  ;;  %v308_v17 = vpop.f32.mrb[12].mxu1 }
 0x115   :  { %v277_v18 = vadd.f32 %v553_v31, %v276_v16  ;;  %v309_v19 = vadd.f32 %v553_v31, %v308_v17  ;;  %v278_v20 = vpop.f32.mrb[13].mxu0  ;;  %v310_v21 = vpop.f32.mrb[13].mxu1 }
 0x116   :  { %v279_v22 = vpop.f32.mrb[14].mxu0  ;;  %v311_v23 = vpop.f32.mrb[14].mxu1 }
 0x117   :  { %v321_v24 = vmax.f32 %v277_v18, 0.0  ;;  %v329_v25 = vmax.f32 %v309_v19, 0.0  ;;  %v280_v26 = vadd.f32 %v553_v31, %v279_v22  ;;  %v312_v27 = vadd.f32 %v553_v31, %v311_v23  ;;  %v281_v28 = vpop.f32.mrb[15].mxu0  ;;  %v313_v29 = vpop.f32.mrb[15].mxu1 }
 0x119   :  { %337 = vst [vmem:[%s622_s3 + $0x30] sm:$0xff] %v321_v24  ;;  %345 = vst [vmem:[%s622_s3 + $0x70] sm:$0xff] %v329_v25  ;;  %v322_v30 = vmax.f32 %v280_v26, 0.0  ;;  %v330_v32 = vmax.f32 %v312_v27, 0.0 }
 0x11b   :  { %338 = vst [vmem:[%s622_s3 + $0x38] sm:$0xff] %v322_v30  ;;  %346 = vst [vmem:[%s622_s3 + $0x78] sm:$0xff] %v330_v32 }

// kernel: resnet_basicblock_os8_forward.16
= control target key start
LH: loop header
LB: loop body
LE: loop exit
PB: predicated region body
PF: predicated region fallthrough
CT: control target
= control target key end

     0   :  { %vm372_vm0 = vcmask 523264   ;;  %s890_s1 = inlined_call_operand.vmem [shape: bf16[576,64], index: 1, kind: input, shape index: {}]   ;;  %s891_s0 = inlined_call_operand.vmem [shape: bf16[32,576], index: 0, kind: input, shape index: {}]   ;;  %s892_s2 = inlined_call_operand.vmem [shape: f32[1,64], index: 2, kind: input, shape index: {}]   ;;  %s893_s3 = inlined_call_operand.vmem [shape: f32[32,64], index: 3, kind: output, shape index: {}]  }
   0x1   :  { %v661_v0 = vld [vmem:[%s890_s1 + $0x40] sm:$0xff]   ;;  %v665_v4 = vld [vmem:[%s890_s1 + $0x48] sm:$0xff]   ;;  %v669_v8 = vld [vmem:[%s890_s1 + $0x50] sm:$0xff]  }
   0x2   :  { %v662_v1 = vld [vmem:[%s890_s1] sm:$0xff]   ;;  %587 = vmatprep.subr.bf16.mxu0 %v661_v0  ;;  %v666_v5 = vld [vmem:[%s890_s1 + $0x8] sm:$0xff]   ;;  %v670_v9 = vld [vmem:[%s890_s1 + $0x10] sm:$0xff]  }
   0x3   :  { %v663_v2 = vld [vmem:[%s890_s1 + $0xc0] sm:$0xff]   ;;  %588 = vmatpush3.bf16.msra.mxu0 %v662_v1  ;;  %v667_v6 = vld [vmem:[%s890_s1 + $0xc8] sm:$0xff]   ;;  %v671_v10 = vld [vmem:[%s890_s1 + $0xd0] sm:$0xff]  }
   0x4   :  { %v664_v3 = vld [vmem:[%s890_s1 + $0x80] sm:$0xff]   ;;  %615 = vmatprep.subr.bf16.mxu1 %v663_v2  ;;  %589 = vmatprep.subr.bf16.mxu0 %v665_v4  ;;  %v668_v7 = vld [vmem:[%s890_s1 + $0x88] sm:$0xff]   ;;  %v672_v11 = vld [vmem:[%s890_s1 + $0x90] sm:$0xff]  }
   0x5   :  { %616 = vmatpush3.bf16.msra.mxu1 %v664_v3  ;;  %v673_v12 = vld [vmem:[%s890_s1 + $0x58] sm:$0xff]   ;;  %v677_v16 = vld [vmem:[%s890_s1 + $0x60] sm:$0xff]   ;;  %v681_v20 = vld [vmem:[%s890_s1 + $0x68] sm:$0xff]  }
   0x6   :  { %617 = vmatprep.subr.bf16.mxu1 %v667_v6  ;;  %v674_v13 = vld [vmem:[%s890_s1 + $0x18] sm:$0xff]   ;;  %v678_v17 = vld [vmem:[%s890_s1 + $0x20] sm:$0xff]   ;;  %v682_v21 = vld [vmem:[%s890_s1 + $0x28] sm:$0xff]  }
   0x7   :  { %590 = vmatpush3.bf16.msra.mxu0 %v666_v5  ;;  %v675_v14 = vld [vmem:[%s890_s1 + $0xd8] sm:$0xff]   ;;  %v679_v18 = vld [vmem:[%s890_s1 + $0xe0] sm:$0xff]   ;;  %v683_v22 = vld [vmem:[%s890_s1 + $0xe8] sm:$0xff]  }
   0x8   :  { %591 = vmatprep.subr.bf16.mxu0 %v669_v8  ;;  %v676_v15 = vld [vmem:[%s890_s1 + $0x98] sm:$0xff]   ;;  %v680_v19 = vld [vmem:[%s890_s1 + $0xa0] sm:$0xff]   ;;  %v684_v23 = vld [vmem:[%s890_s1 + $0xa8] sm:$0xff]  }
   0x9   :  { %618 = vmatpush3.bf16.msra.mxu1 %v668_v7  ;;  %v685_v24 = vld [vmem:[%s890_s1 + $0x70] sm:$0xff]   ;;  %v689_v28 = vld [vmem:[%s890_s1 + $0x78] sm:$0xff]   ;;  %v696_v34 = vld [vmem:[%s890_s1 + $0x100] sm:$0xff]  }
   0xa   :  { %619 = vmatprep.subr.bf16.mxu1 %v671_v10  ;;  %v686_v25 = vld [vmem:[%s890_s1 + $0x30] sm:$0xff]   ;;  %v690_v29 = vld [vmem:[%s890_s1 + $0x38] sm:$0xff]   ;;  %v699_v36 = vld [vmem:[%s891_s0 + $0xc] ss:$20 sps:$4 sm:$0xff]  }
   0xb   :  { %592 = vmatpush3.bf16.msra.mxu0 %v670_v9  ;;  %v687_v26 = vld [vmem:[%s890_s1 + $0xf0] sm:$0xff]   ;;  %v691_v30 = vld [vmem:[%s890_s1 + $0xf8] sm:$0xff]   ;;  %v700_v37 = vld [vmem:[%s890_s1 + $0x108] sm:$0xff]   ;;  %460 = vmatprep.mubr.bf16.mxu1 %v699_v36 }
   0xc   :  { %593 = vmatprep.subr.bf16.mxu0 %v673_v12  ;;  %v688_v27 = vld [vmem:[%s890_s1 + $0xb0] sm:$0xff]   ;;  %v694_v32 = vld [vmem:[%s891_s0 + $0x4] ss:$20 sps:$4 sm:$0xff]   ;;  %v697_v35 = vld [vmem:[%s891_s0 + $0x8] ss:$20 sps:$4 sm:$0xff]  }
   0xd   :  { %620 = vmatpush3.bf16.msra.mxu1 %v672_v11  ;;  %v692_v31 = vld [vmem:[%s891_s0] ss:$20 sps:$4 sm:$0xff]   ;;  %v695_v33 = vld [vmem:[%s890_s1 + $0xb8] sm:$0xff]   ;;  %411 = vmatprep.mubr.bf16.mxu0 %v694_v32  ;;  %v707_v42 = vld [vmem:[%s891_s0 + $0x30] ss:$20 sps:$4 sm:$0xff]  }
   0xe   :  { %621 = vmatprep.subr.bf16.mxu1 %v675_v14  ;;  %v701_v38 = vld [vmem:[%s891_s0 + $0x2c] ss:$20 sps:$4 sm:$0xff]   ;;  %v703_v39 = vld [vmem:[%s891_s0 + $0x28] ss:$20 sps:$4 sm:$0xff]   ;;  %v704_v40 = vld [vmem:[%s890_s1 + $0x110] sm:$0xff]  }
   0xf   :  { %594 = vmatpush3.bf16.msra.mxu0 %v674_v13  ;;  %v705_v41 = vld [vmem:[%s891_s0 + $0x34] ss:$20 sps:$4 sm:$0xff]   ;;  %v708_v43 = vld [vmem:[%s890_s1 + $0x118] sm:$0xff]   ;;  %v709_v44 = vld [vmem:[%s891_s0 + $0x10] ss:$20 sps:$4 sm:$0xff]  }
  0x10   :  { %595 = vmatprep.subr.bf16.mxu0 %v677_v16  ;;  %v710_v45 = vld [vmem:[%s891_s0 + $0x38] ss:$20 sps:$4 sm:$0xff]   ;;  %v538_v47 = vld [vmem:[%s892_s2] ss:$0 sm:$0xff] }
  0x11   :  { %622 = vmatpush3.bf16.msra.mxu1 %v676_v15 }
  0x12   :  { %623 = vmatprep.subr.bf16.mxu1 %v679_v18 }
  0x13   :  { %596 = vmatpush3.bf16.msra.mxu0 %v678_v17 }
  0x14   :  { %597 = vmatprep.subr.bf16.mxu0 %v681_v20 }
  0x15   :  { %624 = vmatpush3.bf16.msra.mxu1 %v680_v19 }
  0x16   :  { %625 = vmatprep.subr.bf16.mxu1 %v683_v22 }
  0x17   :  { %598 = vmatpush3.bf16.msra.mxu0 %v682_v21 }
  0x18   :  { %599 = vmatprep.subr.bf16.mxu0 %v685_v24 }
  0x19   :  { %626 = vmatpush3.bf16.msra.mxu1 %v684_v23 }
  0x1a   :  { %627 = vmatprep.subr.bf16.mxu1 %v687_v26 }
  0x1b   :  { %600 = vmatpush3.bf16.msra.mxu0 %v686_v25 }
  0x1c   :  { %601 = vmatprep.subr.bf16.mxu0 %v689_v28 }
  0x1d   :  { %628 = vmatpush3.bf16.msra.mxu1 %v688_v27 }
  0x1e   :  { %629 = vmatprep.subr.bf16.mxu1 %v691_v30 }
  0x1f   :  { %602 = vmatpush3.bf16.msra.mxu0 %v690_v29 }
  0x20   :  { %649 = vmatprep.subr.bf16.mxu0 %v696_v34 }
  0x21   :  { %630 = vmatpush3.bf16.msra.mxu1 %v695_v33 }
  0x22   :  { %412 = vmatmul.mubr.bf16.vlgmr.msra.gmra.mrb[0].mxu0 %v692_v31 }
  0x23   :  { %650 = vmatpush3.bf16.msra.mxu0 %v696_v34  ;;  %419 = vmatprep.mubr.bf16.mxu0 %v701_v38 }
  0x24   :  { %461 = vmatmul.mubr.bf16.vlgmr.msra.gmra.mrb[0].mxu1 %v697_v35  ;;  %651 = vmatprep.subr.bf16.mxu0 %v700_v37 }
  0x25   :  { %468 = vmatprep.mubr.bf16.mxu1 %v705_v41 }
  0x27   :  { %652 = vmatpush3.bf16.msra.mxu0 %v700_v37 }
  0x28   :  { %653 = vmatprep.subr.bf16.mxu0 %v704_v40 }
  0x2a   :  { %420 = vmatmul.mubr.bf16.gmra.mrb[4].mxu0 %v703_v39 }
  0x2b   :  { %657 = vmatprep.mubr.msk.bf16.mxu0 %vm372_vm0, %v709_v44  ;;  %654 = vmatpush3.bf16.msra.mxu0 %v704_v40 }
  0x2c   :  { %469 = vmatmul.mubr.bf16.gmra.mrb[4].mxu1 %v707_v42  ;;  %655 = vmatprep.subr.bf16.mxu0 %v708_v43 }
  0x2f   :  { %656 = vmatpush3.bf16.msra.mxu0 %v708_v43 }
  0x32   :  { %658 = vmatmul.mubr.msk.bf16.vlgmr.msra.gmra.mrb[8].mxu0 %vm372_vm0, %v710_v45 }
  0xf5   :  { %v603_v46 = vpop.f32.mrb[0].mxu0 }
  0xf6   :  { %v604_v48 = vpop.f32.mrb[1].mxu0 }
  0xf7   :  { %v605_v49 = vadd.f32 %v604_v48, %v603_v46  ;;  %v606_v50 = vpop.f32.mrb[2].mxu0  ;;  %v631_v51 = vpop.f32.mrb[0].mxu1 }
  0xf8   :  { %v607_v52 = vpop.f32.mrb[3].mxu0  ;;  %v632_v55 = vpop.f32.mrb[1].mxu1 }
  0xf9   :  { %v414_v53 = vadd.f32 %v605_v49, %v538_v47  ;;  %v608_v54 = vadd.f32 %v607_v52, %v606_v50  ;;  %v633_v56 = vadd.f32 %v632_v55, %v631_v51  ;;  %v634_v57 = vpop.f32.mrb[2].mxu1 }
  0xfa   :  { %v635_v59 = vpop.f32.mrb[3].mxu1 }
  0xfb   :  { %v417_v58 = vadd.f32 %v608_v54, %v538_v47  ;;  %v636_v60 = vadd.f32 %v635_v59, %v634_v57  ;;  %v463_v61 = vadd.f32 %v633_v56, %v414_v53 }
  0xfd   :  { %v609_v62 = vpop.f32.mrb[4].mxu0  ;;  %v466_v0 = vadd.f32 %v636_v60, %v417_v58 }
  0xfe   :  { %v610_v63 = vpop.f32.mrb[5].mxu0 }
  0xff   :  { %v611_v1 = vadd.f32 %v610_v63, %v609_v62  ;;  %v612_v2 = vpop.f32.mrb[6].mxu0  ;;  %v637_v3 = vpop.f32.mrb[4].mxu1 }
 0x100   :  { %v613_v4 = vpop.f32.mrb[7].mxu0  ;;  %v638_v7 = vpop.f32.mrb[5].mxu1 }
 0x101   :  { %v422_v5 = vadd.f32 %v611_v1, %v538_v47  ;;  %v614_v6 = vadd.f32 %v613_v4, %v612_v2  ;;  %v639_v8 = vadd.f32 %v638_v7, %v637_v3  ;;  %v640_v9 = vpop.f32.mrb[6].mxu1 }
 0x102   :  { %v641_v11 = vpop.f32.mrb[7].mxu1 }
 0x103   :  { %v425_v10 = vadd.f32 %v614_v6, %v538_v47  ;;  %v642_v12 = vadd.f32 %v641_v11, %v640_v9  ;;  %v471_v13 = vadd.f32 %v639_v8, %v422_v5 }
 0x105   :  { %v659_v14 = vpop.f32.mrb[8].mxu0  ;;  %v474_v15 = vadd.f32 %v642_v12, %v425_v10 }
 0x106   :  { %v520_v16 = vadd.f32 %v659_v14, %v471_v13  ;;  %v511_v17 = vpop.f32.mrb[9].mxu0 }
 0x107   :  { %v512_v18 = vadd.f32 %v511_v17, %v463_v61  ;;  %v660_v19 = vpop.f32.mrb[10].mxu0 }
 0x108   :  { %v528_v20 = vmax.f32 %v520_v16, 0.0  ;;  %v523_v21 = vadd.f32 %v660_v19, %v474_v15  ;;  %v514_v22 = vpop.f32.mrb[11].mxu0 }
 0x109   :  { %v526_v23 = vmax.f32 %v512_v18, 0.0  ;;  %v515_v24 = vadd.f32 %v514_v22, %v466_v0 }
 0x10a   :  { %532 = vst.msk [vmem:[%s893_s3 + $0x10] sm:$0xff] %vm372_vm0, %v528_v20  ;;  %v529_v25 = vmax.f32 %v523_v21, 0.0 }
 0x10b   :  { %530 = vst.msk [vmem:[%s893_s3] sm:$0xff] %vm372_vm0, %v526_v23  ;;  %v527_v26 = vmax.f32 %v515_v24, 0.0 }
 0x10c   :  { %533 = vst.msk [vmem:[%s893_s3 + $0x18] sm:$0xff] %vm372_vm0, %v529_v25 }
 0x10d   :  { %531 = vst.msk [vmem:[%s893_s3 + $0x8] sm:$0xff] %vm372_vm0, %v527_v26 }

// kernel: resnet_basicblock_os8_forward.17
= control target key start
LH: loop header
LB: loop body
LE: loop exit
PB: predicated region body
PF: predicated region fallthrough
CT: control target
= control target key end

     0   :  { %vm375_vm0 = vcmask 523264   ;;  %s918_s1 = inlined_call_operand.vmem [shape: bf16[576,64], index: 1, kind: input, shape index: {}]   ;;  %s919_s0 = inlined_call_operand.vmem [shape: bf16[32,576], index: 0, kind: input, shape index: {}]   ;;  %s920_s2 = inlined_call_operand.vmem [shape: f32[1,64], index: 2, kind: input, shape index: {}]   ;;  %s921_s3 = inlined_call_operand.vmem [shape: f32[32,64], index: 3, kind: input, shape index: {}]   ;;  %s922_s4 = inlined_call_operand.vmem [shape: f32[32,64], index: 4, kind: output, shape index: {}]  }
   0x1   :  { %v672_v0 = vld [vmem:[%s918_s1 + $0x40] sm:$0xff]   ;;  %v676_v4 = vld [vmem:[%s918_s1 + $0x48] sm:$0xff]   ;;  %v680_v8 = vld [vmem:[%s918_s1 + $0x50] sm:$0xff]  }
   0x2   :  { %v673_v1 = vld [vmem:[%s918_s1] sm:$0xff]   ;;  %598 = vmatprep.subr.bf16.mxu0 %v672_v0  ;;  %v677_v5 = vld [vmem:[%s918_s1 + $0x8] sm:$0xff]   ;;  %v681_v9 = vld [vmem:[%s918_s1 + $0x10] sm:$0xff]  }
   0x3   :  { %v674_v2 = vld [vmem:[%s918_s1 + $0xc0] sm:$0xff]   ;;  %599 = vmatpush3.bf16.msra.mxu0 %v673_v1  ;;  %v678_v6 = vld [vmem:[%s918_s1 + $0xc8] sm:$0xff]   ;;  %v682_v10 = vld [vmem:[%s918_s1 + $0xd0] sm:$0xff]  }
   0x4   :  { %v675_v3 = vld [vmem:[%s918_s1 + $0x80] sm:$0xff]   ;;  %626 = vmatprep.subr.bf16.mxu1 %v674_v2  ;;  %600 = vmatprep.subr.bf16.mxu0 %v676_v4  ;;  %v679_v7 = vld [vmem:[%s918_s1 + $0x88] sm:$0xff]   ;;  %v683_v11 = vld [vmem:[%s918_s1 + $0x90] sm:$0xff]  }
   0x5   :  { %627 = vmatpush3.bf16.msra.mxu1 %v675_v3  ;;  %v684_v12 = vld [vmem:[%s918_s1 + $0x58] sm:$0xff]   ;;  %v688_v16 = vld [vmem:[%s918_s1 + $0x60] sm:$0xff]   ;;  %v692_v20 = vld [vmem:[%s918_s1 + $0x68] sm:$0xff]  }
   0x6   :  { %628 = vmatprep.subr.bf16.mxu1 %v678_v6  ;;  %v685_v13 = vld [vmem:[%s918_s1 + $0x18] sm:$0xff]   ;;  %v689_v17 = vld [vmem:[%s918_s1 + $0x20] sm:$0xff]   ;;  %v693_v21 = vld [vmem:[%s918_s1 + $0x28] sm:$0xff]  }
   0x7   :  { %601 = vmatpush3.bf16.msra.mxu0 %v677_v5  ;;  %v686_v14 = vld [vmem:[%s918_s1 + $0xd8] sm:$0xff]   ;;  %v690_v18 = vld [vmem:[%s918_s1 + $0xe0] sm:$0xff]   ;;  %v694_v22 = vld [vmem:[%s918_s1 + $0xe8] sm:$0xff]  }
   0x8   :  { %602 = vmatprep.subr.bf16.mxu0 %v680_v8  ;;  %v687_v15 = vld [vmem:[%s918_s1 + $0x98] sm:$0xff]   ;;  %v691_v19 = vld [vmem:[%s918_s1 + $0xa0] sm:$0xff]   ;;  %v695_v23 = vld [vmem:[%s918_s1 + $0xa8] sm:$0xff]  }
   0x9   :  { %629 = vmatpush3.bf16.msra.mxu1 %v679_v7  ;;  %v696_v24 = vld [vmem:[%s918_s1 + $0x70] sm:$0xff]   ;;  %v700_v28 = vld [vmem:[%s918_s1 + $0x78] sm:$0xff]   ;;  %v707_v34 = vld [vmem:[%s918_s1 + $0x100] sm:$0xff]  }
   0xa   :  { %630 = vmatprep.subr.bf16.mxu1 %v682_v10  ;;  %v697_v25 = vld [vmem:[%s918_s1 + $0x30] sm:$0xff]   ;;  %v701_v29 = vld [vmem:[%s918_s1 + $0x38] sm:$0xff]   ;;  %v710_v36 = vld [vmem:[%s919_s0 + $0xc] ss:$20 sps:$4 sm:$0xff]  }
   0xb   :  { %603 = vmatpush3.bf16.msra.mxu0 %v681_v9  ;;  %v698_v26 = vld [vmem:[%s918_s1 + $0xf0] sm:$0xff]   ;;  %v702_v30 = vld [vmem:[%s918_s1 + $0xf8] sm:$0xff]   ;;  %v711_v37 = vld [vmem:[%s918_s1 + $0x108] sm:$0xff]   ;;  %463 = vmatprep.mubr.bf16.mxu1 %v710_v36 }
   0xc   :  { %604 = vmatprep.subr.bf16.mxu0 %v684_v12  ;;  %v699_v27 = vld [vmem:[%s918_s1 + $0xb0] sm:$0xff]   ;;  %v705_v32 = vld [vmem:[%s919_s0 + $0x4] ss:$20 sps:$4 sm:$0xff]   ;;  %v708_v35 = vld [vmem:[%s919_s0 + $0x8] ss:$20 sps:$4 sm:$0xff]  }
   0xd   :  { %631 = vmatpush3.bf16.msra.mxu1 %v683_v11  ;;  %v703_v31 = vld [vmem:[%s919_s0] ss:$20 sps:$4 sm:$0xff]   ;;  %v706_v33 = vld [vmem:[%s918_s1 + $0xb8] sm:$0xff]   ;;  %414 = vmatprep.mubr.bf16.mxu0 %v705_v32  ;;  %v718_v42 = vld [vmem:[%s919_s0 + $0x30] ss:$20 sps:$4 sm:$0xff]  }
   0xe   :  { %632 = vmatprep.subr.bf16.mxu1 %v686_v14  ;;  %v712_v38 = vld [vmem:[%s919_s0 + $0x2c] ss:$20 sps:$4 sm:$0xff]   ;;  %v714_v39 = vld [vmem:[%s919_s0 + $0x28] ss:$20 sps:$4 sm:$0xff]   ;;  %v715_v40 = vld [vmem:[%s918_s1 + $0x110] sm:$0xff]  }
   0xf   :  { %605 = vmatpush3.bf16.msra.mxu0 %v685_v13  ;;  %v716_v41 = vld [vmem:[%s919_s0 + $0x34] ss:$20 sps:$4 sm:$0xff]   ;;  %v719_v43 = vld [vmem:[%s918_s1 + $0x118] sm:$0xff]   ;;  %v720_v44 = vld [vmem:[%s919_s0 + $0x10] ss:$20 sps:$4 sm:$0xff]  }
  0x10   :  { %606 = vmatprep.subr.bf16.mxu0 %v688_v16  ;;  %v721_v45 = vld [vmem:[%s919_s0 + $0x38] ss:$20 sps:$4 sm:$0xff]   ;;  %v549_v47 = vld [vmem:[%s920_s2] ss:$0 sm:$0xff] }
  0x11   :  { %633 = vmatpush3.bf16.msra.mxu1 %v687_v15  ;;  %v531_v15 = vld [vmem:[%s921_s3 + $0x10] sm:$0xff] }
  0x12   :  { %634 = vmatprep.subr.bf16.mxu1 %v690_v18 }
  0x13   :  { %607 = vmatpush3.bf16.msra.mxu0 %v689_v17 }
  0x14   :  { %608 = vmatprep.subr.bf16.mxu0 %v692_v20 }
  0x15   :  { %635 = vmatpush3.bf16.msra.mxu1 %v691_v19  ;;  %v529_v19 = vld [vmem:[%s921_s3] sm:$0xff] }
  0x16   :  { %636 = vmatprep.subr.bf16.mxu1 %v694_v22  ;;  %v532_v22 = vld [vmem:[%s921_s3 + $0x18] sm:$0xff] }
  0x17   :  { %609 = vmatpush3.bf16.msra.mxu0 %v693_v21 }
  0x18   :  { %610 = vmatprep.subr.bf16.mxu0 %v696_v24 }
  0x19   :  { %637 = vmatpush3.bf16.msra.mxu1 %v695_v23 }
  0x1a   :  { %638 = vmatprep.subr.bf16.mxu1 %v698_v26  ;;  %v530_v26 = vld [vmem:[%s921_s3 + $0x8] sm:$0xff] }
  0x1b   :  { %611 = vmatpush3.bf16.msra.mxu0 %v697_v25 }
  0x1c   :  { %612 = vmatprep.subr.bf16.mxu0 %v700_v28 }
  0x1d   :  { %639 = vmatpush3.bf16.msra.mxu1 %v699_v27 }
  0x1e   :  { %640 = vmatprep.subr.bf16.mxu1 %v702_v30 }
  0x1f   :  { %613 = vmatpush3.bf16.msra.mxu0 %v701_v29 }
  0x20   :  { %660 = vmatprep.subr.bf16.mxu0 %v707_v34 }
  0x21   :  { %641 = vmatpush3.bf16.msra.mxu1 %v706_v33 }
  0x22   :  { %415 = vmatmul.mubr.bf16.vlgmr.msra.gmra.mrb[0].mxu0 %v703_v31 }
  0x23   :  { %661 = vmatpush3.bf16.msra.mxu0 %v707_v34  ;;  %422 = vmatprep.mubr.bf16.mxu0 %v712_v38 }
  0x24   :  { %464 = vmatmul.mubr.bf16.vlgmr.msra.gmra.mrb[0].mxu1 %v708_v35  ;;  %662 = vmatprep.subr.bf16.mxu0 %v711_v37 }
  0x25   :  { %471 = vmatprep.mubr.bf16.mxu1 %v716_v41 }
  0x27   :  { %663 = vmatpush3.bf16.msra.mxu0 %v711_v37 }
  0x28   :  { %664 = vmatprep.subr.bf16.mxu0 %v715_v40 }
  0x2a   :  { %423 = vmatmul.mubr.bf16.gmra.mrb[4].mxu0 %v714_v39 }
  0x2b   :  { %668 = vmatprep.mubr.msk.bf16.mxu0 %vm375_vm0, %v720_v44  ;;  %665 = vmatpush3.bf16.msra.mxu0 %v715_v40 }
  0x2c   :  { %472 = vmatmul.mubr.bf16.gmra.mrb[4].mxu1 %v718_v42  ;;  %666 = vmatprep.subr.bf16.mxu0 %v719_v43 }
  0x2f   :  { %667 = vmatpush3.bf16.msra.mxu0 %v719_v43 }
  0x32   :  { %669 = vmatmul.mubr.msk.bf16.vlgmr.msra.gmra.mrb[8].mxu0 %vm375_vm0, %v721_v45 }
  0xf5   :  { %v614_v46 = vpop.f32.mrb[0].mxu0 }
  0xf6   :  { %v615_v48 = vpop.f32.mrb[1].mxu0 }
  0xf7   :  { %v616_v49 = vadd.f32 %v615_v48, %v614_v46  ;;  %v617_v50 = vpop.f32.mrb[2].mxu0  ;;  %v642_v51 = vpop.f32.mrb[0].mxu1 }
  0xf8   :  { %v618_v52 = vpop.f32.mrb[3].mxu0  ;;  %v643_v55 = vpop.f32.mrb[1].mxu1 }
  0xf9   :  { %v417_v53 = vadd.f32 %v616_v49, %v549_v47  ;;  %v619_v54 = vadd.f32 %v618_v52, %v617_v50  ;;  %v644_v56 = vadd.f32 %v643_v55, %v642_v51  ;;  %v645_v57 = vpop.f32.mrb[2].mxu1 }
  0xfa   :  { %v646_v59 = vpop.f32.mrb[3].mxu1 }
  0xfb   :  { %v420_v58 = vadd.f32 %v619_v54, %v549_v47  ;;  %v647_v60 = vadd.f32 %v646_v59, %v645_v57  ;;  %v466_v61 = vadd.f32 %v644_v56, %v417_v53 }
  0xfd   :  { %v620_v62 = vpop.f32.mrb[4].mxu0  ;;  %v469_v0 = vadd.f32 %v647_v60, %v420_v58 }
  0xfe   :  { %v621_v63 = vpop.f32.mrb[5].mxu0 }
  0xff   :  { %v622_v1 = vadd.f32 %v621_v63, %v620_v62  ;;  %v623_v2 = vpop.f32.mrb[6].mxu0  ;;  %v648_v3 = vpop.f32.mrb[4].mxu1 }
 0x100   :  { %v624_v4 = vpop.f32.mrb[7].mxu0  ;;  %v649_v7 = vpop.f32.mrb[5].mxu1 }
 0x101   :  { %v425_v5 = vadd.f32 %v622_v1, %v549_v47  ;;  %v625_v6 = vadd.f32 %v624_v4, %v623_v2  ;;  %v650_v8 = vadd.f32 %v649_v7, %v648_v3  ;;  %v651_v9 = vpop.f32.mrb[6].mxu1 }
 0x102   :  { %v652_v11 = vpop.f32.mrb[7].mxu1 }
 0x103   :  { %v428_v10 = vadd.f32 %v625_v6, %v549_v47  ;;  %v653_v12 = vadd.f32 %v652_v11, %v651_v9  ;;  %v474_v13 = vadd.f32 %v650_v8, %v425_v5 }
 0x105   :  { %v670_v14 = vpop.f32.mrb[8].mxu0  ;;  %v477_v16 = vadd.f32 %v653_v12, %v428_v10 }
 0x106   :  { %v523_v17 = vadd.f32 %v670_v14, %v474_v13  ;;  %v514_v18 = vpop.f32.mrb[9].mxu0 }
 0x107   :  { %v515_v20 = vadd.f32 %v514_v18, %v466_v61  ;;  %v671_v21 = vpop.f32.mrb[10].mxu0 }
 0x108   :  { %v535_v23 = vadd.f32 %v531_v15, %v523_v17  ;;  %v526_v24 = vadd.f32 %v671_v21, %v477_v16  ;;  %v517_v25 = vpop.f32.mrb[11].mxu0 }
 0x109   :  { %v533_v27 = vadd.f32 %v529_v19, %v515_v20  ;;  %v518_v28 = vadd.f32 %v517_v25, %v469_v0 }
 0x10a   :  { %v539_v29 = vmax.f32 %v535_v23, 0.0  ;;  %v536_v30 = vadd.f32 %v532_v22, %v526_v24 }
 0x10b   :  { %v537_v31 = vmax.f32 %v533_v27, 0.0  ;;  %v534_v32 = vadd.f32 %v530_v26, %v518_v28 }
 0x10c   :  { %543 = vst.msk [vmem:[%s922_s4 + $0x10] sm:$0xff] %vm375_vm0, %v539_v29  ;;  %v540_v33 = vmax.f32 %v536_v30, 0.0 }
 0x10d   :  { %541 = vst.msk [vmem:[%s922_s4] sm:$0xff] %vm375_vm0, %v537_v31  ;;  %v538_v34 = vmax.f32 %v534_v32, 0.0 }
 0x10e   :  { %544 = vst.msk [vmem:[%s922_s4 + $0x18] sm:$0xff] %vm375_vm0, %v540_v33 }
 0x10f   :  { %542 = vst.msk [vmem:[%s922_s4 + $0x8] sm:$0xff] %vm375_vm0, %v538_v34 }

// kernel: resnet_basicblock_os8_forward.20
= control target key start
LH: loop header
LB: loop body
LE: loop exit
PB: predicated region body
PF: predicated region fallthrough
CT: control target
= control target key end

     0   :  { %v607_v35 = vmov 0.0   ;;  %vm608_vm0 = vmmov 0   ;;  %vm330_vm1 = vcmask 523264   ;;  %s752_s1 = inlined_call_operand.vmem [shape: bf16[576,128], index: 1, kind: input, shape index: {}]   ;;  %s753_s0 = inlined_call_operand.vmem [shape: bf16[8,576], index: 0, kind: input, shape index: {}]   ;;  %s754_s2 = inlined_call_operand.vmem [shape: f32[1,128], index: 2, kind: input, shape index: {}]   ;;  %s755_s3 = inlined_call_operand.vmem [shape: f32[8,128], index: 3, kind: output, shape index: {}]  }
   0x1   :  { %v566_v0 = vld [vmem:[%s752_s1 + $0x40] sm:$0xff]   ;;  %v570_v4 = vld [vmem:[%s752_s1 + $0x48] sm:$0xff]   ;;  %v574_v8 = vld [vmem:[%s752_s1 + $0x50] sm:$0xff]  }
   0x2   :  { %v567_v1 = vld [vmem:[%s752_s1] sm:$0xff]   ;;  %503 = vmatprep.subr.bf16.mxu0 %v566_v0  ;;  %v571_v5 = vld [vmem:[%s752_s1 + $0x8] sm:$0xff]   ;;  %v575_v9 = vld [vmem:[%s752_s1 + $0x10] sm:$0xff]  }
   0x3   :  { %v568_v2 = vld [vmem:[%s752_s1 + $0xc0] sm:$0xff]   ;;  %504 = vmatpush3.bf16.msra.mxu0 %v567_v1  ;;  %v572_v6 = vld [vmem:[%s752_s1 + $0xc8] sm:$0xff]   ;;  %v576_v10 = vld [vmem:[%s752_s1 + $0xd0] sm:$0xff]  }
   0x4   :  { %v569_v3 = vld [vmem:[%s752_s1 + $0x80] sm:$0xff]   ;;  %525 = vmatprep.subr.bf16.mxu1 %v568_v2  ;;  %505 = vmatprep.subr.bf16.mxu0 %v570_v4  ;;  %v573_v7 = vld [vmem:[%s752_s1 + $0x88] sm:$0xff]   ;;  %v577_v11 = vld [vmem:[%s752_s1 + $0x90] sm:$0xff]  }
   0x5   :  { %526 = vmatpush3.bf16.msra.mxu1 %v569_v3  ;;  %v578_v12 = vld [vmem:[%s752_s1 + $0x58] sm:$0xff]   ;;  %v582_v16 = vld [vmem:[%s752_s1 + $0x60] sm:$0xff]   ;;  %v586_v20 = vld [vmem:[%s752_s1 + $0x68] sm:$0xff]  }
   0x6   :  { %527 = vmatprep.subr.bf16.mxu1 %v572_v6  ;;  %v579_v13 = vld [vmem:[%s752_s1 + $0x18] sm:$0xff]   ;;  %v583_v17 = vld [vmem:[%s752_s1 + $0x20] sm:$0xff]   ;;  %v587_v21 = vld [vmem:[%s752_s1 + $0x28] sm:$0xff]  }
   0x7   :  { %506 = vmatpush3.bf16.msra.mxu0 %v571_v5  ;;  %v580_v14 = vld [vmem:[%s752_s1 + $0xd8] sm:$0xff]   ;;  %v584_v18 = vld [vmem:[%s752_s1 + $0xe0] sm:$0xff]   ;;  %v588_v22 = vld [vmem:[%s752_s1 + $0xe8] sm:$0xff]  }
   0x8   :  { %507 = vmatprep.subr.bf16.mxu0 %v574_v8  ;;  %v581_v15 = vld [vmem:[%s752_s1 + $0x98] sm:$0xff]   ;;  %v585_v19 = vld [vmem:[%s752_s1 + $0xa0] sm:$0xff]   ;;  %v589_v23 = vld [vmem:[%s752_s1 + $0xa8] sm:$0xff]  }
   0x9   :  { %528 = vmatpush3.bf16.msra.mxu1 %v573_v7  ;;  %v590_v24 = vld [vmem:[%s752_s1 + $0x70] sm:$0xff]   ;;  %v594_v28 = vld [vmem:[%s752_s1 + $0x78] sm:$0xff]   ;;  %v15_v31 = vld [vmem:[%s753_s0] sm:$0xff] }
   0xa   :  { %529 = vmatprep.subr.bf16.mxu1 %v576_v10  ;;  %v591_v25 = vld [vmem:[%s752_s1 + $0x30] sm:$0xff]   ;;  %v595_v29 = vld [vmem:[%s752_s1 + $0x38] sm:$0xff]   ;;  %v461_v32 = vcombine.low %v15_v31, %v15_v31  ;;  %v462_v33 = vcombine.high %v15_v31, %v15_v31  ;;  %v16_v36 = vld [vmem:[%s753_s0 + $0x8] sm:$0xff] }
   0xb   :  { %508 = vmatpush3.bf16.msra.mxu0 %v575_v9  ;;  %v592_v26 = vld [vmem:[%s752_s1 + $0xf0] sm:$0xff]   ;;  %v596_v30 = vld [vmem:[%s752_s1 + $0xf8] sm:$0xff]   ;;  %v463_v37 = vcombine.low %v16_v36, %v16_v36  ;;  %v464_v38 = vcombine.high %v16_v36, %v16_v36  ;;  %v603_v39 = vld [vmem:[%s752_s1 + $0x100] sm:$0xff]  }
   0xc   :  { %509 = vmatprep.subr.bf16.mxu0 %v578_v12  ;;  %v593_v27 = vld [vmem:[%s752_s1 + $0xb0] sm:$0xff]   ;;  %v600_v34 = vld [vmem:[%s752_s1 + $0xb8] sm:$0xff]   ;;  %366 = vmatprep.mubr.bf16.mxu0 %v462_v33  ;;  %v604_v40 = vld [vmem:[%s752_s1 + $0x108] sm:$0xff]  }
   0xd   :  { %530 = vmatpush3.bf16.msra.mxu1 %v577_v11  ;;  %406 = vmatprep.mubr.bf16.mxu1 %v464_v38  ;;  %v605_v41 = vld [vmem:[%s752_s1 + $0x110] sm:$0xff]   ;;  %v606_v42 = vld [vmem:[%s752_s1 + $0x118] sm:$0xff]   ;;  %v460_v45 = vld [vmem:[%s754_s2] ss:$0 sm:$0xff] }
   0xe   :  { %531 = vmatprep.subr.bf16.mxu1 %v580_v14  ;;  %v599_v43 = vld [vmem:[%s753_s0 + $0x10] ss:$0 sps:$4 sm:$0xff]  }
   0xf   :  { %510 = vmatpush3.bf16.msra.mxu0 %v579_v13 }
  0x10   :  { %511 = vmatprep.subr.bf16.mxu0 %v582_v16 }
  0x11   :  { %532 = vmatpush3.bf16.msra.mxu1 %v581_v15 }
  0x12   :  { %533 = vmatprep.subr.bf16.mxu1 %v584_v18 }
  0x13   :  { %512 = vmatpush3.bf16.msra.mxu0 %v583_v17 }
  0x14   :  { %513 = vmatprep.subr.bf16.mxu0 %v586_v20 }
  0x15   :  { %534 = vmatpush3.bf16.msra.mxu1 %v585_v19 }
  0x16   :  { %535 = vmatprep.subr.bf16.mxu1 %v588_v22 }
  0x17   :  { %514 = vmatpush3.bf16.msra.mxu0 %v587_v21 }
  0x18   :  { %515 = vmatprep.subr.bf16.mxu0 %v590_v24 }
  0x19   :  { %536 = vmatpush3.bf16.msra.mxu1 %v589_v23 }
  0x1a   :  { %537 = vmatprep.subr.bf16.mxu1 %v592_v26 }
  0x1b   :  { %516 = vmatpush3.bf16.msra.mxu0 %v591_v25 }
  0x1c   :  { %517 = vmatprep.subr.bf16.mxu0 %v594_v28 }
  0x1d   :  { %538 = vmatpush3.bf16.msra.mxu1 %v593_v27 }
  0x1e   :  { %539 = vmatprep.subr.bf16.mxu1 %v596_v30 }
  0x1f   :  { %518 = vmatpush3.bf16.msra.mxu0 %v595_v29 }
  0x20   :  { %552 = vmatprep.subr.bf16.mxu0 %v607_v35 }
  0x21   :  { %540 = vmatpush3.bf16.msra.mxu1 %v600_v34 }
  0x22   :  { %367 = vmatmul.mubr.bf16.vlgmr.msra.gmra.mrb[0].mxu0 %v461_v32 }
  0x23   :  { %553 = vmatpush3.bf16.msra.mxu0 %v603_v39  ;;  %560 = vmatprep.mubr.msk.bf16.mxu0 %vm608_vm0, %v607_v35 }
  0x24   :  { %407 = vmatmul.mubr.bf16.vlgmr.msra.gmra.mrb[0].mxu1 %v463_v37  ;;  %554 = vmatprep.subr.bf16.mxu0 %v607_v35 }
  0x27   :  { %555 = vmatpush3.bf16.msra.mxu0 %v604_v40 }
  0x28   :  { %556 = vmatprep.subr.bf16.mxu0 %v607_v35 }
  0x2b   :  { %557 = vmatpush3.bf16.msra.mxu0 %v605_v41 }
  0x2c   :  { %558 = vmatprep.subr.bf16.mxu0 %v607_v35 }
  0x2f   :  { %559 = vmatpush3.bf16.msra.mxu0 %v606_v42 }
  0x32   :  { %561 = vmatmul.mubr.msk.bf16.vlgmr.msra.gmra.mrb[4].mxu0 %vm330_vm1, %v599_v43 }
  0xf5   :  { %v519_v44 = vpop.f32.mrb[0].mxu0 }
  0xf6   :  { %v520_v46 = vpop.f32.mrb[1].mxu0 }
  0xf7   :  { %v521_v47 = vadd.f32 %v520_v46, %v519_v44  ;;  %v522_v48 = vpop.f32.mrb[2].mxu0  ;;  %v541_v49 = vpop.f32.mrb[0].mxu1 }
  0xf8   :  { %v523_v50 = vpop.f32.mrb[3].mxu0  ;;  %v542_v51 = vpop.f32.mrb[1].mxu1 }
  0xf9   :  { %v369_v52 = vadd.f32 %v521_v47, %v460_v45  ;;  %v543_v53 = vadd.f32 %v542_v51, %v541_v49  ;;  %v544_v54 = vpop.f32.mrb[2].mxu1 }
  0xfa   :  { %v545_v55 = vpop.f32.mrb[3].mxu1 }
  0xfb   :  { %v409_v56 = vadd.f32 %v543_v53, %v369_v52 }
 0x105   :  { %v448_v57 = vpop.f32.mrb[4].mxu0 }
 0x106   :  { %v449_v58 = vadd.f32 %v448_v57, %v409_v56  ;;  %v562_v59 = vpop.f32.mrb[5].mxu0 }
 0x107   :  { %v451_v60 = vpop.f32.mrb[6].mxu0 }
 0x108   :  { %v454_v61 = vmax.f32 %v449_v58, 0.0  ;;  %v563_v62 = vpop.f32.mrb[7].mxu0 }
 0x10a   :  { %455 = vst [vmem:[%s755_s3] sm:$0xff] %v454_v61 }

// kernel: resnet_basicblock_os8_forward.21
= control target key start
LH: loop header
LB: loop body
LE: loop exit
PB: predicated region body
PF: predicated region fallthrough
CT: control target
= control target key end

     0   :  { %v133_v0 = vmov 0.0   ;;  %vm134_vm0 = vmmov 0   ;;  %vm55_vm1 = vcmask 523264   ;;  %s176_s1 = inlined_call_operand.vmem [shape: bf16[64,128], index: 1, kind: input, shape index: {}]   ;;  %s177_s0 = inlined_call_operand.vmem [shape: bf16[8,64], index: 0, kind: input, shape index: {}]   ;;  %s178_s2 = inlined_call_operand.vmem [shape: f32[1,128], index: 2, kind: input, shape index: {}]   ;;  %s179_s3 = inlined_call_operand.vmem [shape: f32[8,128], index: 3, kind: output, shape index: {}]  }
   0x1   :  { %115 = vmatprep.subr.bf16.mxu0 %v133_v0  ;;  %v129_v1 = vld [vmem:[%s176_s1] sm:$0xff]   ;;  %123 = vmatprep.mubr.msk.bf16.mxu0 %vm134_vm0, %v133_v0  ;;  %v130_v2 = vld [vmem:[%s176_s1 + $0x8] sm:$0xff]   ;;  %v131_v3 = vld [vmem:[%s176_s1 + $0x10] sm:$0xff]  }
   0x2   :  { %116 = vmatpush3.bf16.msra.mxu0 %v129_v1  ;;  %v132_v4 = vld [vmem:[%s176_s1 + $0x18] sm:$0xff]   ;;  %v15_v5 = vld [vmem:[%s177_s0] sm:$0xf] }
   0x3   :  { %117 = vmatprep.subr.bf16.mxu0 %v133_v0  ;;  %v104_v6 = vld [vmem:[%s178_s2] ss:$0 sm:$0xff] }
   0x6   :  { %118 = vmatpush3.bf16.msra.mxu0 %v130_v2 }
   0x7   :  { %119 = vmatprep.subr.bf16.mxu0 %v133_v0 }
   0xa   :  { %120 = vmatpush3.bf16.msra.mxu0 %v131_v3 }
   0xb   :  { %121 = vmatprep.subr.bf16.mxu0 %v133_v0 }
   0xe   :  { %122 = vmatpush3.bf16.msra.mxu0 %v132_v4 }
  0x11   :  { %124 = vmatmul.mubr.msk.bf16.vlgmr.msra.gmra.mrb[0].mxu0 %vm55_vm1, %v15_v5 }
  0xe4   :  { %v93_v7 = vpop.f32.mrb[0].mxu0 }
  0xe5   :  { %v94_v8 = vadd.f32 %v104_v6, %v93_v7  ;;  %v125_v9 = vpop.f32.mrb[1].mxu0 }
  0xe6   :  { %v96_v10 = vpop.f32.mrb[2].mxu0 }
  0xe7   :  { %99 = vst [vmem:[%s179_s3] sm:$0xff] %v94_v8  ;;  %v126_v11 = vpop.f32.mrb[3].mxu0 }

// kernel: resnet_basicblock_os8_forward.22
= control target key start
LH: loop header
LB: loop body
LE: loop exit
PB: predicated region body
PF: predicated region fallthrough
CT: control target
= control target key end

     0   :  { %vm1129_vm0 = vmmov 0   ;;  %s1395_s1 = inlined_call_operand.vmem [shape: bf16[1152,128], index: 1, kind: input, shape index: {}]   ;;  %s1396_s0 = inlined_call_operand.vmem [shape: bf16[8,1152], index: 0, kind: input, shape index: {}]   ;;  %s1397_s2 = inlined_call_operand.vmem [shape: f32[1,128], index: 2, kind: input, shape index: {}]   ;;  %s1398_s3 = inlined_call_operand.vmem [shape: f32[8,128], index: 3, kind: input, shape index: {}]   ;;  %s1399_s4 = inlined_call_operand.vmem [shape: f32[8,128], index: 4, kind: output, shape index: {}]  }
   0x1   :  { %v1047_v0 = vld [vmem:[%s1395_s1 + $0x40] sm:$0xff]   ;;  %v1051_v4 = vld [vmem:[%s1395_s1 + $0x48] sm:$0xff]   ;;  %v1055_v8 = vld [vmem:[%s1395_s1 + $0x50] sm:$0xff]  }
   0x2   :  { %v1048_v1 = vld [vmem:[%s1395_s1] sm:$0xff]   ;;  %928 = vmatprep.subr.bf16.mxu0 %v1047_v0  ;;  %v1052_v5 = vld [vmem:[%s1395_s1 + $0x8] sm:$0xff]   ;;  %v1056_v9 = vld [vmem:[%s1395_s1 + $0x10] sm:$0xff]  }
   0x3   :  { %v1049_v2 = vld [vmem:[%s1395_s1 + $0xc0] sm:$0xff]   ;;  %929 = vmatpush3.bf16.msra.mxu0 %v1048_v1  ;;  %v1053_v6 = vld [vmem:[%s1395_s1 + $0xc8] sm:$0xff]   ;;  %v1057_v10 = vld [vmem:[%s1395_s1 + $0xd0] sm:$0xff]  }
   0x4   :  { %v1050_v3 = vld [vmem:[%s1395_s1 + $0x80] sm:$0xff]   ;;  %950 = vmatprep.subr.bf16.mxu1 %v1049_v2  ;;  %930 = vmatprep.subr.bf16.mxu0 %v1051_v4  ;;  %v1054_v7 = vld [vmem:[%s1395_s1 + $0x88] sm:$0xff]   ;;  %v1058_v11 = vld [vmem:[%s1395_s1 + $0x90] sm:$0xff]  }
   0x5   :  { %951 = vmatpush3.bf16.msra.mxu1 %v1050_v3  ;;  %v1059_v12 = vld [vmem:[%s1395_s1 + $0x58] sm:$0xff]   ;;  %v1063_v16 = vld [vmem:[%s1395_s1 + $0x60] sm:$0xff]   ;;  %v1067_v20 = vld [vmem:[%s1395_s1 + $0x68] sm:$0xff]  }
   0x6   :  { %952 = vmatprep.subr.bf16.mxu1 %v1053_v6  ;;  %v1060_v13 = vld [vmem:[%s1395_s1 + $0x18] sm:$0xff]   ;;  %v1064_v17 = vld [vmem:[%s1395_s1 + $0x20] sm:$0xff]   ;;  %v1068_v21 = vld [vmem:[%s1395_s1 + $0x28] sm:$0xff]  }
   0x7   :  { %931 = vmatpush3.bf16.msra.mxu0 %v1052_v5  ;;  %v1061_v14 = vld [vmem:[%s1395_s1 + $0xd8] sm:$0xff]   ;;  %v1065_v18 = vld [vmem:[%s1395_s1 + $0xe0] sm:$0xff]   ;;  %v1069_v22 = vld [vmem:[%s1395_s1 + $0xe8] sm:$0xff]  }
   0x8   :  { %932 = vmatprep.subr.bf16.mxu0 %v1055_v8  ;;  %v1062_v15 = vld [vmem:[%s1395_s1 + $0x98] sm:$0xff]   ;;  %v1066_v19 = vld [vmem:[%s1395_s1 + $0xa0] sm:$0xff]   ;;  %v1070_v23 = vld [vmem:[%s1395_s1 + $0xa8] sm:$0xff]  }
   0x9   :  { %953 = vmatpush3.bf16.msra.mxu1 %v1054_v7  ;;  %v1071_v24 = vld [vmem:[%s1395_s1 + $0x70] sm:$0xff]   ;;  %v1075_v28 = vld [vmem:[%s1395_s1 + $0x78] sm:$0xff]   ;;  %v18_v31 = vld [vmem:[%s1396_s0] sm:$0xff] }
   0xa   :  { %954 = vmatprep.subr.bf16.mxu1 %v1057_v10  ;;  %v1072_v25 = vld [vmem:[%s1395_s1 + $0x30] sm:$0xff]   ;;  %v1076_v29 = vld [vmem:[%s1395_s1 + $0x38] sm:$0xff]   ;;  %v847_v32 = vcombine.low %v18_v31, %v18_v31  ;;  %v848_v33 = vcombine.high %v18_v31, %v18_v31  ;;  %v1081_v35 = vld [vmem:[%s1395_s1 + $0x140] sm:$0xff]  }
   0xb   :  { %933 = vmatpush3.bf16.msra.mxu0 %v1056_v9  ;;  %v1073_v26 = vld [vmem:[%s1395_s1 + $0xf0] sm:$0xff]   ;;  %v1077_v30 = vld [vmem:[%s1395_s1 + $0xf8] sm:$0xff]   ;;  %v19_v36 = vld [vmem:[%s1396_s0 + $0x8] sm:$0xff]  ;;  %v1128_v9 = vmov 0.0  }
   0xc   :  { %934 = vmatprep.subr.bf16.mxu0 %v1059_v12  ;;  %v1074_v27 = vld [vmem:[%s1395_s1 + $0xb0] sm:$0xff]   ;;  %v1080_v34 = vld [vmem:[%s1395_s1 + $0xb8] sm:$0xff]   ;;  %670 = vmatprep.mubr.bf16.mxu0 %v848_v33  ;;  %v849_v37 = vcombine.low %v19_v36, %v19_v36  ;;  %v850_v38 = vcombine.high %v19_v36, %v19_v36  ;;  %v1084_v39 = vld [vmem:[%s1395_s1 + $0x100] sm:$0xff]  }
   0xd   :  { %955 = vmatpush3.bf16.msra.mxu1 %v1058_v11  ;;  %v1085_v40 = vld [vmem:[%s1395_s1 + $0x1c0] sm:$0xff]   ;;  %v1087_v42 = vld [vmem:[%s1395_s1 + $0x148] sm:$0xff]   ;;  %v1091_v46 = vld [vmem:[%s1395_s1 + $0x150] sm:$0xff]  }
   0xe   :  { %956 = vmatprep.subr.bf16.mxu1 %v1061_v14  ;;  %710 = vmatprep.mubr.bf16.mxu1 %v850_v38  ;;  %v1086_v41 = vld [vmem:[%s1395_s1 + $0x180] sm:$0xff]   ;;  %v1088_v43 = vld [vmem:[%s1395_s1 + $0x108] sm:$0xff]   ;;  %v1092_v47 = vld [vmem:[%s1395_s1 + $0x110] sm:$0xff]  }
   0xf   :  { %935 = vmatpush3.bf16.msra.mxu0 %v1060_v13  ;;  %v1089_v44 = vld [vmem:[%s1395_s1 + $0x1c8] sm:$0xff]   ;;  %v1093_v48 = vld [vmem:[%s1395_s1 + $0x1d0] sm:$0xff]   ;;  %v1095_v50 = vld [vmem:[%s1395_s1 + $0x158] sm:$0xff]  }
  0x10   :  { %936 = vmatprep.subr.bf16.mxu0 %v1063_v16  ;;  %v1090_v45 = vld [vmem:[%s1395_s1 + $0x188] sm:$0xff]   ;;  %v1094_v49 = vld [vmem:[%s1395_s1 + $0x190] sm:$0xff]   ;;  %v1096_v51 = vld [vmem:[%s1395_s1 + $0x118] sm:$0xff]  }
  0x11   :  { %957 = vmatpush3.bf16.msra.mxu1 %v1062_v15  ;;  %v1097_v52 = vld [vmem:[%s1395_s1 + $0x1d8] sm:$0xff]   ;;  %v1099_v54 = vld [vmem:[%s1395_s1 + $0x160] sm:$0xff]   ;;  %v1103_v58 = vld [vmem:[%s1395_s1 + $0x168] sm:$0xff]  }
  0x12   :  { %958 = vmatprep.subr.bf16.mxu1 %v1065_v18  ;;  %v1098_v53 = vld [vmem:[%s1395_s1 + $0x198] sm:$0xff]   ;;  %v1100_v55 = vld [vmem:[%s1395_s1 + $0x120] sm:$0xff]   ;;  %v1104_v59 = vld [vmem:[%s1395_s1 + $0x128] sm:$0xff]  }
  0x13   :  { %937 = vmatpush3.bf16.msra.mxu0 %v1064_v17  ;;  %v1101_v56 = vld [vmem:[%s1395_s1 + $0x1e0] sm:$0xff]   ;;  %v1105_v60 = vld [vmem:[%s1395_s1 + $0x1e8] sm:$0xff]   ;;  %v1107_v62 = vld [vmem:[%s1395_s1 + $0x170] sm:$0xff]  }
  0x14   :  { %938 = vmatprep.subr.bf16.mxu0 %v1067_v20  ;;  %v1102_v57 = vld [vmem:[%s1395_s1 + $0x1a0] sm:$0xff]   ;;  %v1106_v61 = vld [vmem:[%s1395_s1 + $0x1a8] sm:$0xff]   ;;  %v1108_v63 = vld [vmem:[%s1395_s1 + $0x130] sm:$0xff]  }
  0x15   :  { %959 = vmatpush3.bf16.msra.mxu1 %v1066_v19  ;;  %v1109_v0 = vld [vmem:[%s1395_s1 + $0x1f0] sm:$0xff]   ;;  %v1111_v2 = vld [vmem:[%s1395_s1 + $0x178] sm:$0xff]   ;;  %v1119_v13 = vld [vmem:[%s1395_s1 + $0x200] sm:$0xff]  }
  0x16   :  { %960 = vmatprep.subr.bf16.mxu1 %v1069_v22  ;;  %v1110_v1 = vld [vmem:[%s1395_s1 + $0x1b0] sm:$0xff]   ;;  %v1112_v3 = vld [vmem:[%s1395_s1 + $0x138] sm:$0xff]   ;;  %v1120_v14 = vld [vmem:[%s1395_s1 + $0x208] sm:$0xff]  }
  0x17   :  { %939 = vmatpush3.bf16.msra.mxu0 %v1068_v21  ;;  %v1113_v4 = vld [vmem:[%s1395_s1 + $0x1f8] sm:$0xff]   ;;  %v20_v5 = vld [vmem:[%s1396_s0 + $0x10] sm:$0xff]  ;;  %v1123_v17 = vld [vmem:[%s1395_s1 + $0x220] sm:$0xff]  }
  0x18   :  { %940 = vmatprep.subr.bf16.mxu0 %v1071_v24  ;;  %v851_v6 = vcombine.low %v20_v5, %v20_v5  ;;  %v852_v7 = vcombine.high %v20_v5, %v20_v5  ;;  %v1116_v8 = vld [vmem:[%s1395_s1 + $0x1b8] sm:$0xff]   ;;  %v1121_v15 = vld [vmem:[%s1395_s1 + $0x210] sm:$0xff]   ;;  %v1124_v18 = vld [vmem:[%s1395_s1 + $0x228] sm:$0xff]  }
  0x19   :  { %961 = vmatpush3.bf16.msra.mxu1 %v1070_v23  ;;  %v21_v10 = vld [vmem:[%s1396_s0 + $0x18] sm:$0xff]  ;;  %v1125_v19 = vld [vmem:[%s1395_s1 + $0x230] sm:$0xff]   ;;  %v1127_v21 = vld [vmem:[%s1396_s0 + $0x20] ss:$0 sps:$4 sm:$0xff]  }
  0x1a   :  { %962 = vmatprep.subr.bf16.mxu1 %v1073_v26  ;;  %v853_v11 = vcombine.low %v21_v10, %v21_v10  ;;  %v854_v12 = vcombine.high %v21_v10, %v21_v10  ;;  %v1122_v16 = vld [vmem:[%s1395_s1 + $0x218] sm:$0xff]   ;;  %v846_v23 = vld [vmem:[%s1397_s2] ss:$0 sm:$0xff] }
  0x1b   :  { %941 = vmatpush3.bf16.msra.mxu0 %v1072_v25  ;;  %v1126_v20 = vld [vmem:[%s1395_s1 + $0x238] sm:$0xff]  }
  0x1c   :  { %942 = vmatprep.subr.bf16.mxu0 %v1075_v28 }
  0x1d   :  { %963 = vmatpush3.bf16.msra.mxu1 %v1074_v27 }
  0x1e   :  { %964 = vmatprep.subr.bf16.mxu1 %v1077_v30 }
  0x1f   :  { %943 = vmatpush3.bf16.msra.mxu0 %v1076_v29 }
  0x20   :  { %972 = vmatprep.subr.bf16.mxu0 %v1081_v35 }
  0x21   :  { %965 = vmatpush3.bf16.msra.mxu1 %v1080_v34 }
  0x22   :  { %671 = vmatmul.mubr.bf16.vlgmr.msra.gmra.mrb[0].mxu0 %v847_v32  ;;  %994 = vmatprep.subr.bf16.mxu1 %v1085_v40 }
  0x23   :  { %973 = vmatpush3.bf16.msra.mxu0 %v1084_v39  ;;  %750 = vmatprep.mubr.bf16.mxu0 %v852_v7 }
  0x24   :  { %711 = vmatmul.mubr.bf16.vlgmr.msra.gmra.mrb[0].mxu1 %v849_v37  ;;  %974 = vmatprep.subr.bf16.mxu0 %v1087_v42 }
  0x25   :  { %995 = vmatpush3.bf16.msra.mxu1 %v1086_v41  ;;  %790 = vmatprep.mubr.bf16.mxu1 %v854_v12 }
  0x26   :  { %996 = vmatprep.subr.bf16.mxu1 %v1089_v44 }
  0x27   :  { %975 = vmatpush3.bf16.msra.mxu0 %v1088_v43 }
  0x28   :  { %976 = vmatprep.subr.bf16.mxu0 %v1091_v46 }
  0x29   :  { %997 = vmatpush3.bf16.msra.mxu1 %v1090_v45 }
  0x2a   :  { %998 = vmatprep.subr.bf16.mxu1 %v1093_v48  ;;  %v838_v48 = vld [vmem:[%s1398_s3] sm:$0xff] }
  0x2b   :  { %977 = vmatpush3.bf16.msra.mxu0 %v1092_v47 }
  0x2c   :  { %978 = vmatprep.subr.bf16.mxu0 %v1095_v50 }
  0x2d   :  { %999 = vmatpush3.bf16.msra.mxu1 %v1094_v49 }
  0x2e   :  { %1000 = vmatprep.subr.bf16.mxu1 %v1097_v52 }
  0x2f   :  { %979 = vmatpush3.bf16.msra.mxu0 %v1096_v51 }
  0x30   :  { %980 = vmatprep.subr.bf16.mxu0 %v1099_v54 }
  0x31   :  { %1001 = vmatpush3.bf16.msra.mxu1 %v1098_v53 }
  0x32   :  { %1002 = vmatprep.subr.bf16.mxu1 %v1101_v56 }
  0x33   :  { %981 = vmatpush3.bf16.msra.mxu0 %v1100_v55 }
  0x34   :  { %982 = vmatprep.subr.bf16.mxu0 %v1103_v58 }
  0x35   :  { %1003 = vmatpush3.bf16.msra.mxu1 %v1102_v57 }
  0x36   :  { %1004 = vmatprep.subr.bf16.mxu1 %v1105_v60 }
  0x37   :  { %983 = vmatpush3.bf16.msra.mxu0 %v1104_v59 }
  0x38   :  { %984 = vmatprep.subr.bf16.mxu0 %v1107_v62 }
  0x39   :  { %1005 = vmatpush3.bf16.msra.mxu1 %v1106_v61 }
  0x3a   :  { %1006 = vmatprep.subr.bf16.mxu1 %v1109_v0 }
  0x3b   :  { %985 = vmatpush3.bf16.msra.mxu0 %v1108_v63 }
  0x3c   :  { %986 = vmatprep.subr.bf16.mxu0 %v1111_v2 }
  0x3d   :  { %1007 = vmatpush3.bf16.msra.mxu1 %v1110_v1 }
  0x3e   :  { %1008 = vmatprep.subr.bf16.mxu1 %v1113_v4 }
  0x3f   :  { %987 = vmatpush3.bf16.msra.mxu0 %v1112_v3 }
  0x40   :  { %1025 = vmatprep.subr.bf16.mxu0 %v1128_v9 }
  0x41   :  { %1009 = vmatpush3.bf16.msra.mxu1 %v1116_v8 }
  0x42   :  { %751 = vmatmul.mubr.bf16.vlgmr.msra.gmra.mrb[4].mxu0 %v851_v6 }
  0x43   :  { %1026 = vmatpush3.bf16.msra.mxu0 %v1119_v13  ;;  %1041 = vmatprep.mubr.msk.bf16.mxu0 %vm1129_vm0, %v1128_v9 }
  0x44   :  { %791 = vmatmul.mubr.bf16.vlgmr.msra.gmra.mrb[4].mxu1 %v853_v11  ;;  %1027 = vmatprep.subr.bf16.mxu0 %v1128_v9 }
  0x47   :  { %1028 = vmatpush3.bf16.msra.mxu0 %v1120_v14 }
  0x48   :  { %1029 = vmatprep.subr.bf16.mxu0 %v1128_v9 }
  0x4b   :  { %1030 = vmatpush3.bf16.msra.mxu0 %v1121_v15 }
  0x4c   :  { %1031 = vmatprep.subr.bf16.mxu0 %v1128_v9 }
  0x4f   :  { %1032 = vmatpush3.bf16.msra.mxu0 %v1122_v16 }
  0x50   :  { %1033 = vmatprep.subr.bf16.mxu0 %v1128_v9 }
  0x53   :  { %1034 = vmatpush3.bf16.msra.mxu0 %v1123_v17 }
  0x54   :  { %1035 = vmatprep.subr.bf16.mxu0 %v1128_v9 }
  0x57   :  { %1036 = vmatpush3.bf16.msra.mxu0 %v1124_v18 }
  0x58   :  { %1037 = vmatprep.subr.bf16.mxu0 %v1128_v9 }
  0x5b   :  { %1038 = vmatpush3.bf16.msra.mxu0 %v1125_v19 }
  0x5c   :  { %1039 = vmatprep.subr.bf16.mxu0 %v1128_v9 }
  0x5f   :  { %1040 = vmatpush3.bf16.msra.mxu0 %v1126_v20 }
  0x62   :  { %1042 = vmatmul.mubr.bf16.vlgmr.msra.gmra.mrb[8].mxu0 %v1127_v21 }
  0xf5   :  { %v944_v22 = vpop.f32.mrb[0].mxu0 }
  0xf6   :  { %v945_v24 = vpop.f32.mrb[1].mxu0 }
  0xf7   :  { %v946_v25 = vadd.f32 %v945_v24, %v944_v22  ;;  %v947_v26 = vpop.f32.mrb[2].mxu0  ;;  %v966_v27 = vpop.f32.mrb[0].mxu1 }
  0xf8   :  { %v948_v28 = vpop.f32.mrb[3].mxu0  ;;  %v967_v29 = vpop.f32.mrb[1].mxu1 }
  0xf9   :  { %v673_v30 = vadd.f32 %v946_v25, %v846_v23  ;;  %v968_v31 = vadd.f32 %v967_v29, %v966_v27  ;;  %v969_v32 = vpop.f32.mrb[2].mxu1 }
  0xfa   :  { %v970_v33 = vpop.f32.mrb[3].mxu1 }
  0xfb   :  { %v713_v34 = vadd.f32 %v968_v31, %v673_v30 }
 0x115   :  { %v988_v35 = vpop.f32.mrb[4].mxu0 }
 0x116   :  { %v989_v36 = vpop.f32.mrb[5].mxu0 }
 0x117   :  { %v990_v37 = vadd.f32 %v989_v36, %v988_v35  ;;  %v991_v38 = vpop.f32.mrb[6].mxu0  ;;  %v1010_v39 = vpop.f32.mrb[4].mxu1 }
 0x118   :  { %v992_v40 = vpop.f32.mrb[7].mxu0  ;;  %v1011_v41 = vpop.f32.mrb[5].mxu1 }
 0x119   :  { %v753_v42 = vadd.f32 %v990_v37, %v713_v34  ;;  %v1012_v43 = vadd.f32 %v1011_v41, %v1010_v39  ;;  %v1013_v44 = vpop.f32.mrb[6].mxu1 }
 0x11a   :  { %v1014_v45 = vpop.f32.mrb[7].mxu1 }
 0x11b   :  { %v793_v46 = vadd.f32 %v1012_v43, %v753_v42 }
 0x135   :  { %v832_v47 = vpop.f32.mrb[8].mxu0 }
 0x136   :  { %v833_v49 = vadd.f32 %v832_v47, %v793_v46  ;;  %v1043_v50 = vpop.f32.mrb[9].mxu0 }
 0x137   :  { %v835_v51 = vpop.f32.mrb[10].mxu0 }
 0x138   :  { %v839_v52 = vadd.f32 %v838_v48, %v833_v49  ;;  %v1044_v53 = vpop.f32.mrb[11].mxu0 }
 0x13a   :  { %v840_v54 = vmax.f32 %v839_v52, 0.0 }
 0x13c   :  { %841 = vst [vmem:[%s1399_s4] sm:$0xff] %v840_v54 }

// kernel: resnet_basicblock_os8_forward.23
= control target key start
LH: loop header
LB: loop body
LE: loop exit
PB: predicated region body
PF: predicated region fallthrough
CT: control target
= control target key end

     0   :  { %vm1124_vm0 = vmmov 0   ;;  %s1382_s1 = inlined_call_operand.vmem [shape: bf16[1152,128], index: 1, kind: input, shape index: {}]   ;;  %s1383_s0 = inlined_call_operand.vmem [shape: bf16[8,1152], index: 0, kind: input, shape index: {}]   ;;  %s1384_s2 = inlined_call_operand.vmem [shape: f32[1,128], index: 2, kind: input, shape index: {}]   ;;  %s1385_s3 = inlined_call_operand.vmem [shape: f32[8,128], index: 3, kind: output, shape index: {}]  }
   0x1   :  { %v1042_v0 = vld [vmem:[%s1382_s1 + $0x40] sm:$0xff]   ;;  %v1046_v4 = vld [vmem:[%s1382_s1 + $0x48] sm:$0xff]   ;;  %v1050_v8 = vld [vmem:[%s1382_s1 + $0x50] sm:$0xff]  }
   0x2   :  { %v1043_v1 = vld [vmem:[%s1382_s1] sm:$0xff]   ;;  %923 = vmatprep.subr.bf16.mxu0 %v1042_v0  ;;  %v1047_v5 = vld [vmem:[%s1382_s1 + $0x8] sm:$0xff]   ;;  %v1051_v9 = vld [vmem:[%s1382_s1 + $0x10] sm:$0xff]  }
   0x3   :  { %v1044_v2 = vld [vmem:[%s1382_s1 + $0xc0] sm:$0xff]   ;;  %924 = vmatpush3.bf16.msra.mxu0 %v1043_v1  ;;  %v1048_v6 = vld [vmem:[%s1382_s1 + $0xc8] sm:$0xff]   ;;  %v1052_v10 = vld [vmem:[%s1382_s1 + $0xd0] sm:$0xff]  }
   0x4   :  { %v1045_v3 = vld [vmem:[%s1382_s1 + $0x80] sm:$0xff]   ;;  %945 = vmatprep.subr.bf16.mxu1 %v1044_v2  ;;  %925 = vmatprep.subr.bf16.mxu0 %v1046_v4  ;;  %v1049_v7 = vld [vmem:[%s1382_s1 + $0x88] sm:$0xff]   ;;  %v1053_v11 = vld [vmem:[%s1382_s1 + $0x90] sm:$0xff]  }
   0x5   :  { %946 = vmatpush3.bf16.msra.mxu1 %v1045_v3  ;;  %v1054_v12 = vld [vmem:[%s1382_s1 + $0x58] sm:$0xff]   ;;  %v1058_v16 = vld [vmem:[%s1382_s1 + $0x60] sm:$0xff]   ;;  %v1062_v20 = vld [vmem:[%s1382_s1 + $0x68] sm:$0xff]  }
   0x6   :  { %947 = vmatprep.subr.bf16.mxu1 %v1048_v6  ;;  %v1055_v13 = vld [vmem:[%s1382_s1 + $0x18] sm:$0xff]   ;;  %v1059_v17 = vld [vmem:[%s1382_s1 + $0x20] sm:$0xff]   ;;  %v1063_v21 = vld [vmem:[%s1382_s1 + $0x28] sm:$0xff]  }
   0x7   :  { %926 = vmatpush3.bf16.msra.mxu0 %v1047_v5  ;;  %v1056_v14 = vld [vmem:[%s1382_s1 + $0xd8] sm:$0xff]   ;;  %v1060_v18 = vld [vmem:[%s1382_s1 + $0xe0] sm:$0xff]   ;;  %v1064_v22 = vld [vmem:[%s1382_s1 + $0xe8] sm:$0xff]  }
   0x8   :  { %927 = vmatprep.subr.bf16.mxu0 %v1050_v8  ;;  %v1057_v15 = vld [vmem:[%s1382_s1 + $0x98] sm:$0xff]   ;;  %v1061_v19 = vld [vmem:[%s1382_s1 + $0xa0] sm:$0xff]   ;;  %v1065_v23 = vld [vmem:[%s1382_s1 + $0xa8] sm:$0xff]  }
   0x9   :  { %948 = vmatpush3.bf16.msra.mxu1 %v1049_v7  ;;  %v1066_v24 = vld [vmem:[%s1382_s1 + $0x70] sm:$0xff]   ;;  %v1070_v28 = vld [vmem:[%s1382_s1 + $0x78] sm:$0xff]   ;;  %v15_v31 = vld [vmem:[%s1383_s0] sm:$0xff] }
   0xa   :  { %949 = vmatprep.subr.bf16.mxu1 %v1052_v10  ;;  %v1067_v25 = vld [vmem:[%s1382_s1 + $0x30] sm:$0xff]   ;;  %v1071_v29 = vld [vmem:[%s1382_s1 + $0x38] sm:$0xff]   ;;  %v842_v32 = vcombine.low %v15_v31, %v15_v31  ;;  %v843_v33 = vcombine.high %v15_v31, %v15_v31  ;;  %v1076_v35 = vld [vmem:[%s1382_s1 + $0x140] sm:$0xff]  }
   0xb   :  { %928 = vmatpush3.bf16.msra.mxu0 %v1051_v9  ;;  %v1068_v26 = vld [vmem:[%s1382_s1 + $0xf0] sm:$0xff]   ;;  %v1072_v30 = vld [vmem:[%s1382_s1 + $0xf8] sm:$0xff]   ;;  %v16_v36 = vld [vmem:[%s1383_s0 + $0x8] sm:$0xff]  ;;  %v1123_v9 = vmov 0.0  }
   0xc   :  { %929 = vmatprep.subr.bf16.mxu0 %v1054_v12  ;;  %v1069_v27 = vld [vmem:[%s1382_s1 + $0xb0] sm:$0xff]   ;;  %v1075_v34 = vld [vmem:[%s1382_s1 + $0xb8] sm:$0xff]   ;;  %667 = vmatprep.mubr.bf16.mxu0 %v843_v33  ;;  %v844_v37 = vcombine.low %v16_v36, %v16_v36  ;;  %v845_v38 = vcombine.high %v16_v36, %v16_v36  ;;  %v1079_v39 = vld [vmem:[%s1382_s1 + $0x100] sm:$0xff]  }
   0xd   :  { %950 = vmatpush3.bf16.msra.mxu1 %v1053_v11  ;;  %v1080_v40 = vld [vmem:[%s1382_s1 + $0x1c0] sm:$0xff]   ;;  %v1082_v42 = vld [vmem:[%s1382_s1 + $0x148] sm:$0xff]   ;;  %v1086_v46 = vld [vmem:[%s1382_s1 + $0x150] sm:$0xff]  }
   0xe   :  { %951 = vmatprep.subr.bf16.mxu1 %v1056_v14  ;;  %707 = vmatprep.mubr.bf16.mxu1 %v845_v38  ;;  %v1081_v41 = vld [vmem:[%s1382_s1 + $0x180] sm:$0xff]   ;;  %v1083_v43 = vld [vmem:[%s1382_s1 + $0x108] sm:$0xff]   ;;  %v1087_v47 = vld [vmem:[%s1382_s1 + $0x110] sm:$0xff]  }
   0xf   :  { %930 = vmatpush3.bf16.msra.mxu0 %v1055_v13  ;;  %v1084_v44 = vld [vmem:[%s1382_s1 + $0x1c8] sm:$0xff]   ;;  %v1088_v48 = vld [vmem:[%s1382_s1 + $0x1d0] sm:$0xff]   ;;  %v1090_v50 = vld [vmem:[%s1382_s1 + $0x158] sm:$0xff]  }
  0x10   :  { %931 = vmatprep.subr.bf16.mxu0 %v1058_v16  ;;  %v1085_v45 = vld [vmem:[%s1382_s1 + $0x188] sm:$0xff]   ;;  %v1089_v49 = vld [vmem:[%s1382_s1 + $0x190] sm:$0xff]   ;;  %v1091_v51 = vld [vmem:[%s1382_s1 + $0x118] sm:$0xff]  }
  0x11   :  { %952 = vmatpush3.bf16.msra.mxu1 %v1057_v15  ;;  %v1092_v52 = vld [vmem:[%s1382_s1 + $0x1d8] sm:$0xff]   ;;  %v1094_v54 = vld [vmem:[%s1382_s1 + $0x160] sm:$0xff]   ;;  %v1098_v58 = vld [vmem:[%s1382_s1 + $0x168] sm:$0xff]  }
  0x12   :  { %953 = vmatprep.subr.bf16.mxu1 %v1060_v18  ;;  %v1093_v53 = vld [vmem:[%s1382_s1 + $0x198] sm:$0xff]   ;;  %v1095_v55 = vld [vmem:[%s1382_s1 + $0x120] sm:$0xff]   ;;  %v1099_v59 = vld [vmem:[%s1382_s1 + $0x128] sm:$0xff]  }
  0x13   :  { %932 = vmatpush3.bf16.msra.mxu0 %v1059_v17  ;;  %v1096_v56 = vld [vmem:[%s1382_s1 + $0x1e0] sm:$0xff]   ;;  %v1100_v60 = vld [vmem:[%s1382_s1 + $0x1e8] sm:$0xff]   ;;  %v1102_v62 = vld [vmem:[%s1382_s1 + $0x170] sm:$0xff]  }
  0x14   :  { %933 = vmatprep.subr.bf16.mxu0 %v1062_v20  ;;  %v1097_v57 = vld [vmem:[%s1382_s1 + $0x1a0] sm:$0xff]   ;;  %v1101_v61 = vld [vmem:[%s1382_s1 + $0x1a8] sm:$0xff]   ;;  %v1103_v63 = vld [vmem:[%s1382_s1 + $0x130] sm:$0xff]  }
  0x15   :  { %954 = vmatpush3.bf16.msra.mxu1 %v1061_v19  ;;  %v1104_v0 = vld [vmem:[%s1382_s1 + $0x1f0] sm:$0xff]   ;;  %v1106_v2 = vld [vmem:[%s1382_s1 + $0x178] sm:$0xff]   ;;  %v1114_v13 = vld [vmem:[%s1382_s1 + $0x200] sm:$0xff]  }
  0x16   :  { %955 = vmatprep.subr.bf16.mxu1 %v1064_v22  ;;  %v1105_v1 = vld [vmem:[%s1382_s1 + $0x1b0] sm:$0xff]   ;;  %v1107_v3 = vld [vmem:[%s1382_s1 + $0x138] sm:$0xff]   ;;  %v1115_v14 = vld [vmem:[%s1382_s1 + $0x208] sm:$0xff]  }
  0x17   :  { %934 = vmatpush3.bf16.msra.mxu0 %v1063_v21  ;;  %v1108_v4 = vld [vmem:[%s1382_s1 + $0x1f8] sm:$0xff]   ;;  %v17_v5 = vld [vmem:[%s1383_s0 + $0x10] sm:$0xff]  ;;  %v1118_v17 = vld [vmem:[%s1382_s1 + $0x220] sm:$0xff]  }
  0x18   :  { %935 = vmatprep.subr.bf16.mxu0 %v1066_v24  ;;  %v846_v6 = vcombine.low %v17_v5, %v17_v5  ;;  %v847_v7 = vcombine.high %v17_v5, %v17_v5  ;;  %v1111_v8 = vld [vmem:[%s1382_s1 + $0x1b8] sm:$0xff]   ;;  %v1116_v15 = vld [vmem:[%s1382_s1 + $0x210] sm:$0xff]   ;;  %v1119_v18 = vld [vmem:[%s1382_s1 + $0x228] sm:$0xff]  }
  0x19   :  { %956 = vmatpush3.bf16.msra.mxu1 %v1065_v23  ;;  %v18_v10 = vld [vmem:[%s1383_s0 + $0x18] sm:$0xff]  ;;  %v1120_v19 = vld [vmem:[%s1382_s1 + $0x230] sm:$0xff]   ;;  %v1122_v21 = vld [vmem:[%s1383_s0 + $0x20] ss:$0 sps:$4 sm:$0xff]  }
  0x1a   :  { %957 = vmatprep.subr.bf16.mxu1 %v1068_v26  ;;  %v848_v11 = vcombine.low %v18_v10, %v18_v10  ;;  %v849_v12 = vcombine.high %v18_v10, %v18_v10  ;;  %v1117_v16 = vld [vmem:[%s1382_s1 + $0x218] sm:$0xff]   ;;  %v841_v23 = vld [vmem:[%s1384_s2] ss:$0 sm:$0xff] }
  0x1b   :  { %936 = vmatpush3.bf16.msra.mxu0 %v1067_v25  ;;  %v1121_v20 = vld [vmem:[%s1382_s1 + $0x238] sm:$0xff]  }
  0x1c   :  { %937 = vmatprep.subr.bf16.mxu0 %v1070_v28 }
  0x1d   :  { %958 = vmatpush3.bf16.msra.mxu1 %v1069_v27 }
  0x1e   :  { %959 = vmatprep.subr.bf16.mxu1 %v1072_v30 }
  0x1f   :  { %938 = vmatpush3.bf16.msra.mxu0 %v1071_v29 }
  0x20   :  { %967 = vmatprep.subr.bf16.mxu0 %v1076_v35 }
  0x21   :  { %960 = vmatpush3.bf16.msra.mxu1 %v1075_v34 }
  0x22   :  { %668 = vmatmul.mubr.bf16.vlgmr.msra.gmra.mrb[0].mxu0 %v842_v32  ;;  %989 = vmatprep.subr.bf16.mxu1 %v1080_v40 }
  0x23   :  { %968 = vmatpush3.bf16.msra.mxu0 %v1079_v39  ;;  %747 = vmatprep.mubr.bf16.mxu0 %v847_v7 }
  0x24   :  { %708 = vmatmul.mubr.bf16.vlgmr.msra.gmra.mrb[0].mxu1 %v844_v37  ;;  %969 = vmatprep.subr.bf16.mxu0 %v1082_v42 }
  0x25   :  { %990 = vmatpush3.bf16.msra.mxu1 %v1081_v41  ;;  %787 = vmatprep.mubr.bf16.mxu1 %v849_v12 }
  0x26   :  { %991 = vmatprep.subr.bf16.mxu1 %v1084_v44 }
  0x27   :  { %970 = vmatpush3.bf16.msra.mxu0 %v1083_v43 }
  0x28   :  { %971 = vmatprep.subr.bf16.mxu0 %v1086_v46 }
  0x29   :  { %992 = vmatpush3.bf16.msra.mxu1 %v1085_v45 }
  0x2a   :  { %993 = vmatprep.subr.bf16.mxu1 %v1088_v48 }
  0x2b   :  { %972 = vmatpush3.bf16.msra.mxu0 %v1087_v47 }
  0x2c   :  { %973 = vmatprep.subr.bf16.mxu0 %v1090_v50 }
  0x2d   :  { %994 = vmatpush3.bf16.msra.mxu1 %v1089_v49 }
  0x2e   :  { %995 = vmatprep.subr.bf16.mxu1 %v1092_v52 }
  0x2f   :  { %974 = vmatpush3.bf16.msra.mxu0 %v1091_v51 }
  0x30   :  { %975 = vmatprep.subr.bf16.mxu0 %v1094_v54 }
  0x31   :  { %996 = vmatpush3.bf16.msra.mxu1 %v1093_v53 }
  0x32   :  { %997 = vmatprep.subr.bf16.mxu1 %v1096_v56 }
  0x33   :  { %976 = vmatpush3.bf16.msra.mxu0 %v1095_v55 }
  0x34   :  { %977 = vmatprep.subr.bf16.mxu0 %v1098_v58 }
  0x35   :  { %998 = vmatpush3.bf16.msra.mxu1 %v1097_v57 }
  0x36   :  { %999 = vmatprep.subr.bf16.mxu1 %v1100_v60 }
  0x37   :  { %978 = vmatpush3.bf16.msra.mxu0 %v1099_v59 }
  0x38   :  { %979 = vmatprep.subr.bf16.mxu0 %v1102_v62 }
  0x39   :  { %1000 = vmatpush3.bf16.msra.mxu1 %v1101_v61 }
  0x3a   :  { %1001 = vmatprep.subr.bf16.mxu1 %v1104_v0 }
  0x3b   :  { %980 = vmatpush3.bf16.msra.mxu0 %v1103_v63 }
  0x3c   :  { %981 = vmatprep.subr.bf16.mxu0 %v1106_v2 }
  0x3d   :  { %1002 = vmatpush3.bf16.msra.mxu1 %v1105_v1 }
  0x3e   :  { %1003 = vmatprep.subr.bf16.mxu1 %v1108_v4 }
  0x3f   :  { %982 = vmatpush3.bf16.msra.mxu0 %v1107_v3 }
  0x40   :  { %1020 = vmatprep.subr.bf16.mxu0 %v1123_v9 }
  0x41   :  { %1004 = vmatpush3.bf16.msra.mxu1 %v1111_v8 }
  0x42   :  { %748 = vmatmul.mubr.bf16.vlgmr.msra.gmra.mrb[4].mxu0 %v846_v6 }
  0x43   :  { %1021 = vmatpush3.bf16.msra.mxu0 %v1114_v13  ;;  %1036 = vmatprep.mubr.msk.bf16.mxu0 %vm1124_vm0, %v1123_v9 }
  0x44   :  { %788 = vmatmul.mubr.bf16.vlgmr.msra.gmra.mrb[4].mxu1 %v848_v11  ;;  %1022 = vmatprep.subr.bf16.mxu0 %v1123_v9 }
  0x47   :  { %1023 = vmatpush3.bf16.msra.mxu0 %v1115_v14 }
  0x48   :  { %1024 = vmatprep.subr.bf16.mxu0 %v1123_v9 }
  0x4b   :  { %1025 = vmatpush3.bf16.msra.mxu0 %v1116_v15 }
  0x4c   :  { %1026 = vmatprep.subr.bf16.mxu0 %v1123_v9 }
  0x4f   :  { %1027 = vmatpush3.bf16.msra.mxu0 %v1117_v16 }
  0x50   :  { %1028 = vmatprep.subr.bf16.mxu0 %v1123_v9 }
  0x53   :  { %1029 = vmatpush3.bf16.msra.mxu0 %v1118_v17 }
  0x54   :  { %1030 = vmatprep.subr.bf16.mxu0 %v1123_v9 }
  0x57   :  { %1031 = vmatpush3.bf16.msra.mxu0 %v1119_v18 }
  0x58   :  { %1032 = vmatprep.subr.bf16.mxu0 %v1123_v9 }
  0x5b   :  { %1033 = vmatpush3.bf16.msra.mxu0 %v1120_v19 }
  0x5c   :  { %1034 = vmatprep.subr.bf16.mxu0 %v1123_v9 }
  0x5f   :  { %1035 = vmatpush3.bf16.msra.mxu0 %v1121_v20 }
  0x62   :  { %1037 = vmatmul.mubr.bf16.vlgmr.msra.gmra.mrb[8].mxu0 %v1122_v21 }
  0xf5   :  { %v939_v22 = vpop.f32.mrb[0].mxu0 }
  0xf6   :  { %v940_v24 = vpop.f32.mrb[1].mxu0 }
  0xf7   :  { %v941_v25 = vadd.f32 %v940_v24, %v939_v22  ;;  %v942_v26 = vpop.f32.mrb[2].mxu0  ;;  %v961_v27 = vpop.f32.mrb[0].mxu1 }
  0xf8   :  { %v943_v28 = vpop.f32.mrb[3].mxu0  ;;  %v962_v29 = vpop.f32.mrb[1].mxu1 }
  0xf9   :  { %v670_v30 = vadd.f32 %v941_v25, %v841_v23  ;;  %v963_v31 = vadd.f32 %v962_v29, %v961_v27  ;;  %v964_v32 = vpop.f32.mrb[2].mxu1 }
  0xfa   :  { %v965_v33 = vpop.f32.mrb[3].mxu1 }
  0xfb   :  { %v710_v34 = vadd.f32 %v963_v31, %v670_v30 }
 0x115   :  { %v983_v35 = vpop.f32.mrb[4].mxu0 }
 0x116   :  { %v984_v36 = vpop.f32.mrb[5].mxu0 }
 0x117   :  { %v985_v37 = vadd.f32 %v984_v36, %v983_v35  ;;  %v986_v38 = vpop.f32.mrb[6].mxu0  ;;  %v1005_v39 = vpop.f32.mrb[4].mxu1 }
 0x118   :  { %v987_v40 = vpop.f32.mrb[7].mxu0  ;;  %v1006_v41 = vpop.f32.mrb[5].mxu1 }
 0x119   :  { %v750_v42 = vadd.f32 %v985_v37, %v710_v34  ;;  %v1007_v43 = vadd.f32 %v1006_v41, %v1005_v39  ;;  %v1008_v44 = vpop.f32.mrb[6].mxu1 }
 0x11a   :  { %v1009_v45 = vpop.f32.mrb[7].mxu1 }
 0x11b   :  { %v790_v46 = vadd.f32 %v1007_v43, %v750_v42 }
 0x135   :  { %v829_v47 = vpop.f32.mrb[8].mxu0 }
 0x136   :  { %v830_v48 = vadd.f32 %v829_v47, %v790_v46  ;;  %v1038_v49 = vpop.f32.mrb[9].mxu0 }
 0x137   :  { %v832_v50 = vpop.f32.mrb[10].mxu0 }
 0x138   :  { %v835_v51 = vmax.f32 %v830_v48, 0.0  ;;  %v1039_v52 = vpop.f32.mrb[11].mxu0 }
 0x13a   :  { %836 = vst [vmem:[%s1385_s3] sm:$0xff] %v835_v51 }

// kernel: resnet_basicblock_os8_forward.26
= control target key start
LH: loop header
LB: loop body
LE: loop exit
PB: predicated region body
PF: predicated region fallthrough
CT: control target
= control target key end

     0   :  { %v212_v1 = vmov 0   ;;  %v34_v18 = vlaneseq  ;;  %s293_s1 = inlined_call_operand.vmem [shape: bf16[128,256], index: 1, kind: input, shape index: {}]   ;;  %s294_s0 = inlined_call_operand.vmem [shape: bf16[8,128], index: 0, kind: input, shape index: {}]   ;;  %s295_s2 = inlined_call_operand.vmem [shape: f32[1,256], index: 2, kind: input, shape index: {}]   ;;  %s296_s3 = inlined_call_operand.vmem [shape: f32[8,256], index: 3, kind: output, shape index: {}]  }
   0x1   :  { %v188_v0 = vld [vmem:[%s293_s1 + $0x4] ss:$8 sps:$4 sm:$0xff]   ;;  %156 = vmatprep.mubr.bf16.mxu0 %v212_v1  ;;  %v190_v2 = vld [vmem:[%s293_s1] ss:$8 sps:$4 sm:$0xff]   ;;  %v191_v3 = vld [vmem:[%s293_s1 + $0x14] ss:$8 sps:$4 sm:$0xff]  }
   0x2   :  { %124 = vmatprep.subr.bf16.mxu0 %v188_v0  ;;  %v193_v4 = vld [vmem:[%s293_s1 + $0x10] ss:$8 sps:$4 sm:$0xff]   ;;  %v194_v5 = vld [vmem:[%s293_s1 + $0x24] ss:$8 sps:$4 sm:$0xff]   ;;  %v196_v6 = vld [vmem:[%s293_s1 + $0x20] ss:$8 sps:$4 sm:$0xff]  }
   0x3   :  { %125 = vmatpush1.bf16.msra.mxu0 %v190_v2  ;;  %v197_v7 = vld [vmem:[%s293_s1 + $0x34] ss:$8 sps:$4 sm:$0xff]   ;;  %v199_v8 = vld [vmem:[%s293_s1 + $0x30] ss:$8 sps:$4 sm:$0xff]   ;;  %v200_v9 = vld [vmem:[%s293_s1 + $0x44] ss:$8 sps:$4 sm:$0xff]  }
   0x4   :  { %126 = vmatprep.subr.bf16.mxu0 %v191_v3  ;;  %v202_v10 = vld [vmem:[%s293_s1 + $0x40] ss:$8 sps:$4 sm:$0xff]   ;;  %v203_v11 = vld [vmem:[%s293_s1 + $0x54] ss:$8 sps:$4 sm:$0xff]   ;;  %v205_v12 = vld [vmem:[%s293_s1 + $0x50] ss:$8 sps:$4 sm:$0xff]  }
   0x5   :  { %v206_v13 = vld [vmem:[%s293_s1 + $0x64] ss:$8 sps:$4 sm:$0xff]   ;;  %v208_v14 = vld [vmem:[%s293_s1 + $0x60] ss:$8 sps:$4 sm:$0xff]   ;;  %v209_v15 = vld [vmem:[%s293_s1 + $0x74] ss:$8 sps:$4 sm:$0xff]  }
   0x6   :  { %v211_v16 = vld [vmem:[%s293_s1 + $0x70] ss:$8 sps:$4 sm:$0xff]   ;;  %v15_v17 = vld [vmem:[%s294_s0] sm:$0xf]  ;;  %v35_v19 = vshrl.u32 %v34_v18, 7 }
   0x7   :  { %127 = vmatpush1.bf16.msra.mxu0 %v193_v4  ;;  %v32_v21 = vld [vmem:[%s295_s2] sm:$0x3] }
   0x8   :  { %128 = vmatprep.subr.bf16.mxu0 %v194_v5  ;;  %v36_v20 = vsub.s32 0, %v35_v19  ;;  %v40_v22 = vsub.s32 1, %v35_v19 }
   0xa   :  { %v37_v23 = vrot.slane %v32_v21, %v36_v20  ;;  %v41_v24 = vrot.slane %v32_v21, %v40_v22 }
   0xb   :  { %129 = vmatpush1.bf16.msra.mxu0 %v196_v6 }
   0xc   :  { %130 = vmatprep.subr.bf16.mxu0 %v197_v7 }
   0xf   :  { %131 = vmatpush1.bf16.msra.mxu0 %v199_v8 }
  0x10   :  { %132 = vmatprep.subr.bf16.mxu0 %v200_v9 }
  0x13   :  { %133 = vmatpush1.bf16.msra.mxu0 %v202_v10 }
  0x14   :  { %134 = vmatprep.subr.bf16.mxu0 %v203_v11 }
  0x17   :  { %135 = vmatpush1.bf16.msra.mxu0 %v205_v12 }
  0x18   :  { %136 = vmatprep.subr.bf16.mxu0 %v206_v13 }
  0x1b   :  { %137 = vmatpush1.bf16.msra.mxu0 %v208_v14 }
  0x1c   :  { %138 = vmatprep.subr.bf16.mxu0 %v209_v15 }
  0x1f   :  { %139 = vmatpush1.bf16.msra.mxu0 %v211_v16 }
  0x22   :  { %157 = vmatmul.mubr.bf16.vlgmr.msra.gmra.mrb[0].mxu0 %v15_v17 }
  0xf5   :  { %v158_v25 = vpop.f32.mrb[0].mxu0 }
  0xf6   :  { %v159_v26 = vadd.f32 %v158_v25, %v37_v23  ;;  %v160_v27 = vpop.f32.mrb[1].mxu0 }
  0xf7   :  { %v161_v28 = vadd.f32 %v160_v27, %v41_v24  ;;  %v162_v29 = vpop.f32.mrb[2].mxu0 }
  0xf8   :  { %165 = vst [vmem:[%s296_s3] sm:$0xff] %v159_v26  ;;  %v163_v30 = vpop.f32.mrb[3].mxu0 }
  0xf9   :  { %166 = vst [vmem:[%s296_s3 + $0x8] sm:$0xff] %v161_v28 }

// kernel: resnet_basicblock_os8_forward.25
= control target key start
LH: loop header
LB: loop body
LE: loop exit
PB: predicated region body
PF: predicated region fallthrough
CT: control target
= control target key end

     0   :  { %s2025_s1 = inlined_call_operand.vmem [shape: bf16[1152,256], index: 1, kind: input, shape index: {}]   ;;  %s2026_s0 = inlined_call_operand.vmem [shape: bf16[8,1152], index: 0, kind: input, shape index: {}]   ;;  %s2027_s2 = inlined_call_operand.vmem [shape: f32[1,256], index: 2, kind: input, shape index: {}]   ;;  %s2028_s3 = inlined_call_operand.vmem [shape: f32[8,256], index: 3, kind: output, shape index: {}]  }
   0x1   :  { %v1311_v0 = vld [vmem:[%s2025_s1 + $0x4] ss:$8 sps:$4 sm:$0xff]   ;;  %v1315_v2 = vld [vmem:[%s2025_s1] ss:$8 sps:$4 sm:$0xff]   ;;  %v1317_v4 = vld [vmem:[%s2025_s1 + $0x14] ss:$8 sps:$4 sm:$0xff]  }
   0x2   :  { %v1313_v1 = vld [vmem:[%s2025_s1 + $0x204] ss:$8 sps:$4 sm:$0xff]   ;;  %928 = vmatprep.subr.bf16.mxu1 %v1311_v0  ;;  %v1316_v3 = vld [vmem:[%s2025_s1 + $0x200] ss:$8 sps:$4 sm:$0xff]   ;;  %v1319_v5 = vld [vmem:[%s2025_s1 + $0x214] ss:$8 sps:$4 sm:$0xff]  }
   0x3   :  { %1010 = vmatprep.subr.bf16.mxu0 %v1313_v1  ;;  %929 = vmatpush1.bf16.msra.mxu1 %v1315_v2  ;;  %v1321_v6 = vld [vmem:[%s2025_s1 + $0x10] ss:$8 sps:$4 sm:$0xff]   ;;  %v1323_v8 = vld [vmem:[%s2025_s1 + $0x24] ss:$8 sps:$4 sm:$0xff]   ;;  %v1327_v10 = vld [vmem:[%s2025_s1 + $0x20] ss:$8 sps:$4 sm:$0xff]  }
   0x4   :  { %1011 = vmatpush1.bf16.msra.mxu0 %v1316_v3  ;;  %930 = vmatprep.subr.bf16.mxu1 %v1317_v4  ;;  %v1322_v7 = vld [vmem:[%s2025_s1 + $0x210] ss:$8 sps:$4 sm:$0xff]   ;;  %v1325_v9 = vld [vmem:[%s2025_s1 + $0x224] ss:$8 sps:$4 sm:$0xff]   ;;  %v1328_v11 = vld [vmem:[%s2025_s1 + $0x220] ss:$8 sps:$4 sm:$0xff]  }
   0x5   :  { %1012 = vmatprep.subr.bf16.mxu0 %v1319_v5  ;;  %v1329_v12 = vld [vmem:[%s2025_s1 + $0x34] ss:$8 sps:$4 sm:$0xff]   ;;  %v1333_v14 = vld [vmem:[%s2025_s1 + $0x30] ss:$8 sps:$4 sm:$0xff]   ;;  %v1335_v16 = vld [vmem:[%s2025_s1 + $0x44] ss:$8 sps:$4 sm:$0xff]  }
   0x6   :  { %v1331_v13 = vld [vmem:[%s2025_s1 + $0x234] ss:$8 sps:$4 sm:$0xff]   ;;  %v1334_v15 = vld [vmem:[%s2025_s1 + $0x230] ss:$8 sps:$4 sm:$0xff]   ;;  %v1337_v17 = vld [vmem:[%s2025_s1 + $0x244] ss:$8 sps:$4 sm:$0xff]  }
   0x7   :  { %931 = vmatpush1.bf16.msra.mxu1 %v1321_v6  ;;  %v1339_v18 = vld [vmem:[%s2025_s1 + $0x40] ss:$8 sps:$4 sm:$0xff]   ;;  %v1341_v20 = vld [vmem:[%s2025_s1 + $0x54] ss:$8 sps:$4 sm:$0xff]   ;;  %v1345_v22 = vld [vmem:[%s2025_s1 + $0x50] ss:$8 sps:$4 sm:$0xff]  }
   0x8   :  { %1013 = vmatpush1.bf16.msra.mxu0 %v1322_v7  ;;  %932 = vmatprep.subr.bf16.mxu1 %v1323_v8  ;;  %v1340_v19 = vld [vmem:[%s2025_s1 + $0x240] ss:$8 sps:$4 sm:$0xff]   ;;  %v1343_v21 = vld [vmem:[%s2025_s1 + $0x254] ss:$8 sps:$4 sm:$0xff]   ;;  %v1346_v23 = vld [vmem:[%s2025_s1 + $0x250] ss:$8 sps:$4 sm:$0xff]  }
   0x9   :  { %1014 = vmatprep.subr.bf16.mxu0 %v1325_v9  ;;  %v1347_v24 = vld [vmem:[%s2025_s1 + $0x64] ss:$8 sps:$4 sm:$0xff]   ;;  %v1351_v26 = vld [vmem:[%s2025_s1 + $0x60] ss:$8 sps:$4 sm:$0xff]   ;;  %v1353_v28 = vld [vmem:[%s2025_s1 + $0x74] ss:$8 sps:$4 sm:$0xff]  }
   0xa   :  { %v1349_v25 = vld [vmem:[%s2025_s1 + $0x264] ss:$8 sps:$4 sm:$0xff]   ;;  %v1352_v27 = vld [vmem:[%s2025_s1 + $0x260] ss:$8 sps:$4 sm:$0xff]   ;;  %v1355_v29 = vld [vmem:[%s2025_s1 + $0x274] ss:$8 sps:$4 sm:$0xff]  }
   0xb   :  { %933 = vmatpush1.bf16.msra.mxu1 %v1327_v10  ;;  %v1357_v30 = vld [vmem:[%s2025_s1 + $0x70] ss:$8 sps:$4 sm:$0xff]   ;;  %v1359_v32 = vld [vmem:[%s2025_s1 + $0x84] ss:$8 sps:$4 sm:$0xff]   ;;  %v1363_v34 = vld [vmem:[%s2025_s1 + $0x80] ss:$8 sps:$4 sm:$0xff]  }
   0xc   :  { %1015 = vmatpush1.bf16.msra.mxu0 %v1328_v11  ;;  %934 = vmatprep.subr.bf16.mxu1 %v1329_v12  ;;  %v1358_v31 = vld [vmem:[%s2025_s1 + $0x270] ss:$8 sps:$4 sm:$0xff]   ;;  %v1361_v33 = vld [vmem:[%s2025_s1 + $0x284] ss:$8 sps:$4 sm:$0xff]   ;;  %v1364_v35 = vld [vmem:[%s2025_s1 + $0x280] ss:$8 sps:$4 sm:$0xff]  }
   0xd   :  { %1016 = vmatprep.subr.bf16.mxu0 %v1331_v13  ;;  %v1365_v36 = vld [vmem:[%s2025_s1 + $0x94] ss:$8 sps:$4 sm:$0xff]   ;;  %v1369_v38 = vld [vmem:[%s2025_s1 + $0x90] ss:$8 sps:$4 sm:$0xff]   ;;  %v1371_v40 = vld [vmem:[%s2025_s1 + $0xa4] ss:$8 sps:$4 sm:$0xff]  }
   0xe   :  { %v1367_v37 = vld [vmem:[%s2025_s1 + $0x294] ss:$8 sps:$4 sm:$0xff]   ;;  %v1370_v39 = vld [vmem:[%s2025_s1 + $0x290] ss:$8 sps:$4 sm:$0xff]   ;;  %v1373_v41 = vld [vmem:[%s2025_s1 + $0x2a4] ss:$8 sps:$4 sm:$0xff]  }
   0xf   :  { %935 = vmatpush1.bf16.msra.mxu1 %v1333_v14  ;;  %v1375_v42 = vld [vmem:[%s2025_s1 + $0xa0] ss:$8 sps:$4 sm:$0xff]   ;;  %v1377_v44 = vld [vmem:[%s2025_s1 + $0xb4] ss:$8 sps:$4 sm:$0xff]   ;;  %v1381_v47 = vld [vmem:[%s2025_s1 + $0xb0] ss:$8 sps:$4 sm:$0xff]  }
  0x10   :  { %1017 = vmatpush1.bf16.msra.mxu0 %v1334_v15  ;;  %936 = vmatprep.subr.bf16.mxu1 %v1335_v16  ;;  %v1376_v43 = vld [vmem:[%s2025_s1 + $0x2a0] ss:$8 sps:$4 sm:$0xff]   ;;  %v1379_v45 = vld [vmem:[%s2025_s1 + $0x2b4] ss:$8 sps:$4 sm:$0xff]   ;;  %v1382_v49 = vld [vmem:[%s2025_s1 + $0x2b0] ss:$8 sps:$4 sm:$0xff]  }
  0x11   :  { %1018 = vmatprep.subr.bf16.mxu0 %v1337_v17  ;;  %v15_v46 = vld [vmem:[%s2026_s0] sm:$0xff]  ;;  %v17_v50 = vld [vmem:[%s2026_s0 + $0x10] sm:$0xff] }
  0x12   :  { %v1142_v48 = vcombine.high %v15_v46, %v15_v46  ;;  %v1383_v51 = vld [vmem:[%s2025_s1 + $0xc4] ss:$8 sps:$4 sm:$0xff]   ;;  %v1146_v53 = vcombine.high %v17_v50, %v17_v50  ;;  %v1387_v54 = vld [vmem:[%s2025_s1 + $0xc0] ss:$8 sps:$4 sm:$0xff]   ;;  %v1389_v56 = vld [vmem:[%s2025_s1 + $0xd4] ss:$8 sps:$4 sm:$0xff]   ;;  %v1141_v6 = vcombine.low %v15_v46, %v15_v46  ;;  %v1145_v7 = vcombine.low %v17_v50, %v17_v50 }
  0x13   :  { %937 = vmatpush1.bf16.msra.mxu1 %v1339_v18  ;;  %v1385_v52 = vld [vmem:[%s2025_s1 + $0x2c4] ss:$8 sps:$4 sm:$0xff]   ;;  %v1388_v55 = vld [vmem:[%s2025_s1 + $0x2c0] ss:$8 sps:$4 sm:$0xff]   ;;  %v1391_v57 = vld [vmem:[%s2025_s1 + $0x2d4] ss:$8 sps:$4 sm:$0xff]  }
  0x14   :  { %1019 = vmatpush1.bf16.msra.mxu0 %v1340_v19  ;;  %938 = vmatprep.subr.bf16.mxu1 %v1341_v20  ;;  %v1393_v58 = vld [vmem:[%s2025_s1 + $0xd0] ss:$8 sps:$4 sm:$0xff]   ;;  %v1395_v60 = vld [vmem:[%s2025_s1 + $0xe4] ss:$8 sps:$4 sm:$0xff]   ;;  %v1399_v62 = vld [vmem:[%s2025_s1 + $0xe0] ss:$8 sps:$4 sm:$0xff]  }
  0x15   :  { %1020 = vmatprep.subr.bf16.mxu0 %v1343_v21  ;;  %960 = vmatprep.mubr.bf16.mxu1 %v1142_v48  ;;  %v1394_v59 = vld [vmem:[%s2025_s1 + $0x2d0] ss:$8 sps:$4 sm:$0xff]   ;;  %v1397_v61 = vld [vmem:[%s2025_s1 + $0x2e4] ss:$8 sps:$4 sm:$0xff]   ;;  %v1400_v63 = vld [vmem:[%s2025_s1 + $0x2e0] ss:$8 sps:$4 sm:$0xff]  }
  0x16   :  { %1042 = vmatprep.mubr.bf16.mxu0 %v1146_v53  ;;  %v1401_v0 = vld [vmem:[%s2025_s1 + $0xf4] ss:$8 sps:$4 sm:$0xff]   ;;  %v1405_v2 = vld [vmem:[%s2025_s1 + $0xf0] ss:$8 sps:$4 sm:$0xff]   ;;  %v1411_v4 = vld [vmem:[%s2025_s1 + $0x104] ss:$8 sps:$4 sm:$0xff]  }
  0x17   :  { %939 = vmatpush1.bf16.msra.mxu1 %v1345_v22  ;;  %v1403_v1 = vld [vmem:[%s2025_s1 + $0x2f4] ss:$8 sps:$4 sm:$0xff]   ;;  %v1406_v3 = vld [vmem:[%s2025_s1 + $0x2f0] ss:$8 sps:$4 sm:$0xff]   ;;  %v1416_v5 = vld [vmem:[%s2025_s1 + $0x304] ss:$8 sps:$4 sm:$0xff]  }
  0x18   :  { %1021 = vmatpush1.bf16.msra.mxu0 %v1346_v23  ;;  %940 = vmatprep.subr.bf16.mxu1 %v1347_v24  ;;  %v1409_v8 = vld [vmem:[%s2025_s1 + $0x100] ss:$8 sps:$4 sm:$0xff]   ;;  %v1419_v10 = vld [vmem:[%s2025_s1 + $0x114] ss:$8 sps:$4 sm:$0xff]   ;;  %v1417_v12 = vld [vmem:[%s2025_s1 + $0x110] ss:$8 sps:$4 sm:$0xff]  }
  0x19   :  { %1022 = vmatprep.subr.bf16.mxu0 %v1349_v25  ;;  %v1414_v9 = vld [vmem:[%s2025_s1 + $0x300] ss:$8 sps:$4 sm:$0xff]   ;;  %v1422_v11 = vld [vmem:[%s2025_s1 + $0x314] ss:$8 sps:$4 sm:$0xff]   ;;  %v1420_v13 = vld [vmem:[%s2025_s1 + $0x310] ss:$8 sps:$4 sm:$0xff]  }
  0x1a   :  { %v1425_v14 = vld [vmem:[%s2025_s1 + $0x124] ss:$8 sps:$4 sm:$0xff]   ;;  %v1423_v16 = vld [vmem:[%s2025_s1 + $0x120] ss:$8 sps:$4 sm:$0xff]   ;;  %v1431_v18 = vld [vmem:[%s2025_s1 + $0x134] ss:$8 sps:$4 sm:$0xff]  }
  0x1b   :  { %941 = vmatpush1.bf16.msra.mxu1 %v1351_v26  ;;  %v1428_v15 = vld [vmem:[%s2025_s1 + $0x324] ss:$8 sps:$4 sm:$0xff]   ;;  %v1426_v17 = vld [vmem:[%s2025_s1 + $0x320] ss:$8 sps:$4 sm:$0xff]   ;;  %v1434_v19 = vld [vmem:[%s2025_s1 + $0x334] ss:$8 sps:$4 sm:$0xff]  }
  0x1c   :  { %1023 = vmatpush1.bf16.msra.mxu0 %v1352_v27  ;;  %942 = vmatprep.subr.bf16.mxu1 %v1353_v28  ;;  %v1429_v20 = vld [vmem:[%s2025_s1 + $0x130] ss:$8 sps:$4 sm:$0xff]   ;;  %v1437_v22 = vld [vmem:[%s2025_s1 + $0x144] ss:$8 sps:$4 sm:$0xff]   ;;  %v1435_v24 = vld [vmem:[%s2025_s1 + $0x140] ss:$8 sps:$4 sm:$0xff]  }
  0x1d   :  { %1024 = vmatprep.subr.bf16.mxu0 %v1355_v29  ;;  %v1432_v21 = vld [vmem:[%s2025_s1 + $0x330] ss:$8 sps:$4 sm:$0xff]   ;;  %v1440_v23 = vld [vmem:[%s2025_s1 + $0x344] ss:$8 sps:$4 sm:$0xff]   ;;  %v1438_v25 = vld [vmem:[%s2025_s1 + $0x340] ss:$8 sps:$4 sm:$0xff]  }
  0x1e   :  { %v1443_v26 = vld [vmem:[%s2025_s1 + $0x154] ss:$8 sps:$4 sm:$0xff]   ;;  %v1441_v28 = vld [vmem:[%s2025_s1 + $0x150] ss:$8 sps:$4 sm:$0xff]   ;;  %v1473_v50 = vld [vmem:[%s2025_s1 + $0x1a4] ss:$8 sps:$4 sm:$0xff]  }
  0x1f   :  { %943 = vmatpush1.bf16.msra.mxu1 %v1357_v30  ;;  %v1446_v27 = vld [vmem:[%s2025_s1 + $0x354] ss:$8 sps:$4 sm:$0xff]   ;;  %v1444_v29 = vld [vmem:[%s2025_s1 + $0x350] ss:$8 sps:$4 sm:$0xff]   ;;  %v1449_v30 = vld [vmem:[%s2025_s1 + $0x164] ss:$8 sps:$4 sm:$0xff]  }
  0x20   :  { %1025 = vmatpush1.bf16.msra.mxu0 %v1358_v31  ;;  %944 = vmatprep.subr.bf16.mxu1 %v1359_v32  ;;  %v1452_v31 = vld [vmem:[%s2025_s1 + $0x364] ss:$8 sps:$4 sm:$0xff]   ;;  %v1467_v46 = vld [vmem:[%s2025_s1 + $0x194] ss:$8 sps:$4 sm:$0xff]   ;;  %v1465_v48 = vld [vmem:[%s2025_s1 + $0x190] ss:$8 sps:$4 sm:$0xff]  }
  0x21   :  { %1026 = vmatprep.subr.bf16.mxu0 %v1361_v33  ;;  %v1836_v32 = vld [vmem:[%s2026_s0 + $0x8] sm:$0xff]  ;;  %v1841_v33 = vld [vmem:[%s2026_s0 + $0x18] sm:$0xff] }
  0x22   :  { %v1474_v53 = vld [vmem:[%s2025_s1 + $0x3a0] ss:$8 sps:$4 sm:$0xff]  }
  0x23   :  { %945 = vmatpush1.bf16.msra.mxu1 %v1363_v34  ;;  %v1447_v34 = vld [vmem:[%s2025_s1 + $0x160] ss:$8 sps:$4 sm:$0xff]  }
  0x24   :  { %1027 = vmatpush1.bf16.msra.mxu0 %v1364_v35  ;;  %946 = vmatprep.subr.bf16.mxu1 %v1365_v36  ;;  %v1450_v35 = vld [vmem:[%s2025_s1 + $0x360] ss:$8 sps:$4 sm:$0xff]   ;;  %v1144_v36 = vcombine.high %v1836_v32, %v1836_v32 }
  0x25   :  { %1028 = vmatprep.subr.bf16.mxu0 %v1367_v37  ;;  %v1148_v37 = vcombine.high %v1841_v33, %v1841_v33 }
  0x27   :  { %947 = vmatpush1.bf16.msra.mxu1 %v1369_v38  ;;  %v1455_v38 = vld [vmem:[%s2025_s1 + $0x174] ss:$8 sps:$4 sm:$0xff]  }
  0x28   :  { %1029 = vmatpush1.bf16.msra.mxu0 %v1370_v39  ;;  %948 = vmatprep.subr.bf16.mxu1 %v1371_v40  ;;  %v1458_v39 = vld [vmem:[%s2025_s1 + $0x374] ss:$8 sps:$4 sm:$0xff]   ;;  %v1453_v40 = vld [vmem:[%s2025_s1 + $0x170] ss:$8 sps:$4 sm:$0xff]  }
  0x29   :  { %1030 = vmatprep.subr.bf16.mxu0 %v1373_v41  ;;  %v1456_v41 = vld [vmem:[%s2025_s1 + $0x370] ss:$8 sps:$4 sm:$0xff]  }
  0x2b   :  { %949 = vmatpush1.bf16.msra.mxu1 %v1375_v42  ;;  %v1461_v42 = vld [vmem:[%s2025_s1 + $0x184] ss:$8 sps:$4 sm:$0xff]  }
  0x2c   :  { %1031 = vmatpush1.bf16.msra.mxu0 %v1376_v43  ;;  %950 = vmatprep.subr.bf16.mxu1 %v1377_v44  ;;  %v1464_v43 = vld [vmem:[%s2025_s1 + $0x384] ss:$8 sps:$4 sm:$0xff]   ;;  %v1459_v44 = vld [vmem:[%s2025_s1 + $0x180] ss:$8 sps:$4 sm:$0xff]  }
  0x2d   :  { %1032 = vmatprep.subr.bf16.mxu0 %v1379_v45  ;;  %v1462_v45 = vld [vmem:[%s2025_s1 + $0x380] ss:$8 sps:$4 sm:$0xff]  }
  0x2f   :  { %951 = vmatpush1.bf16.msra.mxu1 %v1381_v47  ;;  %v1470_v47 = vld [vmem:[%s2025_s1 + $0x394] ss:$8 sps:$4 sm:$0xff]  }
  0x30   :  { %1033 = vmatpush1.bf16.msra.mxu0 %v1382_v49  ;;  %952 = vmatprep.subr.bf16.mxu1 %v1383_v51  ;;  %v1468_v49 = vld [vmem:[%s2025_s1 + $0x390] ss:$8 sps:$4 sm:$0xff]   ;;  %v1476_v51 = vld [vmem:[%s2025_s1 + $0x3a4] ss:$8 sps:$4 sm:$0xff]  }
  0x31   :  { %1034 = vmatprep.subr.bf16.mxu0 %v1385_v52  ;;  %v1471_v52 = vld [vmem:[%s2025_s1 + $0x1a0] ss:$8 sps:$4 sm:$0xff]  }
  0x33   :  { %953 = vmatpush1.bf16.msra.mxu1 %v1387_v54  ;;  %v1479_v54 = vld [vmem:[%s2025_s1 + $0x1b4] ss:$8 sps:$4 sm:$0xff]  }
  0x34   :  { %1035 = vmatpush1.bf16.msra.mxu0 %v1388_v55  ;;  %954 = vmatprep.subr.bf16.mxu1 %v1389_v56  ;;  %v1482_v55 = vld [vmem:[%s2025_s1 + $0x3b4] ss:$8 sps:$4 sm:$0xff]   ;;  %v1477_v56 = vld [vmem:[%s2025_s1 + $0x1b0] ss:$8 sps:$4 sm:$0xff]  }
  0x35   :  { %1036 = vmatprep.subr.bf16.mxu0 %v1391_v57  ;;  %v1480_v57 = vld [vmem:[%s2025_s1 + $0x3b0] ss:$8 sps:$4 sm:$0xff]  }
  0x37   :  { %955 = vmatpush1.bf16.msra.mxu1 %v1393_v58  ;;  %v1485_v58 = vld [vmem:[%s2025_s1 + $0x1c4] ss:$8 sps:$4 sm:$0xff]  }
  0x38   :  { %1037 = vmatpush1.bf16.msra.mxu0 %v1394_v59  ;;  %956 = vmatprep.subr.bf16.mxu1 %v1395_v60  ;;  %v1488_v59 = vld [vmem:[%s2025_s1 + $0x3c4] ss:$8 sps:$4 sm:$0xff]   ;;  %v1483_v60 = vld [vmem:[%s2025_s1 + $0x1c0] ss:$8 sps:$4 sm:$0xff]  }
  0x39   :  { %1038 = vmatprep.subr.bf16.mxu0 %v1397_v61  ;;  %v1486_v61 = vld [vmem:[%s2025_s1 + $0x3c0] ss:$8 sps:$4 sm:$0xff]  }
  0x3b   :  { %957 = vmatpush1.bf16.msra.mxu1 %v1399_v62  ;;  %v1491_v62 = vld [vmem:[%s2025_s1 + $0x1d4] ss:$8 sps:$4 sm:$0xff]  }
  0x3c   :  { %1039 = vmatpush1.bf16.msra.mxu0 %v1400_v63  ;;  %958 = vmatprep.subr.bf16.mxu1 %v1401_v0  ;;  %v1494_v63 = vld [vmem:[%s2025_s1 + $0x3d4] ss:$8 sps:$4 sm:$0xff]   ;;  %v1489_v0 = vld [vmem:[%s2025_s1 + $0x1d0] ss:$8 sps:$4 sm:$0xff]  }
  0x3d   :  { %1040 = vmatprep.subr.bf16.mxu0 %v1403_v1  ;;  %v1492_v1 = vld [vmem:[%s2025_s1 + $0x3d0] ss:$8 sps:$4 sm:$0xff]  }
  0x3f   :  { %959 = vmatpush1.bf16.msra.mxu1 %v1405_v2  ;;  %v1497_v2 = vld [vmem:[%s2025_s1 + $0x1e4] ss:$8 sps:$4 sm:$0xff]  }
  0x40   :  { %1041 = vmatpush1.bf16.msra.mxu0 %v1406_v3  ;;  %969 = vmatprep.subr.bf16.mxu1 %v1411_v4  ;;  %v1500_v3 = vld [vmem:[%s2025_s1 + $0x3e4] ss:$8 sps:$4 sm:$0xff]   ;;  %v1495_v4 = vld [vmem:[%s2025_s1 + $0x1e0] ss:$8 sps:$4 sm:$0xff]  }
  0x41   :  { %1051 = vmatprep.subr.bf16.mxu0 %v1416_v5  ;;  %v1498_v5 = vld [vmem:[%s2025_s1 + $0x3e0] ss:$8 sps:$4 sm:$0xff]  }
  0x42   :  { %961 = vmatmul.mubr.bf16.vlgmr.msra.gmra.mrb[0].mxu1 %v1141_v6  ;;  %v1503_v6 = vld [vmem:[%s2025_s1 + $0x1f4] ss:$8 sps:$4 sm:$0xff]  }
  0x43   :  { %1043 = vmatmul.mubr.bf16.vlgmr.msra.gmra.mrb[0].mxu0 %v1145_v7  ;;  %970 = vmatpush1.bf16.msra.mxu1 %v1409_v8  ;;  %v1506_v7 = vld [vmem:[%s2025_s1 + $0x3f4] ss:$8 sps:$4 sm:$0xff]   ;;  %v1501_v8 = vld [vmem:[%s2025_s1 + $0x1f0] ss:$8 sps:$4 sm:$0xff]  }
  0x44   :  { %1052 = vmatpush1.bf16.msra.mxu0 %v1414_v9  ;;  %971 = vmatprep.subr.bf16.mxu1 %v1419_v10  ;;  %v1504_v9 = vld [vmem:[%s2025_s1 + $0x3f0] ss:$8 sps:$4 sm:$0xff]   ;;  %v1513_v10 = vld [vmem:[%s2025_s1 + $0x404] ss:$8 sps:$4 sm:$0xff]  }
  0x45   :  { %1053 = vmatprep.subr.bf16.mxu0 %v1422_v11  ;;  %1001 = vmatprep.mubr.bf16.mxu1 %v1144_v36  ;;  %v1143_v11 = vcombine.low %v1836_v32, %v1836_v32 }
  0x46   :  { %1083 = vmatprep.mubr.bf16.mxu0 %v1148_v37  ;;  %v164_v37 = vld [vmem:[%s2027_s2] sm:$0x3] }
  0x47   :  { %972 = vmatpush1.bf16.msra.mxu1 %v1417_v12  ;;  %v1147_v12 = vcombine.low %v1841_v33, %v1841_v33 }
  0x48   :  { %1054 = vmatpush1.bf16.msra.mxu0 %v1420_v13  ;;  %973 = vmatprep.subr.bf16.mxu1 %v1425_v14  ;;  %v1511_v13 = vld [vmem:[%s2025_s1 + $0x400] ss:$8 sps:$4 sm:$0xff]   ;;  %v1516_v14 = vld [vmem:[%s2025_s1 + $0x414] ss:$8 sps:$4 sm:$0xff]  }
  0x49   :  { %1055 = vmatprep.subr.bf16.mxu0 %v1428_v15  ;;  %v1514_v15 = vld [vmem:[%s2025_s1 + $0x410] ss:$8 sps:$4 sm:$0xff]  }
  0x4b   :  { %974 = vmatpush1.bf16.msra.mxu1 %v1423_v16  ;;  %v1536_v16 = vmov 0  }
  0x4c   :  { %1056 = vmatpush1.bf16.msra.mxu0 %v1426_v17  ;;  %975 = vmatprep.subr.bf16.mxu1 %v1431_v18  ;;  %v1519_v17 = vld [vmem:[%s2025_s1 + $0x424] ss:$8 sps:$4 sm:$0xff]   ;;  %v1517_v18 = vld [vmem:[%s2025_s1 + $0x420] ss:$8 sps:$4 sm:$0xff]  }
  0x4d   :  { %1057 = vmatprep.subr.bf16.mxu0 %v1434_v19  ;;  %v1522_v19 = vld [vmem:[%s2025_s1 + $0x434] ss:$8 sps:$4 sm:$0xff]  }
  0x4f   :  { %976 = vmatpush1.bf16.msra.mxu1 %v1429_v20  ;;  %v1520_v20 = vld [vmem:[%s2025_s1 + $0x430] ss:$8 sps:$4 sm:$0xff]  }
  0x50   :  { %1058 = vmatpush1.bf16.msra.mxu0 %v1432_v21  ;;  %977 = vmatprep.subr.bf16.mxu1 %v1437_v22  ;;  %v1525_v21 = vld [vmem:[%s2025_s1 + $0x444] ss:$8 sps:$4 sm:$0xff]   ;;  %v1523_v22 = vld [vmem:[%s2025_s1 + $0x440] ss:$8 sps:$4 sm:$0xff]  }
  0x51   :  { %1059 = vmatprep.subr.bf16.mxu0 %v1440_v23  ;;  %v1528_v23 = vld [vmem:[%s2025_s1 + $0x454] ss:$8 sps:$4 sm:$0xff]  }
  0x53   :  { %978 = vmatpush1.bf16.msra.mxu1 %v1435_v24  ;;  %v1526_v24 = vld [vmem:[%s2025_s1 + $0x450] ss:$8 sps:$4 sm:$0xff]  }
  0x54   :  { %1060 = vmatpush1.bf16.msra.mxu0 %v1438_v25  ;;  %979 = vmatprep.subr.bf16.mxu1 %v1443_v26  ;;  %v1531_v25 = vld [vmem:[%s2025_s1 + $0x464] ss:$8 sps:$4 sm:$0xff]   ;;  %v1529_v26 = vld [vmem:[%s2025_s1 + $0x460] ss:$8 sps:$4 sm:$0xff]  }
  0x55   :  { %1061 = vmatprep.subr.bf16.mxu0 %v1446_v27  ;;  %v1534_v27 = vld [vmem:[%s2025_s1 + $0x474] ss:$8 sps:$4 sm:$0xff]  }
  0x57   :  { %980 = vmatpush1.bf16.msra.mxu1 %v1441_v28  ;;  %v1532_v28 = vld [vmem:[%s2025_s1 + $0x470] ss:$8 sps:$4 sm:$0xff]  }
  0x58   :  { %1062 = vmatpush1.bf16.msra.mxu0 %v1444_v29  ;;  %981 = vmatprep.subr.bf16.mxu1 %v1449_v30  ;;  %v1535_v29 = vld [vmem:[%s2026_s0 + $0x20] ss:$0 sps:$4 sm:$0xff]  }
  0x59   :  { %1063 = vmatprep.subr.bf16.mxu0 %v1452_v31 }
  0x5b   :  { %982 = vmatpush1.bf16.msra.mxu1 %v1447_v34  ;;  %v166_v34 = vlaneseq }
  0x5c   :  { %1064 = vmatpush1.bf16.msra.mxu0 %v1450_v35  ;;  %983 = vmatprep.subr.bf16.mxu1 %v1455_v38 }
  0x5d   :  { %1065 = vmatprep.subr.bf16.mxu0 %v1458_v39  ;;  %v167_v35 = vshrl.u32 %v166_v34, 7 }
  0x5f   :  { %984 = vmatpush1.bf16.msra.mxu1 %v1453_v40  ;;  %v168_v36 = vsub.s32 0, %v167_v35  ;;  %v172_v38 = vsub.s32 1, %v167_v35 }
  0x60   :  { %1066 = vmatpush1.bf16.msra.mxu0 %v1456_v41  ;;  %985 = vmatprep.subr.bf16.mxu1 %v1461_v42 }
  0x61   :  { %1067 = vmatprep.subr.bf16.mxu0 %v1464_v43  ;;  %v169_v39 = vrot.slane %v164_v37, %v168_v36  ;;  %v173_v40 = vrot.slane %v164_v37, %v172_v38 }
  0x63   :  { %986 = vmatpush1.bf16.msra.mxu1 %v1459_v44 }
  0x64   :  { %1068 = vmatpush1.bf16.msra.mxu0 %v1462_v45  ;;  %987 = vmatprep.subr.bf16.mxu1 %v1467_v46 }
  0x65   :  { %1069 = vmatprep.subr.bf16.mxu0 %v1470_v47 }
  0x67   :  { %988 = vmatpush1.bf16.msra.mxu1 %v1465_v48 }
  0x68   :  { %1070 = vmatpush1.bf16.msra.mxu0 %v1468_v49  ;;  %989 = vmatprep.subr.bf16.mxu1 %v1473_v50 }
  0x69   :  { %1071 = vmatprep.subr.bf16.mxu0 %v1476_v51 }
  0x6b   :  { %990 = vmatpush1.bf16.msra.mxu1 %v1471_v52 }
  0x6c   :  { %1072 = vmatpush1.bf16.msra.mxu0 %v1474_v53  ;;  %991 = vmatprep.subr.bf16.mxu1 %v1479_v54 }
  0x6d   :  { %1073 = vmatprep.subr.bf16.mxu0 %v1482_v55 }
  0x6f   :  { %992 = vmatpush1.bf16.msra.mxu1 %v1477_v56 }
  0x70   :  { %1074 = vmatpush1.bf16.msra.mxu0 %v1480_v57  ;;  %993 = vmatprep.subr.bf16.mxu1 %v1485_v58 }
  0x71   :  { %1075 = vmatprep.subr.bf16.mxu0 %v1488_v59 }
  0x73   :  { %994 = vmatpush1.bf16.msra.mxu1 %v1483_v60 }
  0x74   :  { %1076 = vmatpush1.bf16.msra.mxu0 %v1486_v61  ;;  %995 = vmatprep.subr.bf16.mxu1 %v1491_v62 }
  0x75   :  { %1077 = vmatprep.subr.bf16.mxu0 %v1494_v63 }
  0x77   :  { %996 = vmatpush1.bf16.msra.mxu1 %v1489_v0 }
  0x78   :  { %1078 = vmatpush1.bf16.msra.mxu0 %v1492_v1  ;;  %997 = vmatprep.subr.bf16.mxu1 %v1497_v2 }
  0x79   :  { %1079 = vmatprep.subr.bf16.mxu0 %v1500_v3 }
  0x7b   :  { %998 = vmatpush1.bf16.msra.mxu1 %v1495_v4 }
  0x7c   :  { %1080 = vmatpush1.bf16.msra.mxu0 %v1498_v5  ;;  %999 = vmatprep.subr.bf16.mxu1 %v1503_v6 }
  0x7d   :  { %1081 = vmatprep.subr.bf16.mxu0 %v1506_v7 }
  0x7f   :  { %1000 = vmatpush1.bf16.msra.mxu1 %v1501_v8 }
  0x80   :  { %1082 = vmatpush1.bf16.msra.mxu0 %v1504_v9 }
  0x81   :  { %1092 = vmatprep.subr.bf16.mxu0 %v1513_v10 }
  0x82   :  { %1002 = vmatmul.mubr.bf16.vlgmr.msra.gmra.mrb[0].mxu1 %v1143_v11 }
  0x83   :  { %1084 = vmatmul.mubr.bf16.vlgmr.msra.gmra.mrb[0].mxu0 %v1147_v12 }
  0x84   :  { %1093 = vmatpush1.bf16.msra.mxu0 %v1511_v13  ;;  %1124 = vmatprep.mubr.bf16.mxu0 %v1536_v16 }
  0x85   :  { %1094 = vmatprep.subr.bf16.mxu0 %v1516_v14 }
  0x88   :  { %1095 = vmatpush1.bf16.msra.mxu0 %v1514_v15 }
  0x89   :  { %1096 = vmatprep.subr.bf16.mxu0 %v1519_v17 }
  0x8c   :  { %1097 = vmatpush1.bf16.msra.mxu0 %v1517_v18 }
  0x8d   :  { %1098 = vmatprep.subr.bf16.mxu0 %v1522_v19 }
  0x90   :  { %1099 = vmatpush1.bf16.msra.mxu0 %v1520_v20 }
  0x91   :  { %1100 = vmatprep.subr.bf16.mxu0 %v1525_v21 }
  0x94   :  { %1101 = vmatpush1.bf16.msra.mxu0 %v1523_v22 }
  0x95   :  { %1102 = vmatprep.subr.bf16.mxu0 %v1528_v23 }
  0x98   :  { %1103 = vmatpush1.bf16.msra.mxu0 %v1526_v24 }
  0x99   :  { %1104 = vmatprep.subr.bf16.mxu0 %v1531_v25 }
  0x9c   :  { %1105 = vmatpush1.bf16.msra.mxu0 %v1529_v26 }
  0x9d   :  { %1106 = vmatprep.subr.bf16.mxu0 %v1534_v27 }
  0xa0   :  { %1107 = vmatpush1.bf16.msra.mxu0 %v1532_v28 }
  0xa3   :  { %1125 = vmatmul.mubr.bf16.vlgmr.msra.gmra.mrb[0].mxu0 %v1535_v29 }
 0x155   :  { %v1003_v30 = vpop.f32.mrb[0].mxu1 }
 0x156   :  { %v1005_v31 = vpop.f32.mrb[1].mxu1  ;;  %v1294_v41 = vadd.f32 %v1003_v30, %v169_v39 }
 0x157   :  { %v1007_v32 = vpop.f32.mrb[2].mxu1  ;;  %v1296_v42 = vadd.f32 %v1005_v31, %v173_v40 }
 0x158   :  { %v1008_v33 = vpop.f32.mrb[3].mxu1 }
 0x176   :  { %v1126_v43 = vpop.f32.mrb[0].mxu0 }
 0x177   :  { %v1295_v44 = vadd.f32 %v1294_v41, %v1126_v43  ;;  %v1128_v45 = vpop.f32.mrb[1].mxu0 }
 0x178   :  { %v1297_v46 = vadd.f32 %v1296_v42, %v1128_v45  ;;  %v1130_v47 = vpop.f32.mrb[2].mxu0 }
 0x179   :  { %v1133_v48 = vmax.f32 %v1295_v44, 0.0  ;;  %v1131_v49 = vpop.f32.mrb[3].mxu0 }
 0x17a   :  { %v1134_v50 = vmax.f32 %v1297_v46, 0.0 }
 0x17b   :  { %1135 = vst [vmem:[%s2028_s3] sm:$0xff] %v1133_v48 }
 0x17c   :  { %1136 = vst [vmem:[%s2028_s3 + $0x8] sm:$0xff] %v1134_v50 }

// kernel: resnet_basicblock_os8_forward.27
= control target key start
LH: loop header
LB: loop body
LE: loop exit
PB: predicated region body
PF: predicated region fallthrough
CT: control target
= control target key end

     0   :  { %s3939_s1 = inlined_call_operand.vmem [shape: bf16[2304,256], index: 1, kind: input, shape index: {}]   ;;  %s3940_s0 = inlined_call_operand.vmem [shape: bf16[8,2304], index: 0, kind: input, shape index: {}]   ;;  %s3941_s2 = inlined_call_operand.vmem [shape: f32[1,256], index: 2, kind: input, shape index: {}]   ;;  %s3942_s3 = inlined_call_operand.vmem [shape: f32[8,256], index: 3, kind: input, shape index: {}]   ;;  %s3943_s4 = inlined_call_operand.vmem [shape: f32[8,256], index: 4, kind: output, shape index: {}]  }
   0x1   :  { %v2516_v0 = vld [vmem:[%s3939_s1 + $0x4] ss:$8 sps:$4 sm:$0xff]   ;;  %v2518_v1 = vld [vmem:[%s3939_s1] ss:$8 sps:$4 sm:$0xff]   ;;  %v2522_v4 = vld [vmem:[%s3939_s1 + $0x14] ss:$8 sps:$4 sm:$0xff]  }
   0x2   :  { %1829 = vmatprep.subr.bf16.mxu0 %v2516_v0  ;;  %v2519_v2 = vld [vmem:[%s3939_s1 + $0x104] ss:$8 sps:$4 sm:$0xff]   ;;  %v2521_v3 = vld [vmem:[%s3939_s1 + $0x100] ss:$8 sps:$4 sm:$0xff]   ;;  %v2524_v5 = vld [vmem:[%s3939_s1 + $0x10] ss:$8 sps:$4 sm:$0xff]  }
   0x3   :  { %1830 = vmatpush1.bf16.msra.mxu0 %v2518_v1  ;;  %1870 = vmatprep.subr.bf16.mxu1 %v2519_v2  ;;  %v2525_v6 = vld [vmem:[%s3939_s1 + $0x114] ss:$8 sps:$4 sm:$0xff]   ;;  %v2527_v7 = vld [vmem:[%s3939_s1 + $0x110] ss:$8 sps:$4 sm:$0xff]   ;;  %v2528_v8 = vld [vmem:[%s3939_s1 + $0x24] ss:$8 sps:$4 sm:$0xff]  }
   0x4   :  { %1871 = vmatpush1.bf16.msra.mxu1 %v2521_v3  ;;  %1831 = vmatprep.subr.bf16.mxu0 %v2522_v4  ;;  %v2530_v9 = vld [vmem:[%s3939_s1 + $0x20] ss:$8 sps:$4 sm:$0xff]   ;;  %v2531_v10 = vld [vmem:[%s3939_s1 + $0x124] ss:$8 sps:$4 sm:$0xff]   ;;  %v2534_v11 = vld [vmem:[%s3939_s1 + $0x34] ss:$8 sps:$4 sm:$0xff]  }
   0x5   :  { %1872 = vmatprep.subr.bf16.mxu1 %v2525_v6  ;;  %v2533_v12 = vld [vmem:[%s3939_s1 + $0x120] ss:$8 sps:$4 sm:$0xff]   ;;  %v2537_v13 = vld [vmem:[%s3939_s1 + $0x134] ss:$8 sps:$4 sm:$0xff]   ;;  %v2536_v14 = vld [vmem:[%s3939_s1 + $0x30] ss:$8 sps:$4 sm:$0xff]  }
   0x6   :  { %v2540_v15 = vld [vmem:[%s3939_s1 + $0x44] ss:$8 sps:$4 sm:$0xff]   ;;  %v2539_v16 = vld [vmem:[%s3939_s1 + $0x130] ss:$8 sps:$4 sm:$0xff]   ;;  %v2542_v18 = vld [vmem:[%s3939_s1 + $0x40] ss:$8 sps:$4 sm:$0xff]  }
   0x7   :  { %1832 = vmatpush1.bf16.msra.mxu0 %v2524_v5  ;;  %v2543_v17 = vld [vmem:[%s3939_s1 + $0x144] ss:$8 sps:$4 sm:$0xff]   ;;  %v2546_v19 = vld [vmem:[%s3939_s1 + $0x54] ss:$8 sps:$4 sm:$0xff]   ;;  %v2545_v20 = vld [vmem:[%s3939_s1 + $0x140] ss:$8 sps:$4 sm:$0xff]  }
   0x8   :  { %1833 = vmatprep.subr.bf16.mxu0 %v2528_v8  ;;  %1873 = vmatpush1.bf16.msra.mxu1 %v2527_v7  ;;  %v2549_v21 = vld [vmem:[%s3939_s1 + $0x154] ss:$8 sps:$4 sm:$0xff]   ;;  %v2548_v22 = vld [vmem:[%s3939_s1 + $0x50] ss:$8 sps:$4 sm:$0xff]   ;;  %v2552_v23 = vld [vmem:[%s3939_s1 + $0x64] ss:$8 sps:$4 sm:$0xff]  }
   0x9   :  { %1874 = vmatprep.subr.bf16.mxu1 %v2531_v10  ;;  %v2551_v24 = vld [vmem:[%s3939_s1 + $0x150] ss:$8 sps:$4 sm:$0xff]   ;;  %v2555_v25 = vld [vmem:[%s3939_s1 + $0x164] ss:$8 sps:$4 sm:$0xff]   ;;  %v2554_v26 = vld [vmem:[%s3939_s1 + $0x60] ss:$8 sps:$4 sm:$0xff]  }
   0xa   :  { %v2558_v27 = vld [vmem:[%s3939_s1 + $0x74] ss:$8 sps:$4 sm:$0xff]   ;;  %v2557_v28 = vld [vmem:[%s3939_s1 + $0x160] ss:$8 sps:$4 sm:$0xff]   ;;  %v2560_v30 = vld [vmem:[%s3939_s1 + $0x70] ss:$8 sps:$4 sm:$0xff]  }
   0xb   :  { %1834 = vmatpush1.bf16.msra.mxu0 %v2530_v9  ;;  %v2561_v29 = vld [vmem:[%s3939_s1 + $0x174] ss:$8 sps:$4 sm:$0xff]   ;;  %v2564_v31 = vld [vmem:[%s3939_s1 + $0x84] ss:$8 sps:$4 sm:$0xff]   ;;  %v2563_v32 = vld [vmem:[%s3939_s1 + $0x170] ss:$8 sps:$4 sm:$0xff]  }
   0xc   :  { %1835 = vmatprep.subr.bf16.mxu0 %v2534_v11  ;;  %1875 = vmatpush1.bf16.msra.mxu1 %v2533_v12  ;;  %v2567_v33 = vld [vmem:[%s3939_s1 + $0x184] ss:$8 sps:$4 sm:$0xff]   ;;  %v2566_v34 = vld [vmem:[%s3939_s1 + $0x80] ss:$8 sps:$4 sm:$0xff]   ;;  %v2570_v35 = vld [vmem:[%s3939_s1 + $0x94] ss:$8 sps:$4 sm:$0xff]  }
   0xd   :  { %1876 = vmatprep.subr.bf16.mxu1 %v2537_v13  ;;  %v2569_v36 = vld [vmem:[%s3939_s1 + $0x180] ss:$8 sps:$4 sm:$0xff]   ;;  %v2573_v37 = vld [vmem:[%s3939_s1 + $0x194] ss:$8 sps:$4 sm:$0xff]   ;;  %v2572_v38 = vld [vmem:[%s3939_s1 + $0x90] ss:$8 sps:$4 sm:$0xff]  }
   0xe   :  { %v2576_v39 = vld [vmem:[%s3939_s1 + $0xa4] ss:$8 sps:$4 sm:$0xff]   ;;  %v2575_v40 = vld [vmem:[%s3939_s1 + $0x190] ss:$8 sps:$4 sm:$0xff]   ;;  %v2578_v42 = vld [vmem:[%s3939_s1 + $0xa0] ss:$8 sps:$4 sm:$0xff]  }
   0xf   :  { %1836 = vmatpush1.bf16.msra.mxu0 %v2536_v14  ;;  %v2579_v41 = vld [vmem:[%s3939_s1 + $0x1a4] ss:$8 sps:$4 sm:$0xff]   ;;  %v2582_v43 = vld [vmem:[%s3939_s1 + $0xb4] ss:$8 sps:$4 sm:$0xff]   ;;  %v2581_v44 = vld [vmem:[%s3939_s1 + $0x1a0] ss:$8 sps:$4 sm:$0xff]  }
  0x10   :  { %1837 = vmatprep.subr.bf16.mxu0 %v2540_v15  ;;  %1877 = vmatpush1.bf16.msra.mxu1 %v2539_v16  ;;  %v2585_v45 = vld [vmem:[%s3939_s1 + $0x1b4] ss:$8 sps:$4 sm:$0xff]   ;;  %v17_v46 = vld [vmem:[%s3940_s0] sm:$0xff]  ;;  %v2584_v47 = vld [vmem:[%s3939_s1 + $0xb0] ss:$8 sps:$4 sm:$0xff]  }
  0x11   :  { %1878 = vmatprep.subr.bf16.mxu1 %v2543_v17  ;;  %v2211_v48 = vcombine.high %v17_v46, %v17_v46  ;;  %v2588_v49 = vld [vmem:[%s3939_s1 + $0xc4] ss:$8 sps:$4 sm:$0xff]   ;;  %v2587_v51 = vld [vmem:[%s3939_s1 + $0x1b0] ss:$8 sps:$4 sm:$0xff]   ;;  %v2590_v54 = vld [vmem:[%s3939_s1 + $0xc0] ss:$8 sps:$4 sm:$0xff]   ;;  %v2210_v5 = vcombine.low %v17_v46, %v17_v46 }
  0x12   :  { %v18_v50 = vld [vmem:[%s3940_s0 + $0x8] sm:$0xff]  ;;  %v2594_v55 = vld [vmem:[%s3939_s1 + $0xd4] ss:$8 sps:$4 sm:$0xff]   ;;  %v2596_v58 = vld [vmem:[%s3939_s1 + $0xd0] ss:$8 sps:$4 sm:$0xff]  }
  0x13   :  { %1838 = vmatpush1.bf16.msra.mxu0 %v2542_v18  ;;  %1861 = vmatprep.mubr.bf16.mxu0 %v2211_v48  ;;  %v2213_v52 = vcombine.high %v18_v50, %v18_v50  ;;  %v2591_v53 = vld [vmem:[%s3939_s1 + $0x1c4] ss:$8 sps:$4 sm:$0xff]   ;;  %v2593_v56 = vld [vmem:[%s3939_s1 + $0x1c0] ss:$8 sps:$4 sm:$0xff]   ;;  %v2597_v57 = vld [vmem:[%s3939_s1 + $0x1d4] ss:$8 sps:$4 sm:$0xff]   ;;  %v2212_v8 = vcombine.low %v18_v50, %v18_v50 }
  0x14   :  { %1839 = vmatprep.subr.bf16.mxu0 %v2546_v19  ;;  %1879 = vmatpush1.bf16.msra.mxu1 %v2545_v20  ;;  %v2600_v59 = vld [vmem:[%s3939_s1 + $0xe4] ss:$8 sps:$4 sm:$0xff]   ;;  %v2599_v60 = vld [vmem:[%s3939_s1 + $0x1d0] ss:$8 sps:$4 sm:$0xff]   ;;  %v2602_v62 = vld [vmem:[%s3939_s1 + $0xe0] ss:$8 sps:$4 sm:$0xff]  }
  0x15   :  { %1880 = vmatprep.subr.bf16.mxu1 %v2549_v21  ;;  %1902 = vmatprep.mubr.bf16.mxu1 %v2213_v52  ;;  %v2603_v61 = vld [vmem:[%s3939_s1 + $0x1e4] ss:$8 sps:$4 sm:$0xff]   ;;  %v2606_v63 = vld [vmem:[%s3939_s1 + $0xf4] ss:$8 sps:$4 sm:$0xff]   ;;  %v2605_v0 = vld [vmem:[%s3939_s1 + $0x1e0] ss:$8 sps:$4 sm:$0xff]  }
  0x16   :  { %v2609_v1 = vld [vmem:[%s3939_s1 + $0x1f4] ss:$8 sps:$4 sm:$0xff]   ;;  %v2608_v2 = vld [vmem:[%s3939_s1 + $0xf0] ss:$8 sps:$4 sm:$0xff]   ;;  %v2616_v3 = vld [vmem:[%s3939_s1 + $0x204] ss:$8 sps:$4 sm:$0xff]  }
  0x17   :  { %1840 = vmatpush1.bf16.msra.mxu0 %v2548_v22  ;;  %v2613_v4 = vld [vmem:[%s3939_s1 + $0x1f0] ss:$8 sps:$4 sm:$0xff]   ;;  %v2621_v6 = vld [vmem:[%s3939_s1 + $0x304] ss:$8 sps:$4 sm:$0xff]   ;;  %v2614_v7 = vld [vmem:[%s3939_s1 + $0x200] ss:$8 sps:$4 sm:$0xff]  }
  0x18   :  { %1841 = vmatprep.subr.bf16.mxu0 %v2552_v23  ;;  %1881 = vmatpush1.bf16.msra.mxu1 %v2551_v24  ;;  %v2624_v9 = vld [vmem:[%s3939_s1 + $0x214] ss:$8 sps:$4 sm:$0xff]   ;;  %v2619_v10 = vld [vmem:[%s3939_s1 + $0x300] ss:$8 sps:$4 sm:$0xff]   ;;  %v2622_v12 = vld [vmem:[%s3939_s1 + $0x210] ss:$8 sps:$4 sm:$0xff]  }
  0x19   :  { %1882 = vmatprep.subr.bf16.mxu1 %v2555_v25  ;;  %v2627_v11 = vld [vmem:[%s3939_s1 + $0x314] ss:$8 sps:$4 sm:$0xff]   ;;  %v2630_v13 = vld [vmem:[%s3939_s1 + $0x224] ss:$8 sps:$4 sm:$0xff]   ;;  %v2625_v14 = vld [vmem:[%s3939_s1 + $0x310] ss:$8 sps:$4 sm:$0xff]  }
  0x1a   :  { %v2633_v15 = vld [vmem:[%s3939_s1 + $0x324] ss:$8 sps:$4 sm:$0xff]   ;;  %v2628_v16 = vld [vmem:[%s3939_s1 + $0x220] ss:$8 sps:$4 sm:$0xff]   ;;  %v2636_v17 = vld [vmem:[%s3939_s1 + $0x234] ss:$8 sps:$4 sm:$0xff]  }
  0x1b   :  { %1842 = vmatpush1.bf16.msra.mxu0 %v2554_v26  ;;  %v2631_v18 = vld [vmem:[%s3939_s1 + $0x320] ss:$8 sps:$4 sm:$0xff]   ;;  %v2639_v19 = vld [vmem:[%s3939_s1 + $0x334] ss:$8 sps:$4 sm:$0xff]   ;;  %v2634_v20 = vld [vmem:[%s3939_s1 + $0x230] ss:$8 sps:$4 sm:$0xff]  }
  0x1c   :  { %1843 = vmatprep.subr.bf16.mxu0 %v2558_v27  ;;  %1883 = vmatpush1.bf16.msra.mxu1 %v2557_v28  ;;  %v2642_v21 = vld [vmem:[%s3939_s1 + $0x244] ss:$8 sps:$4 sm:$0xff]   ;;  %v2637_v22 = vld [vmem:[%s3939_s1 + $0x330] ss:$8 sps:$4 sm:$0xff]   ;;  %v2640_v24 = vld [vmem:[%s3939_s1 + $0x240] ss:$8 sps:$4 sm:$0xff]  }
  0x1d   :  { %1884 = vmatprep.subr.bf16.mxu1 %v2561_v29  ;;  %v2645_v23 = vld [vmem:[%s3939_s1 + $0x344] ss:$8 sps:$4 sm:$0xff]   ;;  %v2648_v25 = vld [vmem:[%s3939_s1 + $0x254] ss:$8 sps:$4 sm:$0xff]   ;;  %v2643_v26 = vld [vmem:[%s3939_s1 + $0x340] ss:$8 sps:$4 sm:$0xff]  }
  0x1e   :  { %v2651_v27 = vld [vmem:[%s3939_s1 + $0x354] ss:$8 sps:$4 sm:$0xff]   ;;  %v2646_v28 = vld [vmem:[%s3939_s1 + $0x250] ss:$8 sps:$4 sm:$0xff]   ;;  %v2654_v29 = vld [vmem:[%s3939_s1 + $0x264] ss:$8 sps:$4 sm:$0xff]  }
  0x1f   :  { %1844 = vmatpush1.bf16.msra.mxu0 %v2560_v30  ;;  %v2649_v30 = vld [vmem:[%s3939_s1 + $0x350] ss:$8 sps:$4 sm:$0xff]   ;;  %v2667_v46 = vld [vmem:[%s3939_s1 + $0x380] ss:$8 sps:$4 sm:$0xff]  }
  0x20   :  { %1845 = vmatprep.subr.bf16.mxu0 %v2564_v31  ;;  %1885 = vmatpush1.bf16.msra.mxu1 %v2563_v32  ;;  %v2657_v31 = vld [vmem:[%s3939_s1 + $0x364] ss:$8 sps:$4 sm:$0xff]   ;;  %v3270_v32 = vld [vmem:[%s3940_s0 + $0x10] sm:$0xff]  ;;  %v2676_v52 = vld [vmem:[%s3939_s1 + $0x2a0] ss:$8 sps:$4 sm:$0xff]  }
  0x21   :  { %1886 = vmatprep.subr.bf16.mxu1 %v2567_v33  ;;  %v2652_v33 = vld [vmem:[%s3939_s1 + $0x260] ss:$8 sps:$4 sm:$0xff]   ;;  %v2670_v48 = vld [vmem:[%s3939_s1 + $0x290] ss:$8 sps:$4 sm:$0xff]  }
  0x22   :  { %v2673_v50 = vld [vmem:[%s3939_s1 + $0x390] ss:$8 sps:$4 sm:$0xff]  }
  0x23   :  { %1846 = vmatpush1.bf16.msra.mxu0 %v2566_v34  ;;  %v2215_v34 = vcombine.high %v3270_v32, %v3270_v32 }
  0x24   :  { %1847 = vmatprep.subr.bf16.mxu0 %v2570_v35  ;;  %1887 = vmatpush1.bf16.msra.mxu1 %v2569_v36  ;;  %v3280_v35 = vld [vmem:[%s3940_s0 + $0x18] sm:$0xff] }
  0x25   :  { %1888 = vmatprep.subr.bf16.mxu1 %v2573_v37  ;;  %v2660_v36 = vld [vmem:[%s3939_s1 + $0x274] ss:$8 sps:$4 sm:$0xff]   ;;  %v2217_v37 = vcombine.high %v3280_v35, %v3280_v35 }
  0x27   :  { %1848 = vmatpush1.bf16.msra.mxu0 %v2572_v38  ;;  %v2655_v38 = vld [vmem:[%s3939_s1 + $0x360] ss:$8 sps:$4 sm:$0xff]  }
  0x28   :  { %1849 = vmatprep.subr.bf16.mxu0 %v2576_v39  ;;  %1889 = vmatpush1.bf16.msra.mxu1 %v2575_v40  ;;  %v2663_v39 = vld [vmem:[%s3939_s1 + $0x374] ss:$8 sps:$4 sm:$0xff]   ;;  %v2658_v40 = vld [vmem:[%s3939_s1 + $0x270] ss:$8 sps:$4 sm:$0xff]  }
  0x29   :  { %1890 = vmatprep.subr.bf16.mxu1 %v2579_v41  ;;  %v2666_v41 = vld [vmem:[%s3939_s1 + $0x284] ss:$8 sps:$4 sm:$0xff]  }
  0x2b   :  { %1850 = vmatpush1.bf16.msra.mxu0 %v2578_v42  ;;  %v2661_v42 = vld [vmem:[%s3939_s1 + $0x370] ss:$8 sps:$4 sm:$0xff]  }
  0x2c   :  { %1851 = vmatprep.subr.bf16.mxu0 %v2582_v43  ;;  %1891 = vmatpush1.bf16.msra.mxu1 %v2581_v44  ;;  %v2669_v43 = vld [vmem:[%s3939_s1 + $0x384] ss:$8 sps:$4 sm:$0xff]   ;;  %v2664_v44 = vld [vmem:[%s3939_s1 + $0x280] ss:$8 sps:$4 sm:$0xff]  }
  0x2d   :  { %1892 = vmatprep.subr.bf16.mxu1 %v2585_v45  ;;  %v2672_v45 = vld [vmem:[%s3939_s1 + $0x294] ss:$8 sps:$4 sm:$0xff]  }
  0x2f   :  { %1852 = vmatpush1.bf16.msra.mxu0 %v2584_v47  ;;  %v2675_v47 = vld [vmem:[%s3939_s1 + $0x394] ss:$8 sps:$4 sm:$0xff]  }
  0x30   :  { %1853 = vmatprep.subr.bf16.mxu0 %v2588_v49  ;;  %1893 = vmatpush1.bf16.msra.mxu1 %v2587_v51  ;;  %v2678_v49 = vld [vmem:[%s3939_s1 + $0x2a4] ss:$8 sps:$4 sm:$0xff]  }
  0x31   :  { %1894 = vmatprep.subr.bf16.mxu1 %v2591_v53  ;;  %v2681_v51 = vld [vmem:[%s3939_s1 + $0x3a4] ss:$8 sps:$4 sm:$0xff]   ;;  %v2684_v53 = vld [vmem:[%s3939_s1 + $0x2b4] ss:$8 sps:$4 sm:$0xff]  }
  0x33   :  { %1854 = vmatpush1.bf16.msra.mxu0 %v2590_v54  ;;  %v2679_v54 = vld [vmem:[%s3939_s1 + $0x3a0] ss:$8 sps:$4 sm:$0xff]  }
  0x34   :  { %1855 = vmatprep.subr.bf16.mxu0 %v2594_v55  ;;  %1895 = vmatpush1.bf16.msra.mxu1 %v2593_v56  ;;  %v2687_v55 = vld [vmem:[%s3939_s1 + $0x3b4] ss:$8 sps:$4 sm:$0xff]   ;;  %v2682_v56 = vld [vmem:[%s3939_s1 + $0x2b0] ss:$8 sps:$4 sm:$0xff]  }
  0x35   :  { %1896 = vmatprep.subr.bf16.mxu1 %v2597_v57  ;;  %v2690_v57 = vld [vmem:[%s3939_s1 + $0x2c4] ss:$8 sps:$4 sm:$0xff]  }
  0x37   :  { %1856 = vmatpush1.bf16.msra.mxu0 %v2596_v58  ;;  %v2685_v58 = vld [vmem:[%s3939_s1 + $0x3b0] ss:$8 sps:$4 sm:$0xff]  }
  0x38   :  { %1857 = vmatprep.subr.bf16.mxu0 %v2600_v59  ;;  %1897 = vmatpush1.bf16.msra.mxu1 %v2599_v60  ;;  %v2693_v59 = vld [vmem:[%s3939_s1 + $0x3c4] ss:$8 sps:$4 sm:$0xff]   ;;  %v2688_v60 = vld [vmem:[%s3939_s1 + $0x2c0] ss:$8 sps:$4 sm:$0xff]  }
  0x39   :  { %1898 = vmatprep.subr.bf16.mxu1 %v2603_v61  ;;  %v2696_v61 = vld [vmem:[%s3939_s1 + $0x2d4] ss:$8 sps:$4 sm:$0xff]  }
  0x3b   :  { %1858 = vmatpush1.bf16.msra.mxu0 %v2602_v62  ;;  %v2691_v62 = vld [vmem:[%s3939_s1 + $0x3c0] ss:$8 sps:$4 sm:$0xff]  }
  0x3c   :  { %1859 = vmatprep.subr.bf16.mxu0 %v2606_v63  ;;  %1899 = vmatpush1.bf16.msra.mxu1 %v2605_v0  ;;  %v2699_v63 = vld [vmem:[%s3939_s1 + $0x3d4] ss:$8 sps:$4 sm:$0xff]   ;;  %v2694_v0 = vld [vmem:[%s3939_s1 + $0x2d0] ss:$8 sps:$4 sm:$0xff]  }
  0x3d   :  { %1900 = vmatprep.subr.bf16.mxu1 %v2609_v1  ;;  %v2702_v1 = vld [vmem:[%s3939_s1 + $0x2e4] ss:$8 sps:$4 sm:$0xff]  }
  0x3f   :  { %1860 = vmatpush1.bf16.msra.mxu0 %v2608_v2  ;;  %v2697_v2 = vld [vmem:[%s3939_s1 + $0x3d0] ss:$8 sps:$4 sm:$0xff]  }
  0x40   :  { %1911 = vmatprep.subr.bf16.mxu0 %v2616_v3  ;;  %1901 = vmatpush1.bf16.msra.mxu1 %v2613_v4  ;;  %v2705_v3 = vld [vmem:[%s3939_s1 + $0x3e4] ss:$8 sps:$4 sm:$0xff]   ;;  %v2700_v4 = vld [vmem:[%s3939_s1 + $0x2e0] ss:$8 sps:$4 sm:$0xff]  }
  0x41   :  { %1952 = vmatprep.subr.bf16.mxu1 %v2621_v6  ;;  %v2703_v6 = vld [vmem:[%s3939_s1 + $0x3e0] ss:$8 sps:$4 sm:$0xff]  }
  0x42   :  { %1862 = vmatmul.mubr.bf16.vlgmr.msra.gmra.mrb[0].mxu0 %v2210_v5  ;;  %v2708_v5 = vld [vmem:[%s3939_s1 + $0x2f4] ss:$8 sps:$4 sm:$0xff]  }
  0x43   :  { %1912 = vmatpush1.bf16.msra.mxu0 %v2614_v7  ;;  %1903 = vmatmul.mubr.bf16.vlgmr.msra.gmra.mrb[0].mxu1 %v2212_v8  ;;  %v2711_v7 = vld [vmem:[%s3939_s1 + $0x3f4] ss:$8 sps:$4 sm:$0xff]   ;;  %v2706_v8 = vld [vmem:[%s3939_s1 + $0x2f0] ss:$8 sps:$4 sm:$0xff]  }
  0x44   :  { %1913 = vmatprep.subr.bf16.mxu0 %v2624_v9  ;;  %1953 = vmatpush1.bf16.msra.mxu1 %v2619_v10  ;;  %v2716_v9 = vld [vmem:[%s3939_s1 + $0x404] ss:$8 sps:$4 sm:$0xff]   ;;  %v2709_v10 = vld [vmem:[%s3939_s1 + $0x3f0] ss:$8 sps:$4 sm:$0xff]  }
  0x45   :  { %1954 = vmatprep.subr.bf16.mxu1 %v2627_v11  ;;  %1943 = vmatprep.mubr.bf16.mxu0 %v2215_v34  ;;  %v2214_v11 = vcombine.low %v3270_v32, %v3270_v32  ;;  %v2737_v32 = vld [vmem:[%s3939_s1 + $0x530] ss:$8 sps:$4 sm:$0xff]   ;;  %v2740_v34 = vld [vmem:[%s3939_s1 + $0x440] ss:$8 sps:$4 sm:$0xff]  }
  0x46   :  { %1984 = vmatprep.mubr.bf16.mxu1 %v2217_v37  ;;  %v2751_v37 = vld [vmem:[%s3939_s1 + $0x554] ss:$8 sps:$4 sm:$0xff]  }
  0x47   :  { %1914 = vmatpush1.bf16.msra.mxu0 %v2622_v12  ;;  %v2721_v12 = vld [vmem:[%s3939_s1 + $0x504] ss:$8 sps:$4 sm:$0xff]  }
  0x48   :  { %1915 = vmatprep.subr.bf16.mxu0 %v2630_v13  ;;  %1955 = vmatpush1.bf16.msra.mxu1 %v2625_v14  ;;  %v2714_v13 = vld [vmem:[%s3939_s1 + $0x400] ss:$8 sps:$4 sm:$0xff]   ;;  %v2216_v14 = vcombine.low %v3280_v35, %v3280_v35  ;;  %v2748_v35 = vld [vmem:[%s3939_s1 + $0x454] ss:$8 sps:$4 sm:$0xff]  }
  0x49   :  { %1956 = vmatprep.subr.bf16.mxu1 %v2633_v15  ;;  %v2724_v15 = vld [vmem:[%s3939_s1 + $0x414] ss:$8 sps:$4 sm:$0xff]  }
  0x4b   :  { %1916 = vmatpush1.bf16.msra.mxu0 %v2628_v16  ;;  %v2719_v16 = vld [vmem:[%s3939_s1 + $0x500] ss:$8 sps:$4 sm:$0xff]  }
  0x4c   :  { %1917 = vmatprep.subr.bf16.mxu0 %v2636_v17  ;;  %1957 = vmatpush1.bf16.msra.mxu1 %v2631_v18  ;;  %v3417_v17 = vld [vmem:[%s3940_s0 + $0x20] sm:$0xff]  ;;  %v2722_v18 = vld [vmem:[%s3939_s1 + $0x410] ss:$8 sps:$4 sm:$0xff]  }
  0x4d   :  { %1958 = vmatprep.subr.bf16.mxu1 %v2639_v19  ;;  %v2727_v19 = vld [vmem:[%s3939_s1 + $0x514] ss:$8 sps:$4 sm:$0xff]  }
  0x4f   :  { %1918 = vmatpush1.bf16.msra.mxu0 %v2634_v20  ;;  %v2219_v20 = vcombine.high %v3417_v17, %v3417_v17 }
  0x50   :  { %1919 = vmatprep.subr.bf16.mxu0 %v2642_v21  ;;  %1959 = vmatpush1.bf16.msra.mxu1 %v2637_v22  ;;  %v3430_v21 = vld [vmem:[%s3940_s0 + $0x28] sm:$0xff] }
  0x51   :  { %1960 = vmatprep.subr.bf16.mxu1 %v2645_v23  ;;  %v2730_v22 = vld [vmem:[%s3939_s1 + $0x424] ss:$8 sps:$4 sm:$0xff]   ;;  %v2221_v23 = vcombine.high %v3430_v21, %v3430_v21 }
  0x53   :  { %1920 = vmatpush1.bf16.msra.mxu0 %v2640_v24  ;;  %v2725_v24 = vld [vmem:[%s3939_s1 + $0x510] ss:$8 sps:$4 sm:$0xff]  }
  0x54   :  { %1921 = vmatprep.subr.bf16.mxu0 %v2648_v25  ;;  %1961 = vmatpush1.bf16.msra.mxu1 %v2643_v26  ;;  %v2733_v25 = vld [vmem:[%s3939_s1 + $0x524] ss:$8 sps:$4 sm:$0xff]   ;;  %v2728_v26 = vld [vmem:[%s3939_s1 + $0x420] ss:$8 sps:$4 sm:$0xff]  }
  0x55   :  { %1962 = vmatprep.subr.bf16.mxu1 %v2651_v27  ;;  %v2736_v27 = vld [vmem:[%s3939_s1 + $0x434] ss:$8 sps:$4 sm:$0xff]  }
  0x57   :  { %1922 = vmatpush1.bf16.msra.mxu0 %v2646_v28  ;;  %v2731_v28 = vld [vmem:[%s3939_s1 + $0x520] ss:$8 sps:$4 sm:$0xff]  }
  0x58   :  { %1923 = vmatprep.subr.bf16.mxu0 %v2654_v29  ;;  %1963 = vmatpush1.bf16.msra.mxu1 %v2649_v30  ;;  %v2739_v29 = vld [vmem:[%s3939_s1 + $0x534] ss:$8 sps:$4 sm:$0xff]   ;;  %v2734_v30 = vld [vmem:[%s3939_s1 + $0x430] ss:$8 sps:$4 sm:$0xff]  }
  0x59   :  { %1964 = vmatprep.subr.bf16.mxu1 %v2657_v31  ;;  %v2742_v31 = vld [vmem:[%s3939_s1 + $0x444] ss:$8 sps:$4 sm:$0xff]  }
  0x5b   :  { %1924 = vmatpush1.bf16.msra.mxu0 %v2652_v33  ;;  %v2745_v33 = vld [vmem:[%s3939_s1 + $0x544] ss:$8 sps:$4 sm:$0xff]  }
  0x5c   :  { %1925 = vmatprep.subr.bf16.mxu0 %v2660_v36  ;;  %1965 = vmatpush1.bf16.msra.mxu1 %v2655_v38  ;;  %v2743_v36 = vld [vmem:[%s3939_s1 + $0x540] ss:$8 sps:$4 sm:$0xff]   ;;  %v2746_v38 = vld [vmem:[%s3939_s1 + $0x450] ss:$8 sps:$4 sm:$0xff]  }
  0x5d   :  { %1966 = vmatprep.subr.bf16.mxu1 %v2663_v39  ;;  %v2754_v39 = vld [vmem:[%s3939_s1 + $0x464] ss:$8 sps:$4 sm:$0xff]  }
  0x5f   :  { %1926 = vmatpush1.bf16.msra.mxu0 %v2658_v40  ;;  %v2749_v40 = vld [vmem:[%s3939_s1 + $0x550] ss:$8 sps:$4 sm:$0xff]  }
  0x60   :  { %1927 = vmatprep.subr.bf16.mxu0 %v2666_v41  ;;  %1967 = vmatpush1.bf16.msra.mxu1 %v2661_v42  ;;  %v2757_v41 = vld [vmem:[%s3939_s1 + $0x564] ss:$8 sps:$4 sm:$0xff]   ;;  %v2752_v42 = vld [vmem:[%s3939_s1 + $0x460] ss:$8 sps:$4 sm:$0xff]  }
  0x61   :  { %1968 = vmatprep.subr.bf16.mxu1 %v2669_v43  ;;  %v2760_v43 = vld [vmem:[%s3939_s1 + $0x474] ss:$8 sps:$4 sm:$0xff]  }
  0x63   :  { %1928 = vmatpush1.bf16.msra.mxu0 %v2664_v44  ;;  %v2755_v44 = vld [vmem:[%s3939_s1 + $0x560] ss:$8 sps:$4 sm:$0xff]  }
  0x64   :  { %1929 = vmatprep.subr.bf16.mxu0 %v2672_v45  ;;  %1969 = vmatpush1.bf16.msra.mxu1 %v2667_v46  ;;  %v2763_v45 = vld [vmem:[%s3939_s1 + $0x574] ss:$8 sps:$4 sm:$0xff]   ;;  %v2758_v46 = vld [vmem:[%s3939_s1 + $0x470] ss:$8 sps:$4 sm:$0xff]  }
  0x65   :  { %1970 = vmatprep.subr.bf16.mxu1 %v2675_v47  ;;  %v2766_v47 = vld [vmem:[%s3939_s1 + $0x484] ss:$8 sps:$4 sm:$0xff]  }
  0x67   :  { %1930 = vmatpush1.bf16.msra.mxu0 %v2670_v48  ;;  %v2761_v48 = vld [vmem:[%s3939_s1 + $0x570] ss:$8 sps:$4 sm:$0xff]  }
  0x68   :  { %1931 = vmatprep.subr.bf16.mxu0 %v2678_v49  ;;  %1971 = vmatpush1.bf16.msra.mxu1 %v2673_v50  ;;  %v2769_v49 = vld [vmem:[%s3939_s1 + $0x584] ss:$8 sps:$4 sm:$0xff]   ;;  %v2764_v50 = vld [vmem:[%s3939_s1 + $0x480] ss:$8 sps:$4 sm:$0xff]  }
  0x69   :  { %1972 = vmatprep.subr.bf16.mxu1 %v2681_v51  ;;  %v2772_v51 = vld [vmem:[%s3939_s1 + $0x494] ss:$8 sps:$4 sm:$0xff]  }
  0x6b   :  { %1932 = vmatpush1.bf16.msra.mxu0 %v2676_v52  ;;  %v2767_v52 = vld [vmem:[%s3939_s1 + $0x580] ss:$8 sps:$4 sm:$0xff]  }
  0x6c   :  { %1933 = vmatprep.subr.bf16.mxu0 %v2684_v53  ;;  %1973 = vmatpush1.bf16.msra.mxu1 %v2679_v54  ;;  %v2775_v53 = vld [vmem:[%s3939_s1 + $0x594] ss:$8 sps:$4 sm:$0xff]   ;;  %v2770_v54 = vld [vmem:[%s3939_s1 + $0x490] ss:$8 sps:$4 sm:$0xff]  }
  0x6d   :  { %1974 = vmatprep.subr.bf16.mxu1 %v2687_v55  ;;  %v2778_v55 = vld [vmem:[%s3939_s1 + $0x4a4] ss:$8 sps:$4 sm:$0xff]  }
  0x6f   :  { %1934 = vmatpush1.bf16.msra.mxu0 %v2682_v56  ;;  %v2773_v56 = vld [vmem:[%s3939_s1 + $0x590] ss:$8 sps:$4 sm:$0xff]  }
  0x70   :  { %1935 = vmatprep.subr.bf16.mxu0 %v2690_v57  ;;  %1975 = vmatpush1.bf16.msra.mxu1 %v2685_v58  ;;  %v2781_v57 = vld [vmem:[%s3939_s1 + $0x5a4] ss:$8 sps:$4 sm:$0xff]   ;;  %v2776_v58 = vld [vmem:[%s3939_s1 + $0x4a0] ss:$8 sps:$4 sm:$0xff]  }
  0x71   :  { %1976 = vmatprep.subr.bf16.mxu1 %v2693_v59  ;;  %v2784_v59 = vld [vmem:[%s3939_s1 + $0x4b4] ss:$8 sps:$4 sm:$0xff]  }
  0x73   :  { %1936 = vmatpush1.bf16.msra.mxu0 %v2688_v60  ;;  %v2779_v60 = vld [vmem:[%s3939_s1 + $0x5a0] ss:$8 sps:$4 sm:$0xff]  }
  0x74   :  { %1937 = vmatprep.subr.bf16.mxu0 %v2696_v61  ;;  %1977 = vmatpush1.bf16.msra.mxu1 %v2691_v62  ;;  %v2787_v61 = vld [vmem:[%s3939_s1 + $0x5b4] ss:$8 sps:$4 sm:$0xff]   ;;  %v2782_v62 = vld [vmem:[%s3939_s1 + $0x4b0] ss:$8 sps:$4 sm:$0xff]  }
  0x75   :  { %1978 = vmatprep.subr.bf16.mxu1 %v2699_v63  ;;  %v2790_v63 = vld [vmem:[%s3939_s1 + $0x4c4] ss:$8 sps:$4 sm:$0xff]  }
  0x77   :  { %1938 = vmatpush1.bf16.msra.mxu0 %v2694_v0  ;;  %v2785_v0 = vld [vmem:[%s3939_s1 + $0x5b0] ss:$8 sps:$4 sm:$0xff]  }
  0x78   :  { %1939 = vmatprep.subr.bf16.mxu0 %v2702_v1  ;;  %1979 = vmatpush1.bf16.msra.mxu1 %v2697_v2  ;;  %v2793_v1 = vld [vmem:[%s3939_s1 + $0x5c4] ss:$8 sps:$4 sm:$0xff]   ;;  %v2788_v2 = vld [vmem:[%s3939_s1 + $0x4c0] ss:$8 sps:$4 sm:$0xff]  }
  0x79   :  { %1980 = vmatprep.subr.bf16.mxu1 %v2705_v3  ;;  %v2796_v3 = vld [vmem:[%s3939_s1 + $0x4d4] ss:$8 sps:$4 sm:$0xff]  }
  0x7b   :  { %1940 = vmatpush1.bf16.msra.mxu0 %v2700_v4  ;;  %v2791_v4 = vld [vmem:[%s3939_s1 + $0x5c0] ss:$8 sps:$4 sm:$0xff]  }
  0x7c   :  { %1941 = vmatprep.subr.bf16.mxu0 %v2708_v5  ;;  %1981 = vmatpush1.bf16.msra.mxu1 %v2703_v6  ;;  %v2799_v5 = vld [vmem:[%s3939_s1 + $0x5d4] ss:$8 sps:$4 sm:$0xff]   ;;  %v2794_v6 = vld [vmem:[%s3939_s1 + $0x4d0] ss:$8 sps:$4 sm:$0xff]  }
  0x7d   :  { %1982 = vmatprep.subr.bf16.mxu1 %v2711_v7  ;;  %v2802_v7 = vld [vmem:[%s3939_s1 + $0x4e4] ss:$8 sps:$4 sm:$0xff]  }
  0x7f   :  { %1942 = vmatpush1.bf16.msra.mxu0 %v2706_v8  ;;  %v2797_v8 = vld [vmem:[%s3939_s1 + $0x5d0] ss:$8 sps:$4 sm:$0xff]  }
  0x80   :  { %1993 = vmatprep.subr.bf16.mxu0 %v2716_v9  ;;  %1983 = vmatpush1.bf16.msra.mxu1 %v2709_v10  ;;  %v2805_v9 = vld [vmem:[%s3939_s1 + $0x5e4] ss:$8 sps:$4 sm:$0xff]   ;;  %v2800_v10 = vld [vmem:[%s3939_s1 + $0x4e0] ss:$8 sps:$4 sm:$0xff]  }
  0x81   :  { %2034 = vmatprep.subr.bf16.mxu1 %v2721_v12  ;;  %v2803_v12 = vld [vmem:[%s3939_s1 + $0x5e0] ss:$8 sps:$4 sm:$0xff]  }
  0x82   :  { %1944 = vmatmul.mubr.bf16.vlgmr.msra.gmra.mrb[4].mxu0 %v2214_v11  ;;  %v2808_v11 = vld [vmem:[%s3939_s1 + $0x4f4] ss:$8 sps:$4 sm:$0xff]  }
  0x83   :  { %1994 = vmatpush1.bf16.msra.mxu0 %v2714_v13  ;;  %1985 = vmatmul.mubr.bf16.vlgmr.msra.gmra.mrb[4].mxu1 %v2216_v14  ;;  %v2806_v13 = vld [vmem:[%s3939_s1 + $0x4f0] ss:$8 sps:$4 sm:$0xff]   ;;  %v2811_v14 = vld [vmem:[%s3939_s1 + $0x5f4] ss:$8 sps:$4 sm:$0xff]  }
  0x84   :  { %1995 = vmatprep.subr.bf16.mxu0 %v2724_v15  ;;  %2035 = vmatpush1.bf16.msra.mxu1 %v2719_v16  ;;  %v2816_v15 = vld [vmem:[%s3939_s1 + $0x604] ss:$8 sps:$4 sm:$0xff]   ;;  %v3608_v16 = vld [vmem:[%s3940_s0 + $0x30] sm:$0xff] }
  0x85   :  { %2025 = vmatprep.mubr.bf16.mxu0 %v2219_v20  ;;  %2036 = vmatprep.subr.bf16.mxu1 %v2727_v19  ;;  %v2218_v19 = vcombine.low %v3417_v17, %v3417_v17  ;;  %v2821_v20 = vld [vmem:[%s3939_s1 + $0x704] ss:$8 sps:$4 sm:$0xff]   ;;  %v2220_v17 = vcombine.low %v3430_v21, %v3430_v21  ;;  %v2822_v21 = vld [vmem:[%s3939_s1 + $0x610] ss:$8 sps:$4 sm:$0xff]  }
  0x86   :  { %2066 = vmatprep.mubr.bf16.mxu1 %v2221_v23  ;;  %v2814_v23 = vld [vmem:[%s3939_s1 + $0x600] ss:$8 sps:$4 sm:$0xff]  }
  0x87   :  { %1996 = vmatpush1.bf16.msra.mxu0 %v2722_v18  ;;  %v2809_v18 = vld [vmem:[%s3939_s1 + $0x5f0] ss:$8 sps:$4 sm:$0xff]  }
  0x88   :  { %1997 = vmatprep.subr.bf16.mxu0 %v2730_v22  ;;  %2037 = vmatpush1.bf16.msra.mxu1 %v2725_v24  ;;  %v3621_v22 = vld [vmem:[%s3940_s0 + $0x38] sm:$0xff]  ;;  %v2223_v24 = vcombine.high %v3608_v16, %v3608_v16 }
  0x89   :  { %2038 = vmatprep.subr.bf16.mxu1 %v2733_v25  ;;  %v2824_v25 = vld [vmem:[%s3939_s1 + $0x614] ss:$8 sps:$4 sm:$0xff]  }
  0x8b   :  { %1998 = vmatpush1.bf16.msra.mxu0 %v2728_v26  ;;  %v2819_v26 = vld [vmem:[%s3939_s1 + $0x700] ss:$8 sps:$4 sm:$0xff]  }
  0x8c   :  { %1999 = vmatprep.subr.bf16.mxu0 %v2736_v27  ;;  %2039 = vmatpush1.bf16.msra.mxu1 %v2731_v28  ;;  %v2225_v27 = vcombine.high %v3621_v22, %v3621_v22  ;;  %v2827_v28 = vld [vmem:[%s3939_s1 + $0x714] ss:$8 sps:$4 sm:$0xff]  }
  0x8d   :  { %2040 = vmatprep.subr.bf16.mxu1 %v2739_v29  ;;  %v2830_v29 = vld [vmem:[%s3939_s1 + $0x624] ss:$8 sps:$4 sm:$0xff]  }
  0x8f   :  { %2000 = vmatpush1.bf16.msra.mxu0 %v2734_v30  ;;  %v2825_v30 = vld [vmem:[%s3939_s1 + $0x710] ss:$8 sps:$4 sm:$0xff]  }
  0x90   :  { %2001 = vmatprep.subr.bf16.mxu0 %v2742_v31  ;;  %2041 = vmatpush1.bf16.msra.mxu1 %v2737_v32  ;;  %v2833_v31 = vld [vmem:[%s3939_s1 + $0x724] ss:$8 sps:$4 sm:$0xff]   ;;  %v2828_v32 = vld [vmem:[%s3939_s1 + $0x620] ss:$8 sps:$4 sm:$0xff]  }
  0x91   :  { %2042 = vmatprep.subr.bf16.mxu1 %v2745_v33  ;;  %v2836_v33 = vld [vmem:[%s3939_s1 + $0x634] ss:$8 sps:$4 sm:$0xff]  }
  0x93   :  { %2002 = vmatpush1.bf16.msra.mxu0 %v2740_v34  ;;  %v2831_v34 = vld [vmem:[%s3939_s1 + $0x720] ss:$8 sps:$4 sm:$0xff]  }
  0x94   :  { %2003 = vmatprep.subr.bf16.mxu0 %v2748_v35  ;;  %2043 = vmatpush1.bf16.msra.mxu1 %v2743_v36  ;;  %v2839_v35 = vld [vmem:[%s3939_s1 + $0x734] ss:$8 sps:$4 sm:$0xff]   ;;  %v2834_v36 = vld [vmem:[%s3939_s1 + $0x630] ss:$8 sps:$4 sm:$0xff]  }
  0x95   :  { %2044 = vmatprep.subr.bf16.mxu1 %v2751_v37  ;;  %v2842_v37 = vld [vmem:[%s3939_s1 + $0x644] ss:$8 sps:$4 sm:$0xff]  }
  0x97   :  { %2004 = vmatpush1.bf16.msra.mxu0 %v2746_v38  ;;  %v2837_v38 = vld [vmem:[%s3939_s1 + $0x730] ss:$8 sps:$4 sm:$0xff]  }
  0x98   :  { %2005 = vmatprep.subr.bf16.mxu0 %v2754_v39  ;;  %2045 = vmatpush1.bf16.msra.mxu1 %v2749_v40  ;;  %v2845_v39 = vld [vmem:[%s3939_s1 + $0x744] ss:$8 sps:$4 sm:$0xff]   ;;  %v2840_v40 = vld [vmem:[%s3939_s1 + $0x640] ss:$8 sps:$4 sm:$0xff]  }
  0x99   :  { %2046 = vmatprep.subr.bf16.mxu1 %v2757_v41  ;;  %v2848_v41 = vld [vmem:[%s3939_s1 + $0x654] ss:$8 sps:$4 sm:$0xff]  }
  0x9b   :  { %2006 = vmatpush1.bf16.msra.mxu0 %v2752_v42  ;;  %v2843_v42 = vld [vmem:[%s3939_s1 + $0x740] ss:$8 sps:$4 sm:$0xff]  }
  0x9c   :  { %2007 = vmatprep.subr.bf16.mxu0 %v2760_v43  ;;  %2047 = vmatpush1.bf16.msra.mxu1 %v2755_v44  ;;  %v2851_v43 = vld [vmem:[%s3939_s1 + $0x754] ss:$8 sps:$4 sm:$0xff]   ;;  %v2846_v44 = vld [vmem:[%s3939_s1 + $0x650] ss:$8 sps:$4 sm:$0xff]  }
  0x9d   :  { %2048 = vmatprep.subr.bf16.mxu1 %v2763_v45  ;;  %v2854_v45 = vld [vmem:[%s3939_s1 + $0x664] ss:$8 sps:$4 sm:$0xff]  }
  0x9f   :  { %2008 = vmatpush1.bf16.msra.mxu0 %v2758_v46  ;;  %v2849_v46 = vld [vmem:[%s3939_s1 + $0x750] ss:$8 sps:$4 sm:$0xff]  }
  0xa0   :  { %2009 = vmatprep.subr.bf16.mxu0 %v2766_v47  ;;  %2049 = vmatpush1.bf16.msra.mxu1 %v2761_v48  ;;  %v2857_v47 = vld [vmem:[%s3939_s1 + $0x764] ss:$8 sps:$4 sm:$0xff]   ;;  %v2852_v48 = vld [vmem:[%s3939_s1 + $0x660] ss:$8 sps:$4 sm:$0xff]  }
  0xa1   :  { %2050 = vmatprep.subr.bf16.mxu1 %v2769_v49  ;;  %v2860_v49 = vld [vmem:[%s3939_s1 + $0x674] ss:$8 sps:$4 sm:$0xff]  }
  0xa3   :  { %2010 = vmatpush1.bf16.msra.mxu0 %v2764_v50  ;;  %v2855_v50 = vld [vmem:[%s3939_s1 + $0x760] ss:$8 sps:$4 sm:$0xff]  }
  0xa4   :  { %2011 = vmatprep.subr.bf16.mxu0 %v2772_v51  ;;  %2051 = vmatpush1.bf16.msra.mxu1 %v2767_v52  ;;  %v2863_v51 = vld [vmem:[%s3939_s1 + $0x774] ss:$8 sps:$4 sm:$0xff]   ;;  %v2858_v52 = vld [vmem:[%s3939_s1 + $0x670] ss:$8 sps:$4 sm:$0xff]  }
  0xa5   :  { %2052 = vmatprep.subr.bf16.mxu1 %v2775_v53  ;;  %v2866_v53 = vld [vmem:[%s3939_s1 + $0x684] ss:$8 sps:$4 sm:$0xff]  }
  0xa7   :  { %2012 = vmatpush1.bf16.msra.mxu0 %v2770_v54  ;;  %v2861_v54 = vld [vmem:[%s3939_s1 + $0x770] ss:$8 sps:$4 sm:$0xff]  }
  0xa8   :  { %2013 = vmatprep.subr.bf16.mxu0 %v2778_v55  ;;  %2053 = vmatpush1.bf16.msra.mxu1 %v2773_v56  ;;  %v2869_v55 = vld [vmem:[%s3939_s1 + $0x784] ss:$8 sps:$4 sm:$0xff]   ;;  %v2864_v56 = vld [vmem:[%s3939_s1 + $0x680] ss:$8 sps:$4 sm:$0xff]  }
  0xa9   :  { %2054 = vmatprep.subr.bf16.mxu1 %v2781_v57  ;;  %v2872_v57 = vld [vmem:[%s3939_s1 + $0x694] ss:$8 sps:$4 sm:$0xff]  }
  0xab   :  { %2014 = vmatpush1.bf16.msra.mxu0 %v2776_v58  ;;  %v2867_v58 = vld [vmem:[%s3939_s1 + $0x780] ss:$8 sps:$4 sm:$0xff]  }
  0xac   :  { %2015 = vmatprep.subr.bf16.mxu0 %v2784_v59  ;;  %2055 = vmatpush1.bf16.msra.mxu1 %v2779_v60  ;;  %v2875_v59 = vld [vmem:[%s3939_s1 + $0x794] ss:$8 sps:$4 sm:$0xff]   ;;  %v2870_v60 = vld [vmem:[%s3939_s1 + $0x690] ss:$8 sps:$4 sm:$0xff]  }
  0xad   :  { %2056 = vmatprep.subr.bf16.mxu1 %v2787_v61  ;;  %v2878_v61 = vld [vmem:[%s3939_s1 + $0x6a4] ss:$8 sps:$4 sm:$0xff]  }
  0xaf   :  { %2016 = vmatpush1.bf16.msra.mxu0 %v2782_v62  ;;  %v2873_v62 = vld [vmem:[%s3939_s1 + $0x790] ss:$8 sps:$4 sm:$0xff]  }
  0xb0   :  { %2017 = vmatprep.subr.bf16.mxu0 %v2790_v63  ;;  %2057 = vmatpush1.bf16.msra.mxu1 %v2785_v0  ;;  %v2881_v63 = vld [vmem:[%s3939_s1 + $0x7a4] ss:$8 sps:$4 sm:$0xff]   ;;  %v2876_v0 = vld [vmem:[%s3939_s1 + $0x6a0] ss:$8 sps:$4 sm:$0xff]  }
  0xb1   :  { %2058 = vmatprep.subr.bf16.mxu1 %v2793_v1  ;;  %v2884_v1 = vld [vmem:[%s3939_s1 + $0x6b4] ss:$8 sps:$4 sm:$0xff]  }
  0xb3   :  { %2018 = vmatpush1.bf16.msra.mxu0 %v2788_v2  ;;  %v2879_v2 = vld [vmem:[%s3939_s1 + $0x7a0] ss:$8 sps:$4 sm:$0xff]  }
  0xb4   :  { %2019 = vmatprep.subr.bf16.mxu0 %v2796_v3  ;;  %2059 = vmatpush1.bf16.msra.mxu1 %v2791_v4  ;;  %v2887_v3 = vld [vmem:[%s3939_s1 + $0x7b4] ss:$8 sps:$4 sm:$0xff]   ;;  %v2882_v4 = vld [vmem:[%s3939_s1 + $0x6b0] ss:$8 sps:$4 sm:$0xff]  }
  0xb5   :  { %2060 = vmatprep.subr.bf16.mxu1 %v2799_v5  ;;  %v2890_v5 = vld [vmem:[%s3939_s1 + $0x6c4] ss:$8 sps:$4 sm:$0xff]  }
  0xb7   :  { %2020 = vmatpush1.bf16.msra.mxu0 %v2794_v6  ;;  %v2885_v6 = vld [vmem:[%s3939_s1 + $0x7b0] ss:$8 sps:$4 sm:$0xff]  }
  0xb8   :  { %2021 = vmatprep.subr.bf16.mxu0 %v2802_v7  ;;  %2061 = vmatpush1.bf16.msra.mxu1 %v2797_v8  ;;  %v2893_v7 = vld [vmem:[%s3939_s1 + $0x7c4] ss:$8 sps:$4 sm:$0xff]   ;;  %v2888_v8 = vld [vmem:[%s3939_s1 + $0x6c0] ss:$8 sps:$4 sm:$0xff]  }
  0xb9   :  { %2062 = vmatprep.subr.bf16.mxu1 %v2805_v9  ;;  %v2896_v9 = vld [vmem:[%s3939_s1 + $0x6d4] ss:$8 sps:$4 sm:$0xff]  }
  0xbb   :  { %2022 = vmatpush1.bf16.msra.mxu0 %v2800_v10  ;;  %v2891_v10 = vld [vmem:[%s3939_s1 + $0x7c0] ss:$8 sps:$4 sm:$0xff]  }
  0xbc   :  { %2023 = vmatprep.subr.bf16.mxu0 %v2808_v11  ;;  %2063 = vmatpush1.bf16.msra.mxu1 %v2803_v12  ;;  %v2899_v11 = vld [vmem:[%s3939_s1 + $0x7d4] ss:$8 sps:$4 sm:$0xff]   ;;  %v2894_v12 = vld [vmem:[%s3939_s1 + $0x6d0] ss:$8 sps:$4 sm:$0xff]  }
  0xbd   :  { %2064 = vmatprep.subr.bf16.mxu1 %v2811_v14  ;;  %v2897_v14 = vld [vmem:[%s3939_s1 + $0x7d0] ss:$8 sps:$4 sm:$0xff]  }
  0xbf   :  { %2024 = vmatpush1.bf16.msra.mxu0 %v2806_v13  ;;  %v2902_v13 = vld [vmem:[%s3939_s1 + $0x6e4] ss:$8 sps:$4 sm:$0xff]  }
  0xc0   :  { %2075 = vmatprep.subr.bf16.mxu0 %v2816_v15  ;;  %2065 = vmatpush1.bf16.msra.mxu1 %v2809_v18  ;;  %v2905_v15 = vld [vmem:[%s3939_s1 + $0x7e4] ss:$8 sps:$4 sm:$0xff]   ;;  %v2900_v18 = vld [vmem:[%s3939_s1 + $0x6e0] ss:$8 sps:$4 sm:$0xff]  }
  0xc1   :  { %2116 = vmatprep.subr.bf16.mxu1 %v2821_v20  ;;  %v2903_v20 = vld [vmem:[%s3939_s1 + $0x7e0] ss:$8 sps:$4 sm:$0xff]  }
  0xc2   :  { %2026 = vmatmul.mubr.bf16.vlgmr.msra.gmra.mrb[8].mxu0 %v2218_v19  ;;  %v2908_v19 = vld [vmem:[%s3939_s1 + $0x6f4] ss:$8 sps:$4 sm:$0xff]  }
  0xc3   :  { %2076 = vmatpush1.bf16.msra.mxu0 %v2814_v23  ;;  %2107 = vmatprep.mubr.bf16.mxu0 %v2223_v24  ;;  %v2911_v23 = vld [vmem:[%s3939_s1 + $0x7f4] ss:$8 sps:$4 sm:$0xff]   ;;  %v2906_v24 = vld [vmem:[%s3939_s1 + $0x6f0] ss:$8 sps:$4 sm:$0xff]  }
  0xc4   :  { %2067 = vmatmul.mubr.bf16.vlgmr.msra.gmra.mrb[8].mxu1 %v2220_v17  ;;  %2077 = vmatprep.subr.bf16.mxu0 %v2824_v25  ;;  %v2916_v17 = vld [vmem:[%s3939_s1 + $0x804] ss:$8 sps:$4 sm:$0xff]  }
  0xc5   :  { %2117 = vmatpush1.bf16.msra.mxu1 %v2819_v26  ;;  %2148 = vmatprep.mubr.bf16.mxu1 %v2225_v27  ;;  %v3818_v25 = vld [vmem:[%s3940_s0 + $0x40] sm:$0xff]  ;;  %v2909_v26 = vld [vmem:[%s3939_s1 + $0x7f0] ss:$8 sps:$4 sm:$0xff]   ;;  %v2222_v27 = vcombine.low %v3608_v16, %v3608_v16 }
  0xc6   :  { %2118 = vmatprep.subr.bf16.mxu1 %v2827_v28  ;;  %v2914_v28 = vld [vmem:[%s3939_s1 + $0x800] ss:$8 sps:$4 sm:$0xff]   ;;  %v2919_v16 = vld [vmem:[%s3939_s1 + $0x810] ss:$8 sps:$4 sm:$0xff]  }
  0xc7   :  { %2078 = vmatpush1.bf16.msra.mxu0 %v2822_v21  ;;  %v2227_v21 = vcombine.high %v3818_v25, %v3818_v25 }
  0xc8   :  { %2079 = vmatprep.subr.bf16.mxu0 %v2830_v29  ;;  %v2224_v29 = vcombine.low %v3621_v22, %v3621_v22  ;;  %v2922_v22 = vld [vmem:[%s3939_s1 + $0x820] ss:$8 sps:$4 sm:$0xff]  }
  0xc9   :  { %2119 = vmatpush1.bf16.msra.mxu1 %v2825_v30  ;;  %v2921_v30 = vld [vmem:[%s3939_s1 + $0x814] ss:$8 sps:$4 sm:$0xff]  }
  0xca   :  { %2120 = vmatprep.subr.bf16.mxu1 %v2833_v31  ;;  %v2924_v31 = vld [vmem:[%s3939_s1 + $0x824] ss:$8 sps:$4 sm:$0xff]  }
  0xcb   :  { %2080 = vmatpush1.bf16.msra.mxu0 %v2828_v32  ;;  %v316_v32 = vlaneseq }
  0xcc   :  { %2081 = vmatprep.subr.bf16.mxu0 %v2836_v33  ;;  %v2927_v33 = vld [vmem:[%s3939_s1 + $0x834] ss:$8 sps:$4 sm:$0xff]  }
  0xcd   :  { %2121 = vmatpush1.bf16.msra.mxu1 %v2831_v34  ;;  %v317_v34 = vshrl.u32 %v316_v32, 7 }
  0xce   :  { %2122 = vmatprep.subr.bf16.mxu1 %v2839_v35  ;;  %v2925_v35 = vld [vmem:[%s3939_s1 + $0x830] ss:$8 sps:$4 sm:$0xff]  }
  0xcf   :  { %2082 = vmatpush1.bf16.msra.mxu0 %v2834_v36  ;;  %v2930_v36 = vld [vmem:[%s3939_s1 + $0x844] ss:$8 sps:$4 sm:$0xff]  }
  0xd0   :  { %2083 = vmatprep.subr.bf16.mxu0 %v2842_v37  ;;  %v318_v37 = vsub.s32 0, %v317_v34 }
  0xd1   :  { %2123 = vmatpush1.bf16.msra.mxu1 %v2837_v38  ;;  %v2928_v38 = vld [vmem:[%s3939_s1 + $0x840] ss:$8 sps:$4 sm:$0xff]  }
  0xd2   :  { %2124 = vmatprep.subr.bf16.mxu1 %v2845_v39  ;;  %v314_v39 = vld [vmem:[%s3941_s2] sm:$0x3] }
  0xd3   :  { %2084 = vmatpush1.bf16.msra.mxu0 %v2840_v40  ;;  %v322_v40 = vsub.s32 1, %v317_v34 }
  0xd4   :  { %2085 = vmatprep.subr.bf16.mxu0 %v2848_v41  ;;  %v2933_v41 = vld [vmem:[%s3939_s1 + $0x854] ss:$8 sps:$4 sm:$0xff]  }
  0xd5   :  { %2125 = vmatpush1.bf16.msra.mxu1 %v2843_v42  ;;  %v319_v42 = vrot.slane %v314_v39, %v318_v37 }
  0xd6   :  { %2126 = vmatprep.subr.bf16.mxu1 %v2851_v43  ;;  %v323_v43 = vrot.slane %v314_v39, %v322_v40 }
  0xd7   :  { %2086 = vmatpush1.bf16.msra.mxu0 %v2846_v44  ;;  %v2931_v44 = vld [vmem:[%s3939_s1 + $0x850] ss:$8 sps:$4 sm:$0xff]  }
  0xd8   :  { %2087 = vmatprep.subr.bf16.mxu0 %v2854_v45  ;;  %v2936_v45 = vld [vmem:[%s3939_s1 + $0x864] ss:$8 sps:$4 sm:$0xff]  }
  0xd9   :  { %2127 = vmatpush1.bf16.msra.mxu1 %v2849_v46 }
  0xda   :  { %2128 = vmatprep.subr.bf16.mxu1 %v2857_v47 }
  0xdb   :  { %2088 = vmatpush1.bf16.msra.mxu0 %v2852_v48 }
  0xdc   :  { %2089 = vmatprep.subr.bf16.mxu0 %v2860_v49 }
  0xdd   :  { %2129 = vmatpush1.bf16.msra.mxu1 %v2855_v50 }
  0xde   :  { %2130 = vmatprep.subr.bf16.mxu1 %v2863_v51 }
  0xdf   :  { %2090 = vmatpush1.bf16.msra.mxu0 %v2858_v52  ;;  %v2934_v52 = vld [vmem:[%s3939_s1 + $0x860] ss:$8 sps:$4 sm:$0xff]  }
  0xe0   :  { %2091 = vmatprep.subr.bf16.mxu0 %v2866_v53 }
  0xe1   :  { %2131 = vmatpush1.bf16.msra.mxu1 %v2861_v54 }
  0xe2   :  { %2132 = vmatprep.subr.bf16.mxu1 %v2869_v55 }
  0xe3   :  { %2092 = vmatpush1.bf16.msra.mxu0 %v2864_v56  ;;  %v2939_v56 = vld [vmem:[%s3939_s1 + $0x874] ss:$8 sps:$4 sm:$0xff]  }
  0xe4   :  { %2093 = vmatprep.subr.bf16.mxu0 %v2872_v57 }
  0xe5   :  { %2133 = vmatpush1.bf16.msra.mxu1 %v2867_v58 }
  0xe6   :  { %2134 = vmatprep.subr.bf16.mxu1 %v2875_v59 }
  0xe7   :  { %2094 = vmatpush1.bf16.msra.mxu0 %v2870_v60  ;;  %v2937_v60 = vld [vmem:[%s3939_s1 + $0x870] ss:$8 sps:$4 sm:$0xff]  }
  0xe8   :  { %2095 = vmatprep.subr.bf16.mxu0 %v2878_v61  ;;  %v2942_v61 = vld [vmem:[%s3939_s1 + $0x884] ss:$8 sps:$4 sm:$0xff]  }
  0xe9   :  { %2135 = vmatpush1.bf16.msra.mxu1 %v2873_v62  ;;  %v2940_v62 = vld [vmem:[%s3939_s1 + $0x880] ss:$8 sps:$4 sm:$0xff]  }
  0xea   :  { %2136 = vmatprep.subr.bf16.mxu1 %v2881_v63  ;;  %v2945_v63 = vld [vmem:[%s3939_s1 + $0x894] ss:$8 sps:$4 sm:$0xff]  }
  0xeb   :  { %2096 = vmatpush1.bf16.msra.mxu0 %v2876_v0  ;;  %v2943_v0 = vld [vmem:[%s3939_s1 + $0x890] ss:$8 sps:$4 sm:$0xff]  }
  0xec   :  { %2097 = vmatprep.subr.bf16.mxu0 %v2884_v1  ;;  %v2948_v1 = vld [vmem:[%s3939_s1 + $0x8a4] ss:$8 sps:$4 sm:$0xff]  }
  0xed   :  { %2137 = vmatpush1.bf16.msra.mxu1 %v2879_v2  ;;  %v2946_v2 = vld [vmem:[%s3939_s1 + $0x8a0] ss:$8 sps:$4 sm:$0xff]  }
  0xee   :  { %2138 = vmatprep.subr.bf16.mxu1 %v2887_v3  ;;  %v2951_v3 = vld [vmem:[%s3939_s1 + $0x8b4] ss:$8 sps:$4 sm:$0xff]  }
  0xef   :  { %2098 = vmatpush1.bf16.msra.mxu0 %v2882_v4  ;;  %v2949_v4 = vld [vmem:[%s3939_s1 + $0x8b0] ss:$8 sps:$4 sm:$0xff]  }
  0xf0   :  { %2099 = vmatprep.subr.bf16.mxu0 %v2890_v5  ;;  %v2954_v5 = vld [vmem:[%s3939_s1 + $0x8c4] ss:$8 sps:$4 sm:$0xff]  }
  0xf1   :  { %2139 = vmatpush1.bf16.msra.mxu1 %v2885_v6  ;;  %v2952_v6 = vld [vmem:[%s3939_s1 + $0x8c0] ss:$8 sps:$4 sm:$0xff]  }
  0xf2   :  { %2140 = vmatprep.subr.bf16.mxu1 %v2893_v7  ;;  %v2957_v7 = vld [vmem:[%s3939_s1 + $0x8d4] ss:$8 sps:$4 sm:$0xff]  }
  0xf3   :  { %2100 = vmatpush1.bf16.msra.mxu0 %v2888_v8  ;;  %v2955_v8 = vld [vmem:[%s3939_s1 + $0x8d0] ss:$8 sps:$4 sm:$0xff]  }
  0xf4   :  { %2101 = vmatprep.subr.bf16.mxu0 %v2896_v9  ;;  %v2960_v9 = vld [vmem:[%s3939_s1 + $0x8e4] ss:$8 sps:$4 sm:$0xff]  }
  0xf5   :  { %2141 = vmatpush1.bf16.msra.mxu1 %v2891_v10  ;;  %v2958_v10 = vld [vmem:[%s3939_s1 + $0x8e0] ss:$8 sps:$4 sm:$0xff]  }
  0xf6   :  { %2142 = vmatprep.subr.bf16.mxu1 %v2899_v11  ;;  %v2963_v11 = vld [vmem:[%s3939_s1 + $0x8f4] ss:$8 sps:$4 sm:$0xff]  }
  0xf7   :  { %2102 = vmatpush1.bf16.msra.mxu0 %v2894_v12  ;;  %v2961_v12 = vld [vmem:[%s3939_s1 + $0x8f0] ss:$8 sps:$4 sm:$0xff]  }
  0xf8   :  { %2103 = vmatprep.subr.bf16.mxu0 %v2902_v13  ;;  %v2226_v13 = vcombine.low %v3818_v25, %v3818_v25 }
  0xf9   :  { %2143 = vmatpush1.bf16.msra.mxu1 %v2897_v14 }
  0xfa   :  { %2144 = vmatprep.subr.bf16.mxu1 %v2905_v15 }
  0xfb   :  { %2104 = vmatpush1.bf16.msra.mxu0 %v2900_v18 }
  0xfc   :  { %2105 = vmatprep.subr.bf16.mxu0 %v2908_v19 }
  0xfd   :  { %2145 = vmatpush1.bf16.msra.mxu1 %v2903_v20 }
  0xfe   :  { %2146 = vmatprep.subr.bf16.mxu1 %v2911_v23 }
  0xff   :  { %2106 = vmatpush1.bf16.msra.mxu0 %v2906_v24 }
 0x100   :  { %2157 = vmatprep.subr.bf16.mxu0 %v2916_v17 }
 0x101   :  { %2147 = vmatpush1.bf16.msra.mxu1 %v2909_v26 }
 0x102   :  { %2108 = vmatmul.mubr.bf16.vlgmr.msra.gmra.mrb[12].mxu0 %v2222_v27 }
 0x103   :  { %2158 = vmatpush1.bf16.msra.mxu0 %v2914_v28  ;;  %2189 = vmatprep.mubr.bf16.mxu0 %v2227_v21 }
 0x104   :  { %2149 = vmatmul.mubr.bf16.vlgmr.msra.gmra.mrb[12].mxu1 %v2224_v29  ;;  %2159 = vmatprep.subr.bf16.mxu0 %v2921_v30 }
 0x107   :  { %2160 = vmatpush1.bf16.msra.mxu0 %v2919_v16 }
 0x108   :  { %2161 = vmatprep.subr.bf16.mxu0 %v2924_v31 }
 0x10b   :  { %2162 = vmatpush1.bf16.msra.mxu0 %v2922_v22 }
 0x10c   :  { %2163 = vmatprep.subr.bf16.mxu0 %v2927_v33 }
 0x10f   :  { %2164 = vmatpush1.bf16.msra.mxu0 %v2925_v35 }
 0x110   :  { %2165 = vmatprep.subr.bf16.mxu0 %v2930_v36 }
 0x113   :  { %2166 = vmatpush1.bf16.msra.mxu0 %v2928_v38 }
 0x114   :  { %2167 = vmatprep.subr.bf16.mxu0 %v2933_v41 }
 0x115   :  { %v1863_v46 = vpop.f32.mrb[0].mxu0 }
 0x116   :  { %v1864_v47 = vadd.f32 %v1863_v46, %v319_v42  ;;  %v1865_v48 = vpop.f32.mrb[1].mxu0  ;;  %v1904_v51 = vpop.f32.mrb[0].mxu1 }
 0x117   :  { %v1866_v49 = vadd.f32 %v1865_v48, %v323_v43  ;;  %v1867_v50 = vpop.f32.mrb[2].mxu0  ;;  %2168 = vmatpush1.bf16.msra.mxu0 %v2931_v44  ;;  %v1906_v55 = vpop.f32.mrb[1].mxu1 }
 0x118   :  { %v1905_v53 = vadd.f32 %v1904_v51, %v1864_v47  ;;  %v1868_v54 = vpop.f32.mrb[3].mxu0  ;;  %2169 = vmatprep.subr.bf16.mxu0 %v2936_v45  ;;  %v1908_v58 = vpop.f32.mrb[2].mxu1  ;;  %v2198_v51 = vld [vmem:[%s3942_s3] sm:$0xff] }
 0x119   :  { %v1907_v57 = vadd.f32 %v1906_v55, %v1866_v49  ;;  %v1909_v59 = vpop.f32.mrb[3].mxu1  ;;  %v2199_v54 = vld [vmem:[%s3942_s3 + $0x8] sm:$0xff] }
 0x11b   :  { %2170 = vmatpush1.bf16.msra.mxu0 %v2934_v52 }
 0x11c   :  { %2171 = vmatprep.subr.bf16.mxu0 %v2939_v56 }
 0x11f   :  { %2172 = vmatpush1.bf16.msra.mxu0 %v2937_v60 }
 0x120   :  { %2173 = vmatprep.subr.bf16.mxu0 %v2942_v61 }
 0x123   :  { %2174 = vmatpush1.bf16.msra.mxu0 %v2940_v62 }
 0x124   :  { %2175 = vmatprep.subr.bf16.mxu0 %v2945_v63 }
 0x127   :  { %2176 = vmatpush1.bf16.msra.mxu0 %v2943_v0 }
 0x128   :  { %2177 = vmatprep.subr.bf16.mxu0 %v2948_v1 }
 0x12b   :  { %2178 = vmatpush1.bf16.msra.mxu0 %v2946_v2 }
 0x12c   :  { %2179 = vmatprep.subr.bf16.mxu0 %v2951_v3 }
 0x12f   :  { %2180 = vmatpush1.bf16.msra.mxu0 %v2949_v4 }
 0x130   :  { %2181 = vmatprep.subr.bf16.mxu0 %v2954_v5 }
 0x133   :  { %2182 = vmatpush1.bf16.msra.mxu0 %v2952_v6 }
 0x134   :  { %2183 = vmatprep.subr.bf16.mxu0 %v2957_v7 }
 0x137   :  { %2184 = vmatpush1.bf16.msra.mxu0 %v2955_v8 }
 0x138   :  { %2185 = vmatprep.subr.bf16.mxu0 %v2960_v9 }
 0x13b   :  { %2186 = vmatpush1.bf16.msra.mxu0 %v2958_v10 }
 0x13c   :  { %2187 = vmatprep.subr.bf16.mxu0 %v2963_v11 }
 0x13f   :  { %2188 = vmatpush1.bf16.msra.mxu0 %v2961_v12 }
 0x142   :  { %2190 = vmatmul.mubr.bf16.vlgmr.msra.gmra.mrb[16].mxu0 %v2226_v13 }
 0x155   :  { %v1945_v14 = vpop.f32.mrb[4].mxu0 }
 0x156   :  { %v1946_v15 = vadd.f32 %v1945_v14, %v1905_v53  ;;  %v1947_v18 = vpop.f32.mrb[5].mxu0  ;;  %v1986_v23 = vpop.f32.mrb[4].mxu1 }
 0x157   :  { %v1948_v19 = vadd.f32 %v1947_v18, %v1907_v57  ;;  %v1949_v20 = vpop.f32.mrb[6].mxu0  ;;  %v1988_v26 = vpop.f32.mrb[5].mxu1 }
 0x158   :  { %v1987_v24 = vadd.f32 %v1986_v23, %v1946_v15  ;;  %v1950_v17 = vpop.f32.mrb[7].mxu0  ;;  %v1990_v28 = vpop.f32.mrb[6].mxu1 }
 0x159   :  { %v1989_v27 = vadd.f32 %v1988_v26, %v1948_v19  ;;  %v1991_v21 = vpop.f32.mrb[7].mxu1 }
 0x195   :  { %v2027_v29 = vpop.f32.mrb[8].mxu0 }
 0x196   :  { %v2028_v30 = vadd.f32 %v2027_v29, %v1987_v24  ;;  %v2029_v16 = vpop.f32.mrb[9].mxu0 }
 0x197   :  { %v2030_v31 = vadd.f32 %v2029_v16, %v1989_v27  ;;  %v2031_v32 = vpop.f32.mrb[10].mxu0  ;;  %v2068_v25 = vpop.f32.mrb[8].mxu1 }
 0x198   :  { %v2069_v22 = vadd.f32 %v2068_v25, %v2028_v30  ;;  %v2032_v33 = vpop.f32.mrb[11].mxu0  ;;  %v2070_v34 = vpop.f32.mrb[9].mxu1 }
 0x199   :  { %v2071_v35 = vadd.f32 %v2070_v34, %v2030_v31  ;;  %v2072_v36 = vpop.f32.mrb[10].mxu1 }
 0x19a   :  { %v2073_v37 = vpop.f32.mrb[11].mxu1 }
 0x1d5   :  { %v2109_v38 = vpop.f32.mrb[12].mxu0 }
 0x1d6   :  { %v2110_v39 = vadd.f32 %v2109_v38, %v2069_v22  ;;  %v2111_v40 = vpop.f32.mrb[13].mxu0 }
 0x1d7   :  { %v2112_v41 = vadd.f32 %v2111_v40, %v2071_v35  ;;  %v2113_v42 = vpop.f32.mrb[14].mxu0  ;;  %v2150_v43 = vpop.f32.mrb[12].mxu1 }
 0x1d8   :  { %v2151_v44 = vadd.f32 %v2150_v43, %v2110_v39  ;;  %v2114_v45 = vpop.f32.mrb[15].mxu0  ;;  %v2152_v46 = vpop.f32.mrb[13].mxu1 }
 0x1d9   :  { %v2153_v47 = vadd.f32 %v2152_v46, %v2112_v41  ;;  %v2154_v48 = vpop.f32.mrb[14].mxu1 }
 0x1da   :  { %v2155_v49 = vpop.f32.mrb[15].mxu1 }
 0x215   :  { %v2191_v50 = vpop.f32.mrb[16].mxu0 }
 0x216   :  { %v2192_v52 = vadd.f32 %v2191_v50, %v2151_v44  ;;  %v2193_v53 = vpop.f32.mrb[17].mxu0 }
 0x217   :  { %v2194_v55 = vadd.f32 %v2193_v53, %v2153_v47  ;;  %v2195_v56 = vpop.f32.mrb[18].mxu0 }
 0x218   :  { %v2200_v57 = vadd.f32 %v2198_v51, %v2192_v52  ;;  %v2196_v58 = vpop.f32.mrb[19].mxu0 }
 0x219   :  { %v2201_v59 = vadd.f32 %v2199_v54, %v2194_v55 }
 0x21a   :  { %v2202_v60 = vmax.f32 %v2200_v57, 0.0 }
 0x21b   :  { %v2203_v61 = vmax.f32 %v2201_v59, 0.0 }
 0x21c   :  { %2204 = vst [vmem:[%s3943_s4] sm:$0xff] %v2202_v60 }
 0x21d   :  { %2205 = vst [vmem:[%s3943_s4 + $0x8] sm:$0xff] %v2203_v61 }

// kernel: resnet_basicblock_os8_forward.28
= control target key start
LH: loop header
LB: loop body
LE: loop exit
PB: predicated region body
PF: predicated region fallthrough
CT: control target
= control target key end

     0   :  { %s3953_s1 = inlined_call_operand.vmem [shape: bf16[2304,256], index: 1, kind: input, shape index: {}]   ;;  %s3954_s0 = inlined_call_operand.vmem [shape: bf16[8,2304], index: 0, kind: input, shape index: {}]   ;;  %s3955_s2 = inlined_call_operand.vmem [shape: f32[1,256], index: 2, kind: input, shape index: {}]   ;;  %s3956_s3 = inlined_call_operand.vmem [shape: f32[8,256], index: 3, kind: output, shape index: {}]  }
   0x1   :  { %v2541_v0 = vld [vmem:[%s3953_s1 + $0x4] ss:$8 sps:$4 sm:$0xff]   ;;  %v2545_v2 = vld [vmem:[%s3953_s1] ss:$8 sps:$4 sm:$0xff]   ;;  %v2547_v4 = vld [vmem:[%s3953_s1 + $0x14] ss:$8 sps:$4 sm:$0xff]  }
   0x2   :  { %v2543_v1 = vld [vmem:[%s3953_s1 + $0x404] ss:$8 sps:$4 sm:$0xff]   ;;  %1826 = vmatprep.subr.bf16.mxu1 %v2541_v0  ;;  %v2546_v3 = vld [vmem:[%s3953_s1 + $0x400] ss:$8 sps:$4 sm:$0xff]   ;;  %v2549_v5 = vld [vmem:[%s3953_s1 + $0x414] ss:$8 sps:$4 sm:$0xff]  }
   0x3   :  { %1990 = vmatprep.subr.bf16.mxu0 %v2543_v1  ;;  %1827 = vmatpush1.bf16.msra.mxu1 %v2545_v2  ;;  %v2551_v6 = vld [vmem:[%s3953_s1 + $0x10] ss:$8 sps:$4 sm:$0xff]   ;;  %v2553_v8 = vld [vmem:[%s3953_s1 + $0x24] ss:$8 sps:$4 sm:$0xff]   ;;  %v2557_v10 = vld [vmem:[%s3953_s1 + $0x20] ss:$8 sps:$4 sm:$0xff]  }
   0x4   :  { %1991 = vmatpush1.bf16.msra.mxu0 %v2546_v3  ;;  %1828 = vmatprep.subr.bf16.mxu1 %v2547_v4  ;;  %v2552_v7 = vld [vmem:[%s3953_s1 + $0x410] ss:$8 sps:$4 sm:$0xff]   ;;  %v2555_v9 = vld [vmem:[%s3953_s1 + $0x424] ss:$8 sps:$4 sm:$0xff]   ;;  %v2558_v11 = vld [vmem:[%s3953_s1 + $0x420] ss:$8 sps:$4 sm:$0xff]  }
   0x5   :  { %1992 = vmatprep.subr.bf16.mxu0 %v2549_v5  ;;  %v2559_v12 = vld [vmem:[%s3953_s1 + $0x34] ss:$8 sps:$4 sm:$0xff]   ;;  %v2563_v14 = vld [vmem:[%s3953_s1 + $0x30] ss:$8 sps:$4 sm:$0xff]   ;;  %v2565_v16 = vld [vmem:[%s3953_s1 + $0x44] ss:$8 sps:$4 sm:$0xff]  }
   0x6   :  { %v2561_v13 = vld [vmem:[%s3953_s1 + $0x434] ss:$8 sps:$4 sm:$0xff]   ;;  %v2564_v15 = vld [vmem:[%s3953_s1 + $0x430] ss:$8 sps:$4 sm:$0xff]   ;;  %v2567_v17 = vld [vmem:[%s3953_s1 + $0x444] ss:$8 sps:$4 sm:$0xff]  }
   0x7   :  { %1829 = vmatpush1.bf16.msra.mxu1 %v2551_v6  ;;  %v2569_v18 = vld [vmem:[%s3953_s1 + $0x40] ss:$8 sps:$4 sm:$0xff]   ;;  %v2571_v20 = vld [vmem:[%s3953_s1 + $0x54] ss:$8 sps:$4 sm:$0xff]   ;;  %v2575_v22 = vld [vmem:[%s3953_s1 + $0x50] ss:$8 sps:$4 sm:$0xff]  }
   0x8   :  { %1993 = vmatpush1.bf16.msra.mxu0 %v2552_v7  ;;  %1830 = vmatprep.subr.bf16.mxu1 %v2553_v8  ;;  %v2570_v19 = vld [vmem:[%s3953_s1 + $0x440] ss:$8 sps:$4 sm:$0xff]   ;;  %v2573_v21 = vld [vmem:[%s3953_s1 + $0x454] ss:$8 sps:$4 sm:$0xff]   ;;  %v2576_v23 = vld [vmem:[%s3953_s1 + $0x450] ss:$8 sps:$4 sm:$0xff]  }
   0x9   :  { %1994 = vmatprep.subr.bf16.mxu0 %v2555_v9  ;;  %v2577_v24 = vld [vmem:[%s3953_s1 + $0x64] ss:$8 sps:$4 sm:$0xff]   ;;  %v2581_v26 = vld [vmem:[%s3953_s1 + $0x60] ss:$8 sps:$4 sm:$0xff]   ;;  %v2583_v28 = vld [vmem:[%s3953_s1 + $0x74] ss:$8 sps:$4 sm:$0xff]  }
   0xa   :  { %v2579_v25 = vld [vmem:[%s3953_s1 + $0x464] ss:$8 sps:$4 sm:$0xff]   ;;  %v2582_v27 = vld [vmem:[%s3953_s1 + $0x460] ss:$8 sps:$4 sm:$0xff]   ;;  %v2585_v29 = vld [vmem:[%s3953_s1 + $0x474] ss:$8 sps:$4 sm:$0xff]  }
   0xb   :  { %1831 = vmatpush1.bf16.msra.mxu1 %v2557_v10  ;;  %v2587_v30 = vld [vmem:[%s3953_s1 + $0x70] ss:$8 sps:$4 sm:$0xff]   ;;  %v2589_v32 = vld [vmem:[%s3953_s1 + $0x84] ss:$8 sps:$4 sm:$0xff]   ;;  %v2593_v34 = vld [vmem:[%s3953_s1 + $0x80] ss:$8 sps:$4 sm:$0xff]  }
   0xc   :  { %1995 = vmatpush1.bf16.msra.mxu0 %v2558_v11  ;;  %1832 = vmatprep.subr.bf16.mxu1 %v2559_v12  ;;  %v2588_v31 = vld [vmem:[%s3953_s1 + $0x470] ss:$8 sps:$4 sm:$0xff]   ;;  %v2591_v33 = vld [vmem:[%s3953_s1 + $0x484] ss:$8 sps:$4 sm:$0xff]   ;;  %v2594_v35 = vld [vmem:[%s3953_s1 + $0x480] ss:$8 sps:$4 sm:$0xff]  }
   0xd   :  { %1996 = vmatprep.subr.bf16.mxu0 %v2561_v13  ;;  %v2595_v36 = vld [vmem:[%s3953_s1 + $0x94] ss:$8 sps:$4 sm:$0xff]   ;;  %v2599_v38 = vld [vmem:[%s3953_s1 + $0x90] ss:$8 sps:$4 sm:$0xff]   ;;  %v2601_v40 = vld [vmem:[%s3953_s1 + $0xa4] ss:$8 sps:$4 sm:$0xff]  }
   0xe   :  { %v2597_v37 = vld [vmem:[%s3953_s1 + $0x494] ss:$8 sps:$4 sm:$0xff]   ;;  %v2600_v39 = vld [vmem:[%s3953_s1 + $0x490] ss:$8 sps:$4 sm:$0xff]   ;;  %v2603_v41 = vld [vmem:[%s3953_s1 + $0x4a4] ss:$8 sps:$4 sm:$0xff]  }
   0xf   :  { %1833 = vmatpush1.bf16.msra.mxu1 %v2563_v14  ;;  %v2605_v42 = vld [vmem:[%s3953_s1 + $0xa0] ss:$8 sps:$4 sm:$0xff]   ;;  %v2607_v44 = vld [vmem:[%s3953_s1 + $0xb4] ss:$8 sps:$4 sm:$0xff]   ;;  %v2611_v47 = vld [vmem:[%s3953_s1 + $0xb0] ss:$8 sps:$4 sm:$0xff]  }
  0x10   :  { %1997 = vmatpush1.bf16.msra.mxu0 %v2564_v15  ;;  %1834 = vmatprep.subr.bf16.mxu1 %v2565_v16  ;;  %v2606_v43 = vld [vmem:[%s3953_s1 + $0x4a0] ss:$8 sps:$4 sm:$0xff]   ;;  %v2609_v45 = vld [vmem:[%s3953_s1 + $0x4b4] ss:$8 sps:$4 sm:$0xff]   ;;  %v2612_v49 = vld [vmem:[%s3953_s1 + $0x4b0] ss:$8 sps:$4 sm:$0xff]  }
  0x11   :  { %1998 = vmatprep.subr.bf16.mxu0 %v2567_v17  ;;  %v14_v46 = vld [vmem:[%s3954_s0] sm:$0xff]  ;;  %v2619_v56 = vld [vmem:[%s3953_s1 + $0xd4] ss:$8 sps:$4 sm:$0xff]   ;;  %v2623_v58 = vld [vmem:[%s3953_s1 + $0xd0] ss:$8 sps:$4 sm:$0xff]  }
  0x12   :  { %v2204_v48 = vcombine.high %v14_v46, %v14_v46  ;;  %v18_v50 = vld [vmem:[%s3954_s0 + $0x20] sm:$0xff]  ;;  %v2621_v57 = vld [vmem:[%s3953_s1 + $0x4d4] ss:$8 sps:$4 sm:$0xff]   ;;  %v2624_v59 = vld [vmem:[%s3953_s1 + $0x4d0] ss:$8 sps:$4 sm:$0xff]   ;;  %v2203_v6 = vcombine.low %v14_v46, %v14_v46 }
  0x13   :  { %1835 = vmatpush1.bf16.msra.mxu1 %v2569_v18  ;;  %v2613_v51 = vld [vmem:[%s3953_s1 + $0xc4] ss:$8 sps:$4 sm:$0xff]   ;;  %v2212_v53 = vcombine.high %v18_v50, %v18_v50  ;;  %v2617_v54 = vld [vmem:[%s3953_s1 + $0xc0] ss:$8 sps:$4 sm:$0xff]   ;;  %v2631_v0 = vld [vmem:[%s3953_s1 + $0xf4] ss:$8 sps:$4 sm:$0xff]   ;;  %v2211_v7 = vcombine.low %v18_v50, %v18_v50 }
  0x14   :  { %1999 = vmatpush1.bf16.msra.mxu0 %v2570_v19  ;;  %1836 = vmatprep.subr.bf16.mxu1 %v2571_v20  ;;  %v2615_v52 = vld [vmem:[%s3953_s1 + $0x4c4] ss:$8 sps:$4 sm:$0xff]   ;;  %v2618_v55 = vld [vmem:[%s3953_s1 + $0x4c0] ss:$8 sps:$4 sm:$0xff]   ;;  %v2633_v1 = vld [vmem:[%s3953_s1 + $0x4f4] ss:$8 sps:$4 sm:$0xff]  }
  0x15   :  { %2000 = vmatprep.subr.bf16.mxu0 %v2573_v21  ;;  %1858 = vmatprep.mubr.bf16.mxu1 %v2204_v48  ;;  %v2625_v60 = vld [vmem:[%s3953_s1 + $0xe4] ss:$8 sps:$4 sm:$0xff]   ;;  %v2629_v62 = vld [vmem:[%s3953_s1 + $0xe0] ss:$8 sps:$4 sm:$0xff]   ;;  %v2635_v2 = vld [vmem:[%s3953_s1 + $0xf0] ss:$8 sps:$4 sm:$0xff]  }
  0x16   :  { %2022 = vmatprep.mubr.bf16.mxu0 %v2212_v53  ;;  %v2627_v61 = vld [vmem:[%s3953_s1 + $0x4e4] ss:$8 sps:$4 sm:$0xff]   ;;  %v2630_v63 = vld [vmem:[%s3953_s1 + $0x4e0] ss:$8 sps:$4 sm:$0xff]   ;;  %v2636_v3 = vld [vmem:[%s3953_s1 + $0x4f0] ss:$8 sps:$4 sm:$0xff]  }
  0x17   :  { %1837 = vmatpush1.bf16.msra.mxu1 %v2575_v22  ;;  %v2641_v4 = vld [vmem:[%s3953_s1 + $0x104] ss:$8 sps:$4 sm:$0xff]   ;;  %v2639_v8 = vld [vmem:[%s3953_s1 + $0x100] ss:$8 sps:$4 sm:$0xff]   ;;  %v2649_v10 = vld [vmem:[%s3953_s1 + $0x114] ss:$8 sps:$4 sm:$0xff]  }
  0x18   :  { %2001 = vmatpush1.bf16.msra.mxu0 %v2576_v23  ;;  %1838 = vmatprep.subr.bf16.mxu1 %v2577_v24  ;;  %v2646_v5 = vld [vmem:[%s3953_s1 + $0x504] ss:$8 sps:$4 sm:$0xff]   ;;  %v2644_v9 = vld [vmem:[%s3953_s1 + $0x500] ss:$8 sps:$4 sm:$0xff]   ;;  %v2652_v11 = vld [vmem:[%s3953_s1 + $0x514] ss:$8 sps:$4 sm:$0xff]  }
  0x19   :  { %2002 = vmatprep.subr.bf16.mxu0 %v2579_v25  ;;  %v2647_v12 = vld [vmem:[%s3953_s1 + $0x110] ss:$8 sps:$4 sm:$0xff]   ;;  %v2655_v14 = vld [vmem:[%s3953_s1 + $0x124] ss:$8 sps:$4 sm:$0xff]   ;;  %v2653_v16 = vld [vmem:[%s3953_s1 + $0x120] ss:$8 sps:$4 sm:$0xff]  }
  0x1a   :  { %v2650_v13 = vld [vmem:[%s3953_s1 + $0x510] ss:$8 sps:$4 sm:$0xff]   ;;  %v2658_v15 = vld [vmem:[%s3953_s1 + $0x524] ss:$8 sps:$4 sm:$0xff]   ;;  %v2656_v17 = vld [vmem:[%s3953_s1 + $0x520] ss:$8 sps:$4 sm:$0xff]  }
  0x1b   :  { %1839 = vmatpush1.bf16.msra.mxu1 %v2581_v26  ;;  %v2661_v18 = vld [vmem:[%s3953_s1 + $0x134] ss:$8 sps:$4 sm:$0xff]   ;;  %v2659_v20 = vld [vmem:[%s3953_s1 + $0x130] ss:$8 sps:$4 sm:$0xff]   ;;  %v2667_v22 = vld [vmem:[%s3953_s1 + $0x144] ss:$8 sps:$4 sm:$0xff]  }
  0x1c   :  { %2003 = vmatpush1.bf16.msra.mxu0 %v2582_v27  ;;  %1840 = vmatprep.subr.bf16.mxu1 %v2583_v28  ;;  %v2664_v19 = vld [vmem:[%s3953_s1 + $0x534] ss:$8 sps:$4 sm:$0xff]   ;;  %v2662_v21 = vld [vmem:[%s3953_s1 + $0x530] ss:$8 sps:$4 sm:$0xff]   ;;  %v2670_v23 = vld [vmem:[%s3953_s1 + $0x544] ss:$8 sps:$4 sm:$0xff]  }
  0x1d   :  { %2004 = vmatprep.subr.bf16.mxu0 %v2585_v29  ;;  %v2665_v24 = vld [vmem:[%s3953_s1 + $0x140] ss:$8 sps:$4 sm:$0xff]   ;;  %v2673_v26 = vld [vmem:[%s3953_s1 + $0x154] ss:$8 sps:$4 sm:$0xff]   ;;  %v2671_v28 = vld [vmem:[%s3953_s1 + $0x150] ss:$8 sps:$4 sm:$0xff]  }
  0x1e   :  { %v2668_v25 = vld [vmem:[%s3953_s1 + $0x540] ss:$8 sps:$4 sm:$0xff]   ;;  %v2676_v27 = vld [vmem:[%s3953_s1 + $0x554] ss:$8 sps:$4 sm:$0xff]   ;;  %v2674_v29 = vld [vmem:[%s3953_s1 + $0x550] ss:$8 sps:$4 sm:$0xff]  }
  0x1f   :  { %1841 = vmatpush1.bf16.msra.mxu1 %v2587_v30  ;;  %v2679_v30 = vld [vmem:[%s3953_s1 + $0x164] ss:$8 sps:$4 sm:$0xff]   ;;  %v2697_v46 = vld [vmem:[%s3953_s1 + $0x194] ss:$8 sps:$4 sm:$0xff]   ;;  %v2695_v48 = vld [vmem:[%s3953_s1 + $0x190] ss:$8 sps:$4 sm:$0xff]  }
  0x20   :  { %2005 = vmatpush1.bf16.msra.mxu0 %v2588_v31  ;;  %1842 = vmatprep.subr.bf16.mxu1 %v2589_v32  ;;  %v2682_v31 = vld [vmem:[%s3953_s1 + $0x564] ss:$8 sps:$4 sm:$0xff]   ;;  %v2704_v53 = vld [vmem:[%s3953_s1 + $0x5a0] ss:$8 sps:$4 sm:$0xff]  }
  0x21   :  { %2006 = vmatprep.subr.bf16.mxu0 %v2591_v33  ;;  %v3290_v32 = vld [vmem:[%s3954_s0 + $0x8] sm:$0xff] }
  0x22   :  { %v2677_v33 = vld [vmem:[%s3953_s1 + $0x160] ss:$8 sps:$4 sm:$0xff]   ;;  %v2703_v50 = vld [vmem:[%s3953_s1 + $0x1a4] ss:$8 sps:$4 sm:$0xff]  }
  0x23   :  { %1843 = vmatpush1.bf16.msra.mxu1 %v2593_v34  ;;  %v2680_v34 = vld [vmem:[%s3953_s1 + $0x560] ss:$8 sps:$4 sm:$0xff]  }
  0x24   :  { %2007 = vmatpush1.bf16.msra.mxu0 %v2594_v35  ;;  %1844 = vmatprep.subr.bf16.mxu1 %v2595_v36  ;;  %v2206_v35 = vcombine.high %v3290_v32, %v3290_v32  ;;  %v3303_v36 = vld [vmem:[%s3954_s0 + $0x28] sm:$0xff] }
  0x25   :  { %2008 = vmatprep.subr.bf16.mxu0 %v2597_v37  ;;  %v2685_v37 = vld [vmem:[%s3953_s1 + $0x174] ss:$8 sps:$4 sm:$0xff]  }
  0x27   :  { %1845 = vmatpush1.bf16.msra.mxu1 %v2599_v38  ;;  %v2214_v38 = vcombine.high %v3303_v36, %v3303_v36 }
  0x28   :  { %2009 = vmatpush1.bf16.msra.mxu0 %v2600_v39  ;;  %1846 = vmatprep.subr.bf16.mxu1 %v2601_v40  ;;  %v2688_v39 = vld [vmem:[%s3953_s1 + $0x574] ss:$8 sps:$4 sm:$0xff]   ;;  %v2683_v40 = vld [vmem:[%s3953_s1 + $0x170] ss:$8 sps:$4 sm:$0xff]  }
  0x29   :  { %2010 = vmatprep.subr.bf16.mxu0 %v2603_v41  ;;  %v2686_v41 = vld [vmem:[%s3953_s1 + $0x570] ss:$8 sps:$4 sm:$0xff]  }
  0x2b   :  { %1847 = vmatpush1.bf16.msra.mxu1 %v2605_v42  ;;  %v2691_v42 = vld [vmem:[%s3953_s1 + $0x184] ss:$8 sps:$4 sm:$0xff]  }
  0x2c   :  { %2011 = vmatpush1.bf16.msra.mxu0 %v2606_v43  ;;  %1848 = vmatprep.subr.bf16.mxu1 %v2607_v44  ;;  %v2694_v43 = vld [vmem:[%s3953_s1 + $0x584] ss:$8 sps:$4 sm:$0xff]   ;;  %v2689_v44 = vld [vmem:[%s3953_s1 + $0x180] ss:$8 sps:$4 sm:$0xff]  }
  0x2d   :  { %2012 = vmatprep.subr.bf16.mxu0 %v2609_v45  ;;  %v2692_v45 = vld [vmem:[%s3953_s1 + $0x580] ss:$8 sps:$4 sm:$0xff]  }
  0x2f   :  { %1849 = vmatpush1.bf16.msra.mxu1 %v2611_v47  ;;  %v2700_v47 = vld [vmem:[%s3953_s1 + $0x594] ss:$8 sps:$4 sm:$0xff]  }
  0x30   :  { %2013 = vmatpush1.bf16.msra.mxu0 %v2612_v49  ;;  %1850 = vmatprep.subr.bf16.mxu1 %v2613_v51  ;;  %v2698_v49 = vld [vmem:[%s3953_s1 + $0x590] ss:$8 sps:$4 sm:$0xff]   ;;  %v2706_v51 = vld [vmem:[%s3953_s1 + $0x5a4] ss:$8 sps:$4 sm:$0xff]  }
  0x31   :  { %2014 = vmatprep.subr.bf16.mxu0 %v2615_v52  ;;  %v2701_v52 = vld [vmem:[%s3953_s1 + $0x1a0] ss:$8 sps:$4 sm:$0xff]  }
  0x33   :  { %1851 = vmatpush1.bf16.msra.mxu1 %v2617_v54  ;;  %v2709_v54 = vld [vmem:[%s3953_s1 + $0x1b4] ss:$8 sps:$4 sm:$0xff]  }
  0x34   :  { %2015 = vmatpush1.bf16.msra.mxu0 %v2618_v55  ;;  %1852 = vmatprep.subr.bf16.mxu1 %v2619_v56  ;;  %v2712_v55 = vld [vmem:[%s3953_s1 + $0x5b4] ss:$8 sps:$4 sm:$0xff]   ;;  %v2707_v56 = vld [vmem:[%s3953_s1 + $0x1b0] ss:$8 sps:$4 sm:$0xff]  }
  0x35   :  { %2016 = vmatprep.subr.bf16.mxu0 %v2621_v57  ;;  %v2710_v57 = vld [vmem:[%s3953_s1 + $0x5b0] ss:$8 sps:$4 sm:$0xff]  }
  0x37   :  { %1853 = vmatpush1.bf16.msra.mxu1 %v2623_v58  ;;  %v2715_v58 = vld [vmem:[%s3953_s1 + $0x1c4] ss:$8 sps:$4 sm:$0xff]  }
  0x38   :  { %2017 = vmatpush1.bf16.msra.mxu0 %v2624_v59  ;;  %1854 = vmatprep.subr.bf16.mxu1 %v2625_v60  ;;  %v2718_v59 = vld [vmem:[%s3953_s1 + $0x5c4] ss:$8 sps:$4 sm:$0xff]   ;;  %v2713_v60 = vld [vmem:[%s3953_s1 + $0x1c0] ss:$8 sps:$4 sm:$0xff]  }
  0x39   :  { %2018 = vmatprep.subr.bf16.mxu0 %v2627_v61  ;;  %v2716_v61 = vld [vmem:[%s3953_s1 + $0x5c0] ss:$8 sps:$4 sm:$0xff]  }
  0x3b   :  { %1855 = vmatpush1.bf16.msra.mxu1 %v2629_v62  ;;  %v2721_v62 = vld [vmem:[%s3953_s1 + $0x1d4] ss:$8 sps:$4 sm:$0xff]  }
  0x3c   :  { %2019 = vmatpush1.bf16.msra.mxu0 %v2630_v63  ;;  %1856 = vmatprep.subr.bf16.mxu1 %v2631_v0  ;;  %v2724_v63 = vld [vmem:[%s3953_s1 + $0x5d4] ss:$8 sps:$4 sm:$0xff]   ;;  %v2719_v0 = vld [vmem:[%s3953_s1 + $0x1d0] ss:$8 sps:$4 sm:$0xff]  }
  0x3d   :  { %2020 = vmatprep.subr.bf16.mxu0 %v2633_v1  ;;  %v2722_v1 = vld [vmem:[%s3953_s1 + $0x5d0] ss:$8 sps:$4 sm:$0xff]  }
  0x3f   :  { %1857 = vmatpush1.bf16.msra.mxu1 %v2635_v2  ;;  %v2727_v2 = vld [vmem:[%s3953_s1 + $0x1e4] ss:$8 sps:$4 sm:$0xff]  }
  0x40   :  { %2021 = vmatpush1.bf16.msra.mxu0 %v2636_v3  ;;  %1867 = vmatprep.subr.bf16.mxu1 %v2641_v4  ;;  %v2730_v3 = vld [vmem:[%s3953_s1 + $0x5e4] ss:$8 sps:$4 sm:$0xff]   ;;  %v2725_v4 = vld [vmem:[%s3953_s1 + $0x1e0] ss:$8 sps:$4 sm:$0xff]  }
  0x41   :  { %2031 = vmatprep.subr.bf16.mxu0 %v2646_v5  ;;  %v2728_v5 = vld [vmem:[%s3953_s1 + $0x5e0] ss:$8 sps:$4 sm:$0xff]  }
  0x42   :  { %1859 = vmatmul.mubr.bf16.vlgmr.msra.gmra.mrb[0].mxu1 %v2203_v6  ;;  %v2733_v6 = vld [vmem:[%s3953_s1 + $0x1f4] ss:$8 sps:$4 sm:$0xff]  }
  0x43   :  { %2023 = vmatmul.mubr.bf16.vlgmr.msra.gmra.mrb[0].mxu0 %v2211_v7  ;;  %1868 = vmatpush1.bf16.msra.mxu1 %v2639_v8  ;;  %v2736_v7 = vld [vmem:[%s3953_s1 + $0x5f4] ss:$8 sps:$4 sm:$0xff]   ;;  %v2731_v8 = vld [vmem:[%s3953_s1 + $0x1f0] ss:$8 sps:$4 sm:$0xff]  }
  0x44   :  { %2032 = vmatpush1.bf16.msra.mxu0 %v2644_v9  ;;  %1869 = vmatprep.subr.bf16.mxu1 %v2649_v10  ;;  %v2734_v9 = vld [vmem:[%s3953_s1 + $0x5f0] ss:$8 sps:$4 sm:$0xff]   ;;  %v2741_v10 = vld [vmem:[%s3953_s1 + $0x204] ss:$8 sps:$4 sm:$0xff]  }
  0x45   :  { %2033 = vmatprep.subr.bf16.mxu0 %v2652_v11  ;;  %1899 = vmatprep.mubr.bf16.mxu1 %v2206_v35  ;;  %v2746_v11 = vld [vmem:[%s3953_s1 + $0x604] ss:$8 sps:$4 sm:$0xff]   ;;  %v2768_v35 = vld [vmem:[%s3953_s1 + $0x640] ss:$8 sps:$4 sm:$0xff]  }
  0x46   :  { %2063 = vmatprep.mubr.bf16.mxu0 %v2214_v38  ;;  %v2771_v38 = vld [vmem:[%s3953_s1 + $0x250] ss:$8 sps:$4 sm:$0xff]  }
  0x47   :  { %1870 = vmatpush1.bf16.msra.mxu1 %v2647_v12  ;;  %v2205_v12 = vcombine.low %v3290_v32, %v3290_v32  ;;  %v2767_v32 = vld [vmem:[%s3953_s1 + $0x244] ss:$8 sps:$4 sm:$0xff]  }
  0x48   :  { %2034 = vmatpush1.bf16.msra.mxu0 %v2650_v13  ;;  %1871 = vmatprep.subr.bf16.mxu1 %v2655_v14  ;;  %v2739_v13 = vld [vmem:[%s3953_s1 + $0x200] ss:$8 sps:$4 sm:$0xff]   ;;  %v2213_v14 = vcombine.low %v3303_v36, %v3303_v36  ;;  %v2773_v36 = vld [vmem:[%s3953_s1 + $0x254] ss:$8 sps:$4 sm:$0xff]  }
  0x49   :  { %2035 = vmatprep.subr.bf16.mxu0 %v2658_v15  ;;  %v2744_v15 = vld [vmem:[%s3953_s1 + $0x600] ss:$8 sps:$4 sm:$0xff]  }
  0x4b   :  { %1872 = vmatpush1.bf16.msra.mxu1 %v2653_v16  ;;  %v2749_v16 = vld [vmem:[%s3953_s1 + $0x214] ss:$8 sps:$4 sm:$0xff]  }
  0x4c   :  { %2036 = vmatpush1.bf16.msra.mxu0 %v2656_v17  ;;  %1873 = vmatprep.subr.bf16.mxu1 %v2661_v18  ;;  %v2752_v17 = vld [vmem:[%s3953_s1 + $0x614] ss:$8 sps:$4 sm:$0xff]  }
  0x4d   :  { %2037 = vmatprep.subr.bf16.mxu0 %v2664_v19  ;;  %v3440_v18 = vld [vmem:[%s3954_s0 + $0x10] sm:$0xff] }
  0x4e   :  { %v2208_v19 = vcombine.high %v3440_v18, %v3440_v18 }
  0x4f   :  { %1874 = vmatpush1.bf16.msra.mxu1 %v2659_v20  ;;  %v3447_v20 = vld [vmem:[%s3954_s0 + $0x30] sm:$0xff] }
  0x50   :  { %2038 = vmatpush1.bf16.msra.mxu0 %v2662_v21  ;;  %1875 = vmatprep.subr.bf16.mxu1 %v2667_v22  ;;  %v2747_v21 = vld [vmem:[%s3953_s1 + $0x210] ss:$8 sps:$4 sm:$0xff]  }
  0x51   :  { %2039 = vmatprep.subr.bf16.mxu0 %v2670_v23  ;;  %v2750_v22 = vld [vmem:[%s3953_s1 + $0x610] ss:$8 sps:$4 sm:$0xff]   ;;  %v2216_v23 = vcombine.high %v3447_v20, %v3447_v20 }
  0x53   :  { %1876 = vmatpush1.bf16.msra.mxu1 %v2665_v24  ;;  %v2755_v24 = vld [vmem:[%s3953_s1 + $0x224] ss:$8 sps:$4 sm:$0xff]  }
  0x54   :  { %2040 = vmatpush1.bf16.msra.mxu0 %v2668_v25  ;;  %1877 = vmatprep.subr.bf16.mxu1 %v2673_v26  ;;  %v2758_v25 = vld [vmem:[%s3953_s1 + $0x624] ss:$8 sps:$4 sm:$0xff]   ;;  %v2753_v26 = vld [vmem:[%s3953_s1 + $0x220] ss:$8 sps:$4 sm:$0xff]  }
  0x55   :  { %2041 = vmatprep.subr.bf16.mxu0 %v2676_v27  ;;  %v2756_v27 = vld [vmem:[%s3953_s1 + $0x620] ss:$8 sps:$4 sm:$0xff]  }
  0x57   :  { %1878 = vmatpush1.bf16.msra.mxu1 %v2671_v28  ;;  %v2761_v28 = vld [vmem:[%s3953_s1 + $0x234] ss:$8 sps:$4 sm:$0xff]  }
  0x58   :  { %2042 = vmatpush1.bf16.msra.mxu0 %v2674_v29  ;;  %1879 = vmatprep.subr.bf16.mxu1 %v2679_v30  ;;  %v2764_v29 = vld [vmem:[%s3953_s1 + $0x634] ss:$8 sps:$4 sm:$0xff]   ;;  %v2759_v30 = vld [vmem:[%s3953_s1 + $0x230] ss:$8 sps:$4 sm:$0xff]  }
  0x59   :  { %2043 = vmatprep.subr.bf16.mxu0 %v2682_v31  ;;  %v2762_v31 = vld [vmem:[%s3953_s1 + $0x630] ss:$8 sps:$4 sm:$0xff]  }
  0x5b   :  { %1880 = vmatpush1.bf16.msra.mxu1 %v2677_v33  ;;  %v2770_v33 = vld [vmem:[%s3953_s1 + $0x644] ss:$8 sps:$4 sm:$0xff]  }
  0x5c   :  { %2044 = vmatpush1.bf16.msra.mxu0 %v2680_v34  ;;  %1881 = vmatprep.subr.bf16.mxu1 %v2685_v37  ;;  %v2765_v34 = vld [vmem:[%s3953_s1 + $0x240] ss:$8 sps:$4 sm:$0xff]   ;;  %v2776_v37 = vld [vmem:[%s3953_s1 + $0x654] ss:$8 sps:$4 sm:$0xff]  }
  0x5d   :  { %2045 = vmatprep.subr.bf16.mxu0 %v2688_v39  ;;  %v2774_v39 = vld [vmem:[%s3953_s1 + $0x650] ss:$8 sps:$4 sm:$0xff]  }
  0x5f   :  { %1882 = vmatpush1.bf16.msra.mxu1 %v2683_v40  ;;  %v2779_v40 = vld [vmem:[%s3953_s1 + $0x264] ss:$8 sps:$4 sm:$0xff]  }
  0x60   :  { %2046 = vmatpush1.bf16.msra.mxu0 %v2686_v41  ;;  %1883 = vmatprep.subr.bf16.mxu1 %v2691_v42  ;;  %v2782_v41 = vld [vmem:[%s3953_s1 + $0x664] ss:$8 sps:$4 sm:$0xff]   ;;  %v2777_v42 = vld [vmem:[%s3953_s1 + $0x260] ss:$8 sps:$4 sm:$0xff]  }
  0x61   :  { %2047 = vmatprep.subr.bf16.mxu0 %v2694_v43  ;;  %v2780_v43 = vld [vmem:[%s3953_s1 + $0x660] ss:$8 sps:$4 sm:$0xff]  }
  0x63   :  { %1884 = vmatpush1.bf16.msra.mxu1 %v2689_v44  ;;  %v2785_v44 = vld [vmem:[%s3953_s1 + $0x274] ss:$8 sps:$4 sm:$0xff]  }
  0x64   :  { %2048 = vmatpush1.bf16.msra.mxu0 %v2692_v45  ;;  %1885 = vmatprep.subr.bf16.mxu1 %v2697_v46  ;;  %v2788_v45 = vld [vmem:[%s3953_s1 + $0x674] ss:$8 sps:$4 sm:$0xff]   ;;  %v2783_v46 = vld [vmem:[%s3953_s1 + $0x270] ss:$8 sps:$4 sm:$0xff]  }
  0x65   :  { %2049 = vmatprep.subr.bf16.mxu0 %v2700_v47  ;;  %v2786_v47 = vld [vmem:[%s3953_s1 + $0x670] ss:$8 sps:$4 sm:$0xff]  }
  0x67   :  { %1886 = vmatpush1.bf16.msra.mxu1 %v2695_v48  ;;  %v2791_v48 = vld [vmem:[%s3953_s1 + $0x284] ss:$8 sps:$4 sm:$0xff]  }
  0x68   :  { %2050 = vmatpush1.bf16.msra.mxu0 %v2698_v49  ;;  %1887 = vmatprep.subr.bf16.mxu1 %v2703_v50  ;;  %v2794_v49 = vld [vmem:[%s3953_s1 + $0x684] ss:$8 sps:$4 sm:$0xff]   ;;  %v2789_v50 = vld [vmem:[%s3953_s1 + $0x280] ss:$8 sps:$4 sm:$0xff]  }
  0x69   :  { %2051 = vmatprep.subr.bf16.mxu0 %v2706_v51  ;;  %v2792_v51 = vld [vmem:[%s3953_s1 + $0x680] ss:$8 sps:$4 sm:$0xff]  }
  0x6b   :  { %1888 = vmatpush1.bf16.msra.mxu1 %v2701_v52  ;;  %v2797_v52 = vld [vmem:[%s3953_s1 + $0x294] ss:$8 sps:$4 sm:$0xff]  }
  0x6c   :  { %2052 = vmatpush1.bf16.msra.mxu0 %v2704_v53  ;;  %1889 = vmatprep.subr.bf16.mxu1 %v2709_v54  ;;  %v2800_v53 = vld [vmem:[%s3953_s1 + $0x694] ss:$8 sps:$4 sm:$0xff]   ;;  %v2795_v54 = vld [vmem:[%s3953_s1 + $0x290] ss:$8 sps:$4 sm:$0xff]  }
  0x6d   :  { %2053 = vmatprep.subr.bf16.mxu0 %v2712_v55  ;;  %v2798_v55 = vld [vmem:[%s3953_s1 + $0x690] ss:$8 sps:$4 sm:$0xff]  }
  0x6f   :  { %1890 = vmatpush1.bf16.msra.mxu1 %v2707_v56  ;;  %v2803_v56 = vld [vmem:[%s3953_s1 + $0x2a4] ss:$8 sps:$4 sm:$0xff]  }
  0x70   :  { %2054 = vmatpush1.bf16.msra.mxu0 %v2710_v57  ;;  %1891 = vmatprep.subr.bf16.mxu1 %v2715_v58  ;;  %v2806_v57 = vld [vmem:[%s3953_s1 + $0x6a4] ss:$8 sps:$4 sm:$0xff]   ;;  %v2801_v58 = vld [vmem:[%s3953_s1 + $0x2a0] ss:$8 sps:$4 sm:$0xff]  }
  0x71   :  { %2055 = vmatprep.subr.bf16.mxu0 %v2718_v59  ;;  %v2804_v59 = vld [vmem:[%s3953_s1 + $0x6a0] ss:$8 sps:$4 sm:$0xff]  }
  0x73   :  { %1892 = vmatpush1.bf16.msra.mxu1 %v2713_v60  ;;  %v2809_v60 = vld [vmem:[%s3953_s1 + $0x2b4] ss:$8 sps:$4 sm:$0xff]  }
  0x74   :  { %2056 = vmatpush1.bf16.msra.mxu0 %v2716_v61  ;;  %1893 = vmatprep.subr.bf16.mxu1 %v2721_v62  ;;  %v2812_v61 = vld [vmem:[%s3953_s1 + $0x6b4] ss:$8 sps:$4 sm:$0xff]   ;;  %v2807_v62 = vld [vmem:[%s3953_s1 + $0x2b0] ss:$8 sps:$4 sm:$0xff]  }
  0x75   :  { %2057 = vmatprep.subr.bf16.mxu0 %v2724_v63  ;;  %v2810_v63 = vld [vmem:[%s3953_s1 + $0x6b0] ss:$8 sps:$4 sm:$0xff]  }
  0x77   :  { %1894 = vmatpush1.bf16.msra.mxu1 %v2719_v0  ;;  %v2815_v0 = vld [vmem:[%s3953_s1 + $0x2c4] ss:$8 sps:$4 sm:$0xff]  }
  0x78   :  { %2058 = vmatpush1.bf16.msra.mxu0 %v2722_v1  ;;  %1895 = vmatprep.subr.bf16.mxu1 %v2727_v2  ;;  %v2818_v1 = vld [vmem:[%s3953_s1 + $0x6c4] ss:$8 sps:$4 sm:$0xff]   ;;  %v2813_v2 = vld [vmem:[%s3953_s1 + $0x2c0] ss:$8 sps:$4 sm:$0xff]  }
  0x79   :  { %2059 = vmatprep.subr.bf16.mxu0 %v2730_v3  ;;  %v2816_v3 = vld [vmem:[%s3953_s1 + $0x6c0] ss:$8 sps:$4 sm:$0xff]  }
  0x7b   :  { %1896 = vmatpush1.bf16.msra.mxu1 %v2725_v4  ;;  %v2821_v4 = vld [vmem:[%s3953_s1 + $0x2d4] ss:$8 sps:$4 sm:$0xff]  }
  0x7c   :  { %2060 = vmatpush1.bf16.msra.mxu0 %v2728_v5  ;;  %1897 = vmatprep.subr.bf16.mxu1 %v2733_v6  ;;  %v2824_v5 = vld [vmem:[%s3953_s1 + $0x6d4] ss:$8 sps:$4 sm:$0xff]   ;;  %v2819_v6 = vld [vmem:[%s3953_s1 + $0x2d0] ss:$8 sps:$4 sm:$0xff]  }
  0x7d   :  { %2061 = vmatprep.subr.bf16.mxu0 %v2736_v7  ;;  %v2822_v7 = vld [vmem:[%s3953_s1 + $0x6d0] ss:$8 sps:$4 sm:$0xff]  }
  0x7f   :  { %1898 = vmatpush1.bf16.msra.mxu1 %v2731_v8  ;;  %v2827_v8 = vld [vmem:[%s3953_s1 + $0x2e4] ss:$8 sps:$4 sm:$0xff]  }
  0x80   :  { %2062 = vmatpush1.bf16.msra.mxu0 %v2734_v9  ;;  %1908 = vmatprep.subr.bf16.mxu1 %v2741_v10  ;;  %v2830_v9 = vld [vmem:[%s3953_s1 + $0x6e4] ss:$8 sps:$4 sm:$0xff]   ;;  %v2825_v10 = vld [vmem:[%s3953_s1 + $0x2e0] ss:$8 sps:$4 sm:$0xff]  }
  0x81   :  { %2072 = vmatprep.subr.bf16.mxu0 %v2746_v11  ;;  %v2828_v11 = vld [vmem:[%s3953_s1 + $0x6e0] ss:$8 sps:$4 sm:$0xff]  }
  0x82   :  { %1900 = vmatmul.mubr.bf16.vlgmr.msra.gmra.mrb[0].mxu1 %v2205_v12  ;;  %v2833_v12 = vld [vmem:[%s3953_s1 + $0x2f4] ss:$8 sps:$4 sm:$0xff]  }
  0x83   :  { %2064 = vmatmul.mubr.bf16.vlgmr.msra.gmra.mrb[0].mxu0 %v2213_v14  ;;  %1909 = vmatpush1.bf16.msra.mxu1 %v2739_v13  ;;  %v2836_v13 = vld [vmem:[%s3953_s1 + $0x6f4] ss:$8 sps:$4 sm:$0xff]   ;;  %v2831_v14 = vld [vmem:[%s3953_s1 + $0x2f0] ss:$8 sps:$4 sm:$0xff]  }
  0x84   :  { %2073 = vmatpush1.bf16.msra.mxu0 %v2744_v15  ;;  %1910 = vmatprep.subr.bf16.mxu1 %v2749_v16  ;;  %v2834_v15 = vld [vmem:[%s3953_s1 + $0x6f0] ss:$8 sps:$4 sm:$0xff]   ;;  %v2841_v16 = vld [vmem:[%s3953_s1 + $0x304] ss:$8 sps:$4 sm:$0xff]  }
  0x85   :  { %2074 = vmatprep.subr.bf16.mxu0 %v2752_v17  ;;  %1940 = vmatprep.mubr.bf16.mxu1 %v2208_v19  ;;  %v2846_v17 = vld [vmem:[%s3953_s1 + $0x704] ss:$8 sps:$4 sm:$0xff]   ;;  %v2839_v19 = vld [vmem:[%s3953_s1 + $0x300] ss:$8 sps:$4 sm:$0xff]  }
  0x86   :  { %2104 = vmatprep.mubr.bf16.mxu0 %v2216_v23  ;;  %v2215_v23 = vcombine.low %v3447_v20, %v3447_v20 }
  0x87   :  { %1911 = vmatpush1.bf16.msra.mxu1 %v2747_v21  ;;  %v2844_v21 = vld [vmem:[%s3953_s1 + $0x700] ss:$8 sps:$4 sm:$0xff]  }
  0x88   :  { %2075 = vmatpush1.bf16.msra.mxu0 %v2750_v22  ;;  %1912 = vmatprep.subr.bf16.mxu1 %v2755_v24  ;;  %v2207_v22 = vcombine.low %v3440_v18, %v3440_v18  ;;  %v3644_v24 = vld [vmem:[%s3954_s0 + $0x18] sm:$0xff] }
  0x89   :  { %2076 = vmatprep.subr.bf16.mxu0 %v2758_v25  ;;  %v3649_v25 = vld [vmem:[%s3954_s0 + $0x38] sm:$0xff]  ;;  %v2210_v20 = vcombine.high %v3644_v24, %v3644_v24 }
  0x8a   :  { %v2852_v18 = vld [vmem:[%s3953_s1 + $0x714] ss:$8 sps:$4 sm:$0xff]  }
  0x8b   :  { %1913 = vmatpush1.bf16.msra.mxu1 %v2753_v26  ;;  %v2849_v26 = vld [vmem:[%s3953_s1 + $0x314] ss:$8 sps:$4 sm:$0xff]  }
  0x8c   :  { %2077 = vmatpush1.bf16.msra.mxu0 %v2756_v27  ;;  %1914 = vmatprep.subr.bf16.mxu1 %v2761_v28  ;;  %v2218_v27 = vcombine.high %v3649_v25, %v3649_v25  ;;  %v2847_v28 = vld [vmem:[%s3953_s1 + $0x310] ss:$8 sps:$4 sm:$0xff]  }
  0x8d   :  { %2078 = vmatprep.subr.bf16.mxu0 %v2764_v29  ;;  %v2850_v29 = vld [vmem:[%s3953_s1 + $0x710] ss:$8 sps:$4 sm:$0xff]  }
  0x8f   :  { %1915 = vmatpush1.bf16.msra.mxu1 %v2759_v30  ;;  %v2855_v30 = vld [vmem:[%s3953_s1 + $0x324] ss:$8 sps:$4 sm:$0xff]  }
  0x90   :  { %2079 = vmatpush1.bf16.msra.mxu0 %v2762_v31  ;;  %1916 = vmatprep.subr.bf16.mxu1 %v2767_v32  ;;  %v2858_v31 = vld [vmem:[%s3953_s1 + $0x724] ss:$8 sps:$4 sm:$0xff]   ;;  %v2853_v32 = vld [vmem:[%s3953_s1 + $0x320] ss:$8 sps:$4 sm:$0xff]  }
  0x91   :  { %2080 = vmatprep.subr.bf16.mxu0 %v2770_v33  ;;  %v2856_v33 = vld [vmem:[%s3953_s1 + $0x720] ss:$8 sps:$4 sm:$0xff]  }
  0x93   :  { %1917 = vmatpush1.bf16.msra.mxu1 %v2765_v34  ;;  %v2861_v34 = vld [vmem:[%s3953_s1 + $0x334] ss:$8 sps:$4 sm:$0xff]  }
  0x94   :  { %2081 = vmatpush1.bf16.msra.mxu0 %v2768_v35  ;;  %1918 = vmatprep.subr.bf16.mxu1 %v2773_v36  ;;  %v2864_v35 = vld [vmem:[%s3953_s1 + $0x734] ss:$8 sps:$4 sm:$0xff]   ;;  %v2859_v36 = vld [vmem:[%s3953_s1 + $0x330] ss:$8 sps:$4 sm:$0xff]  }
  0x95   :  { %2082 = vmatprep.subr.bf16.mxu0 %v2776_v37  ;;  %v2862_v37 = vld [vmem:[%s3953_s1 + $0x730] ss:$8 sps:$4 sm:$0xff]  }
  0x97   :  { %1919 = vmatpush1.bf16.msra.mxu1 %v2771_v38  ;;  %v2867_v38 = vld [vmem:[%s3953_s1 + $0x344] ss:$8 sps:$4 sm:$0xff]  }
  0x98   :  { %2083 = vmatpush1.bf16.msra.mxu0 %v2774_v39  ;;  %1920 = vmatprep.subr.bf16.mxu1 %v2779_v40  ;;  %v2870_v39 = vld [vmem:[%s3953_s1 + $0x744] ss:$8 sps:$4 sm:$0xff]   ;;  %v2865_v40 = vld [vmem:[%s3953_s1 + $0x340] ss:$8 sps:$4 sm:$0xff]  }
  0x99   :  { %2084 = vmatprep.subr.bf16.mxu0 %v2782_v41  ;;  %v2868_v41 = vld [vmem:[%s3953_s1 + $0x740] ss:$8 sps:$4 sm:$0xff]  }
  0x9b   :  { %1921 = vmatpush1.bf16.msra.mxu1 %v2777_v42  ;;  %v2873_v42 = vld [vmem:[%s3953_s1 + $0x354] ss:$8 sps:$4 sm:$0xff]  }
  0x9c   :  { %2085 = vmatpush1.bf16.msra.mxu0 %v2780_v43  ;;  %1922 = vmatprep.subr.bf16.mxu1 %v2785_v44  ;;  %v2876_v43 = vld [vmem:[%s3953_s1 + $0x754] ss:$8 sps:$4 sm:$0xff]   ;;  %v2871_v44 = vld [vmem:[%s3953_s1 + $0x350] ss:$8 sps:$4 sm:$0xff]  }
  0x9d   :  { %2086 = vmatprep.subr.bf16.mxu0 %v2788_v45  ;;  %v2874_v45 = vld [vmem:[%s3953_s1 + $0x750] ss:$8 sps:$4 sm:$0xff]  }
  0x9f   :  { %1923 = vmatpush1.bf16.msra.mxu1 %v2783_v46  ;;  %v2879_v46 = vld [vmem:[%s3953_s1 + $0x364] ss:$8 sps:$4 sm:$0xff]  }
  0xa0   :  { %2087 = vmatpush1.bf16.msra.mxu0 %v2786_v47  ;;  %1924 = vmatprep.subr.bf16.mxu1 %v2791_v48  ;;  %v2882_v47 = vld [vmem:[%s3953_s1 + $0x764] ss:$8 sps:$4 sm:$0xff]   ;;  %v2877_v48 = vld [vmem:[%s3953_s1 + $0x360] ss:$8 sps:$4 sm:$0xff]  }
  0xa1   :  { %2088 = vmatprep.subr.bf16.mxu0 %v2794_v49  ;;  %v2880_v49 = vld [vmem:[%s3953_s1 + $0x760] ss:$8 sps:$4 sm:$0xff]  }
  0xa3   :  { %1925 = vmatpush1.bf16.msra.mxu1 %v2789_v50  ;;  %v2885_v50 = vld [vmem:[%s3953_s1 + $0x374] ss:$8 sps:$4 sm:$0xff]  }
  0xa4   :  { %2089 = vmatpush1.bf16.msra.mxu0 %v2792_v51  ;;  %1926 = vmatprep.subr.bf16.mxu1 %v2797_v52  ;;  %v2888_v51 = vld [vmem:[%s3953_s1 + $0x774] ss:$8 sps:$4 sm:$0xff]   ;;  %v2883_v52 = vld [vmem:[%s3953_s1 + $0x370] ss:$8 sps:$4 sm:$0xff]  }
  0xa5   :  { %2090 = vmatprep.subr.bf16.mxu0 %v2800_v53  ;;  %v2886_v53 = vld [vmem:[%s3953_s1 + $0x770] ss:$8 sps:$4 sm:$0xff]  }
  0xa7   :  { %1927 = vmatpush1.bf16.msra.mxu1 %v2795_v54  ;;  %v2891_v54 = vld [vmem:[%s3953_s1 + $0x384] ss:$8 sps:$4 sm:$0xff]  }
  0xa8   :  { %2091 = vmatpush1.bf16.msra.mxu0 %v2798_v55  ;;  %1928 = vmatprep.subr.bf16.mxu1 %v2803_v56  ;;  %v2894_v55 = vld [vmem:[%s3953_s1 + $0x784] ss:$8 sps:$4 sm:$0xff]   ;;  %v2889_v56 = vld [vmem:[%s3953_s1 + $0x380] ss:$8 sps:$4 sm:$0xff]  }
  0xa9   :  { %2092 = vmatprep.subr.bf16.mxu0 %v2806_v57  ;;  %v2892_v57 = vld [vmem:[%s3953_s1 + $0x780] ss:$8 sps:$4 sm:$0xff]  }
  0xab   :  { %1929 = vmatpush1.bf16.msra.mxu1 %v2801_v58  ;;  %v2897_v58 = vld [vmem:[%s3953_s1 + $0x394] ss:$8 sps:$4 sm:$0xff]  }
  0xac   :  { %2093 = vmatpush1.bf16.msra.mxu0 %v2804_v59  ;;  %1930 = vmatprep.subr.bf16.mxu1 %v2809_v60  ;;  %v2900_v59 = vld [vmem:[%s3953_s1 + $0x794] ss:$8 sps:$4 sm:$0xff]   ;;  %v2895_v60 = vld [vmem:[%s3953_s1 + $0x390] ss:$8 sps:$4 sm:$0xff]  }
  0xad   :  { %2094 = vmatprep.subr.bf16.mxu0 %v2812_v61  ;;  %v2898_v61 = vld [vmem:[%s3953_s1 + $0x790] ss:$8 sps:$4 sm:$0xff]  }
  0xaf   :  { %1931 = vmatpush1.bf16.msra.mxu1 %v2807_v62  ;;  %v2903_v62 = vld [vmem:[%s3953_s1 + $0x3a4] ss:$8 sps:$4 sm:$0xff]  }
  0xb0   :  { %2095 = vmatpush1.bf16.msra.mxu0 %v2810_v63  ;;  %1932 = vmatprep.subr.bf16.mxu1 %v2815_v0  ;;  %v2906_v63 = vld [vmem:[%s3953_s1 + $0x7a4] ss:$8 sps:$4 sm:$0xff]   ;;  %v2901_v0 = vld [vmem:[%s3953_s1 + $0x3a0] ss:$8 sps:$4 sm:$0xff]  }
  0xb1   :  { %2096 = vmatprep.subr.bf16.mxu0 %v2818_v1  ;;  %v2904_v1 = vld [vmem:[%s3953_s1 + $0x7a0] ss:$8 sps:$4 sm:$0xff]  }
  0xb3   :  { %1933 = vmatpush1.bf16.msra.mxu1 %v2813_v2  ;;  %v2909_v2 = vld [vmem:[%s3953_s1 + $0x3b4] ss:$8 sps:$4 sm:$0xff]  }
  0xb4   :  { %2097 = vmatpush1.bf16.msra.mxu0 %v2816_v3  ;;  %1934 = vmatprep.subr.bf16.mxu1 %v2821_v4  ;;  %v2912_v3 = vld [vmem:[%s3953_s1 + $0x7b4] ss:$8 sps:$4 sm:$0xff]   ;;  %v2907_v4 = vld [vmem:[%s3953_s1 + $0x3b0] ss:$8 sps:$4 sm:$0xff]  }
  0xb5   :  { %2098 = vmatprep.subr.bf16.mxu0 %v2824_v5  ;;  %v2910_v5 = vld [vmem:[%s3953_s1 + $0x7b0] ss:$8 sps:$4 sm:$0xff]  }
  0xb7   :  { %1935 = vmatpush1.bf16.msra.mxu1 %v2819_v6  ;;  %v2915_v6 = vld [vmem:[%s3953_s1 + $0x3c4] ss:$8 sps:$4 sm:$0xff]  }
  0xb8   :  { %2099 = vmatpush1.bf16.msra.mxu0 %v2822_v7  ;;  %1936 = vmatprep.subr.bf16.mxu1 %v2827_v8  ;;  %v2918_v7 = vld [vmem:[%s3953_s1 + $0x7c4] ss:$8 sps:$4 sm:$0xff]   ;;  %v2913_v8 = vld [vmem:[%s3953_s1 + $0x3c0] ss:$8 sps:$4 sm:$0xff]  }
  0xb9   :  { %2100 = vmatprep.subr.bf16.mxu0 %v2830_v9  ;;  %v2916_v9 = vld [vmem:[%s3953_s1 + $0x7c0] ss:$8 sps:$4 sm:$0xff]  }
  0xbb   :  { %1937 = vmatpush1.bf16.msra.mxu1 %v2825_v10  ;;  %v2921_v10 = vld [vmem:[%s3953_s1 + $0x3d4] ss:$8 sps:$4 sm:$0xff]  }
  0xbc   :  { %2101 = vmatpush1.bf16.msra.mxu0 %v2828_v11  ;;  %1938 = vmatprep.subr.bf16.mxu1 %v2833_v12  ;;  %v2924_v11 = vld [vmem:[%s3953_s1 + $0x7d4] ss:$8 sps:$4 sm:$0xff]   ;;  %v2919_v12 = vld [vmem:[%s3953_s1 + $0x3d0] ss:$8 sps:$4 sm:$0xff]  }
  0xbd   :  { %2102 = vmatprep.subr.bf16.mxu0 %v2836_v13  ;;  %v2922_v13 = vld [vmem:[%s3953_s1 + $0x7d0] ss:$8 sps:$4 sm:$0xff]  }
  0xbf   :  { %1939 = vmatpush1.bf16.msra.mxu1 %v2831_v14  ;;  %v2927_v14 = vld [vmem:[%s3953_s1 + $0x3e4] ss:$8 sps:$4 sm:$0xff]  }
  0xc0   :  { %2103 = vmatpush1.bf16.msra.mxu0 %v2834_v15  ;;  %1949 = vmatprep.subr.bf16.mxu1 %v2841_v16  ;;  %v2930_v15 = vld [vmem:[%s3953_s1 + $0x7e4] ss:$8 sps:$4 sm:$0xff]   ;;  %v2925_v16 = vld [vmem:[%s3953_s1 + $0x3e0] ss:$8 sps:$4 sm:$0xff]  }
  0xc1   :  { %2113 = vmatprep.subr.bf16.mxu0 %v2846_v17  ;;  %v2928_v17 = vld [vmem:[%s3953_s1 + $0x7e0] ss:$8 sps:$4 sm:$0xff]  }
  0xc2   :  { %1941 = vmatmul.mubr.bf16.vlgmr.msra.gmra.mrb[0].mxu1 %v2207_v22  ;;  %v2931_v22 = vld [vmem:[%s3953_s1 + $0x3f0] ss:$8 sps:$4 sm:$0xff]  }
  0xc3   :  { %2105 = vmatmul.mubr.bf16.vlgmr.msra.gmra.mrb[0].mxu0 %v2215_v23  ;;  %1950 = vmatpush1.bf16.msra.mxu1 %v2839_v19  ;;  %v2933_v19 = vld [vmem:[%s3953_s1 + $0x3f4] ss:$8 sps:$4 sm:$0xff]   ;;  %v2934_v23 = vld [vmem:[%s3953_s1 + $0x7f0] ss:$8 sps:$4 sm:$0xff]  }
  0xc4   :  { %2114 = vmatpush1.bf16.msra.mxu0 %v2844_v21  ;;  %1951 = vmatprep.subr.bf16.mxu1 %v2849_v26  ;;  %v2936_v21 = vld [vmem:[%s3953_s1 + $0x7f4] ss:$8 sps:$4 sm:$0xff]   ;;  %v2943_v26 = vld [vmem:[%s3953_s1 + $0x804] ss:$8 sps:$4 sm:$0xff]  }
  0xc5   :  { %2115 = vmatprep.subr.bf16.mxu0 %v2852_v18  ;;  %1981 = vmatprep.mubr.bf16.mxu1 %v2210_v20  ;;  %v3841_v18 = vld [vmem:[%s3954_s0 + $0x40] sm:$0xff]  ;;  %v2209_v20 = vcombine.low %v3644_v24, %v3644_v24  ;;  %v2944_v24 = vld [vmem:[%s3953_s1 + $0x810] ss:$8 sps:$4 sm:$0xff]  }
  0xc6   :  { %2145 = vmatprep.mubr.bf16.mxu0 %v2218_v27  ;;  %v2217_v27 = vcombine.low %v3649_v25, %v3649_v25  ;;  %v2949_v25 = vld [vmem:[%s3953_s1 + $0x824] ss:$8 sps:$4 sm:$0xff]  }
  0xc7   :  { %1952 = vmatpush1.bf16.msra.mxu1 %v2847_v28  ;;  %v2941_v28 = vld [vmem:[%s3953_s1 + $0x800] ss:$8 sps:$4 sm:$0xff]  }
  0xc8   :  { %2116 = vmatpush1.bf16.msra.mxu0 %v2850_v29  ;;  %1953 = vmatprep.subr.bf16.mxu1 %v2855_v30  ;;  %v2220_v29 = vcombine.high %v3841_v18, %v3841_v18  ;;  %v2946_v30 = vld [vmem:[%s3953_s1 + $0x814] ss:$8 sps:$4 sm:$0xff]  }
  0xc9   :  { %2117 = vmatprep.subr.bf16.mxu0 %v2858_v31  ;;  %v2947_v31 = vld [vmem:[%s3953_s1 + $0x820] ss:$8 sps:$4 sm:$0xff]  }
  0xcb   :  { %1954 = vmatpush1.bf16.msra.mxu1 %v2853_v32  ;;  %v2952_v32 = vld [vmem:[%s3953_s1 + $0x834] ss:$8 sps:$4 sm:$0xff]  }
  0xcc   :  { %2118 = vmatpush1.bf16.msra.mxu0 %v2856_v33  ;;  %1955 = vmatprep.subr.bf16.mxu1 %v2861_v34  ;;  %v2950_v33 = vld [vmem:[%s3953_s1 + $0x830] ss:$8 sps:$4 sm:$0xff]   ;;  %v2955_v34 = vld [vmem:[%s3953_s1 + $0x844] ss:$8 sps:$4 sm:$0xff]  }
  0xcd   :  { %2119 = vmatprep.subr.bf16.mxu0 %v2864_v35  ;;  %v2953_v35 = vld [vmem:[%s3953_s1 + $0x840] ss:$8 sps:$4 sm:$0xff]  }
  0xcf   :  { %1956 = vmatpush1.bf16.msra.mxu1 %v2859_v36  ;;  %v2958_v36 = vld [vmem:[%s3953_s1 + $0x854] ss:$8 sps:$4 sm:$0xff]  }
  0xd0   :  { %2120 = vmatpush1.bf16.msra.mxu0 %v2862_v37  ;;  %1957 = vmatprep.subr.bf16.mxu1 %v2867_v38  ;;  %v2956_v37 = vld [vmem:[%s3953_s1 + $0x850] ss:$8 sps:$4 sm:$0xff]   ;;  %v2961_v38 = vld [vmem:[%s3953_s1 + $0x864] ss:$8 sps:$4 sm:$0xff]  }
  0xd1   :  { %2121 = vmatprep.subr.bf16.mxu0 %v2870_v39  ;;  %v2959_v39 = vld [vmem:[%s3953_s1 + $0x860] ss:$8 sps:$4 sm:$0xff]  }
  0xd3   :  { %1958 = vmatpush1.bf16.msra.mxu1 %v2865_v40  ;;  %v2964_v40 = vld [vmem:[%s3953_s1 + $0x874] ss:$8 sps:$4 sm:$0xff]  }
  0xd4   :  { %2122 = vmatpush1.bf16.msra.mxu0 %v2868_v41  ;;  %1959 = vmatprep.subr.bf16.mxu1 %v2873_v42  ;;  %v2962_v41 = vld [vmem:[%s3953_s1 + $0x870] ss:$8 sps:$4 sm:$0xff]   ;;  %v2967_v42 = vld [vmem:[%s3953_s1 + $0x884] ss:$8 sps:$4 sm:$0xff]  }
  0xd5   :  { %2123 = vmatprep.subr.bf16.mxu0 %v2876_v43  ;;  %v2965_v43 = vld [vmem:[%s3953_s1 + $0x880] ss:$8 sps:$4 sm:$0xff]  }
  0xd7   :  { %1960 = vmatpush1.bf16.msra.mxu1 %v2871_v44  ;;  %v2970_v44 = vld [vmem:[%s3953_s1 + $0x894] ss:$8 sps:$4 sm:$0xff]  }
  0xd8   :  { %2124 = vmatpush1.bf16.msra.mxu0 %v2874_v45  ;;  %1961 = vmatprep.subr.bf16.mxu1 %v2879_v46  ;;  %v2968_v45 = vld [vmem:[%s3953_s1 + $0x890] ss:$8 sps:$4 sm:$0xff]   ;;  %v2973_v46 = vld [vmem:[%s3953_s1 + $0x8a4] ss:$8 sps:$4 sm:$0xff]  }
  0xd9   :  { %2125 = vmatprep.subr.bf16.mxu0 %v2882_v47  ;;  %v2971_v47 = vld [vmem:[%s3953_s1 + $0x8a0] ss:$8 sps:$4 sm:$0xff]  }
  0xdb   :  { %1962 = vmatpush1.bf16.msra.mxu1 %v2877_v48  ;;  %v2976_v48 = vld [vmem:[%s3953_s1 + $0x8b4] ss:$8 sps:$4 sm:$0xff]  }
  0xdc   :  { %2126 = vmatpush1.bf16.msra.mxu0 %v2880_v49  ;;  %1963 = vmatprep.subr.bf16.mxu1 %v2885_v50  ;;  %v2974_v49 = vld [vmem:[%s3953_s1 + $0x8b0] ss:$8 sps:$4 sm:$0xff]   ;;  %v2979_v50 = vld [vmem:[%s3953_s1 + $0x8c4] ss:$8 sps:$4 sm:$0xff]  }
  0xdd   :  { %2127 = vmatprep.subr.bf16.mxu0 %v2888_v51  ;;  %v2977_v51 = vld [vmem:[%s3953_s1 + $0x8c0] ss:$8 sps:$4 sm:$0xff]  }
  0xdf   :  { %1964 = vmatpush1.bf16.msra.mxu1 %v2883_v52  ;;  %v2982_v52 = vld [vmem:[%s3953_s1 + $0x8d4] ss:$8 sps:$4 sm:$0xff]  }
  0xe0   :  { %2128 = vmatpush1.bf16.msra.mxu0 %v2886_v53  ;;  %1965 = vmatprep.subr.bf16.mxu1 %v2891_v54  ;;  %v2980_v53 = vld [vmem:[%s3953_s1 + $0x8d0] ss:$8 sps:$4 sm:$0xff]   ;;  %v2985_v54 = vld [vmem:[%s3953_s1 + $0x8e4] ss:$8 sps:$4 sm:$0xff]  }
  0xe1   :  { %2129 = vmatprep.subr.bf16.mxu0 %v2894_v55  ;;  %v2983_v55 = vld [vmem:[%s3953_s1 + $0x8e0] ss:$8 sps:$4 sm:$0xff]  }
  0xe3   :  { %1966 = vmatpush1.bf16.msra.mxu1 %v2889_v56  ;;  %v2988_v56 = vld [vmem:[%s3953_s1 + $0x8f4] ss:$8 sps:$4 sm:$0xff]  }
  0xe4   :  { %2130 = vmatpush1.bf16.msra.mxu0 %v2892_v57  ;;  %1967 = vmatprep.subr.bf16.mxu1 %v2897_v58  ;;  %v2986_v57 = vld [vmem:[%s3953_s1 + $0x8f0] ss:$8 sps:$4 sm:$0xff]   ;;  %v2219_v58 = vcombine.low %v3841_v18, %v3841_v18 }
  0xe5   :  { %2131 = vmatprep.subr.bf16.mxu0 %v2900_v59 }
  0xe7   :  { %1968 = vmatpush1.bf16.msra.mxu1 %v2895_v60 }
  0xe8   :  { %2132 = vmatpush1.bf16.msra.mxu0 %v2898_v61  ;;  %1969 = vmatprep.subr.bf16.mxu1 %v2903_v62 }
  0xe9   :  { %2133 = vmatprep.subr.bf16.mxu0 %v2906_v63  ;;  %v313_v63 = vlaneseq }
  0xeb   :  { %1970 = vmatpush1.bf16.msra.mxu1 %v2901_v0  ;;  %v314_v0 = vshrl.u32 %v313_v63, 7 }
  0xec   :  { %2134 = vmatpush1.bf16.msra.mxu0 %v2904_v1  ;;  %1971 = vmatprep.subr.bf16.mxu1 %v2909_v2  ;;  %v311_v2 = vld [vmem:[%s3955_s2] sm:$0x3] }
  0xed   :  { %2135 = vmatprep.subr.bf16.mxu0 %v2912_v3  ;;  %v315_v1 = vsub.s32 0, %v314_v0  ;;  %v319_v3 = vsub.s32 1, %v314_v0 }
  0xef   :  { %1972 = vmatpush1.bf16.msra.mxu1 %v2907_v4  ;;  %v316_v4 = vrot.slane %v311_v2, %v315_v1 }
  0xf0   :  { %2136 = vmatpush1.bf16.msra.mxu0 %v2910_v5  ;;  %1973 = vmatprep.subr.bf16.mxu1 %v2915_v6  ;;  %v320_v5 = vrot.slane %v311_v2, %v319_v3 }
  0xf1   :  { %2137 = vmatprep.subr.bf16.mxu0 %v2918_v7 }
  0xf3   :  { %1974 = vmatpush1.bf16.msra.mxu1 %v2913_v8 }
  0xf4   :  { %2138 = vmatpush1.bf16.msra.mxu0 %v2916_v9  ;;  %1975 = vmatprep.subr.bf16.mxu1 %v2921_v10 }
  0xf5   :  { %2139 = vmatprep.subr.bf16.mxu0 %v2924_v11 }
  0xf7   :  { %1976 = vmatpush1.bf16.msra.mxu1 %v2919_v12 }
  0xf8   :  { %2140 = vmatpush1.bf16.msra.mxu0 %v2922_v13  ;;  %1977 = vmatprep.subr.bf16.mxu1 %v2927_v14 }
  0xf9   :  { %2141 = vmatprep.subr.bf16.mxu0 %v2930_v15 }
  0xfb   :  { %1978 = vmatpush1.bf16.msra.mxu1 %v2925_v16 }
  0xfc   :  { %2142 = vmatpush1.bf16.msra.mxu0 %v2928_v17  ;;  %1979 = vmatprep.subr.bf16.mxu1 %v2933_v19 }
  0xfd   :  { %2143 = vmatprep.subr.bf16.mxu0 %v2936_v21 }
  0xff   :  { %1980 = vmatpush1.bf16.msra.mxu1 %v2931_v22 }
 0x100   :  { %2144 = vmatpush1.bf16.msra.mxu0 %v2934_v23 }
 0x101   :  { %2154 = vmatprep.subr.bf16.mxu0 %v2943_v26 }
 0x102   :  { %1982 = vmatmul.mubr.bf16.vlgmr.msra.gmra.mrb[0].mxu1 %v2209_v20 }
 0x103   :  { %2146 = vmatmul.mubr.bf16.vlgmr.msra.gmra.mrb[0].mxu0 %v2217_v27 }
 0x104   :  { %2155 = vmatpush1.bf16.msra.mxu0 %v2941_v28  ;;  %2186 = vmatprep.mubr.bf16.mxu0 %v2220_v29 }
 0x105   :  { %2156 = vmatprep.subr.bf16.mxu0 %v2946_v30 }
 0x108   :  { %2157 = vmatpush1.bf16.msra.mxu0 %v2944_v24 }
 0x109   :  { %2158 = vmatprep.subr.bf16.mxu0 %v2949_v25 }
 0x10c   :  { %2159 = vmatpush1.bf16.msra.mxu0 %v2947_v31 }
 0x10d   :  { %2160 = vmatprep.subr.bf16.mxu0 %v2952_v32 }
 0x110   :  { %2161 = vmatpush1.bf16.msra.mxu0 %v2950_v33 }
 0x111   :  { %2162 = vmatprep.subr.bf16.mxu0 %v2955_v34 }
 0x114   :  { %2163 = vmatpush1.bf16.msra.mxu0 %v2953_v35 }
 0x115   :  { %2164 = vmatprep.subr.bf16.mxu0 %v2958_v36 }
 0x118   :  { %2165 = vmatpush1.bf16.msra.mxu0 %v2956_v37 }
 0x119   :  { %2166 = vmatprep.subr.bf16.mxu0 %v2961_v38 }
 0x11c   :  { %2167 = vmatpush1.bf16.msra.mxu0 %v2959_v39 }
 0x11d   :  { %2168 = vmatprep.subr.bf16.mxu0 %v2964_v40 }
 0x120   :  { %2169 = vmatpush1.bf16.msra.mxu0 %v2962_v41 }
 0x121   :  { %2170 = vmatprep.subr.bf16.mxu0 %v2967_v42 }
 0x124   :  { %2171 = vmatpush1.bf16.msra.mxu0 %v2965_v43 }
 0x125   :  { %2172 = vmatprep.subr.bf16.mxu0 %v2970_v44 }
 0x128   :  { %2173 = vmatpush1.bf16.msra.mxu0 %v2968_v45 }
 0x129   :  { %2174 = vmatprep.subr.bf16.mxu0 %v2973_v46 }
 0x12c   :  { %2175 = vmatpush1.bf16.msra.mxu0 %v2971_v47 }
 0x12d   :  { %2176 = vmatprep.subr.bf16.mxu0 %v2976_v48 }
 0x130   :  { %2177 = vmatpush1.bf16.msra.mxu0 %v2974_v49 }
 0x131   :  { %2178 = vmatprep.subr.bf16.mxu0 %v2979_v50 }
 0x134   :  { %2179 = vmatpush1.bf16.msra.mxu0 %v2977_v51 }
 0x135   :  { %2180 = vmatprep.subr.bf16.mxu0 %v2982_v52 }
 0x138   :  { %2181 = vmatpush1.bf16.msra.mxu0 %v2980_v53 }
 0x139   :  { %2182 = vmatprep.subr.bf16.mxu0 %v2985_v54 }
 0x13c   :  { %2183 = vmatpush1.bf16.msra.mxu0 %v2983_v55 }
 0x13d   :  { %2184 = vmatprep.subr.bf16.mxu0 %v2988_v56 }
 0x140   :  { %2185 = vmatpush1.bf16.msra.mxu0 %v2986_v57 }
 0x143   :  { %2187 = vmatmul.mubr.bf16.vlgmr.msra.gmra.mrb[0].mxu0 %v2219_v58 }
 0x1d5   :  { %v1983_v59 = vpop.f32.mrb[0].mxu1 }
 0x1d6   :  { %v1985_v60 = vpop.f32.mrb[1].mxu1  ;;  %v2509_v6 = vadd.f32 %v1983_v59, %v316_v4 }
 0x1d7   :  { %v1987_v61 = vpop.f32.mrb[2].mxu1  ;;  %v2511_v7 = vadd.f32 %v1985_v60, %v320_v5 }
 0x1d8   :  { %v1988_v62 = vpop.f32.mrb[3].mxu1 }
 0x216   :  { %v2188_v8 = vpop.f32.mrb[0].mxu0 }
 0x217   :  { %v2510_v9 = vadd.f32 %v2509_v6, %v2188_v8  ;;  %v2190_v10 = vpop.f32.mrb[1].mxu0 }
 0x218   :  { %v2512_v11 = vadd.f32 %v2511_v7, %v2190_v10  ;;  %v2192_v12 = vpop.f32.mrb[2].mxu0 }
 0x219   :  { %v2195_v13 = vmax.f32 %v2510_v9, 0.0  ;;  %v2193_v14 = vpop.f32.mrb[3].mxu0 }
 0x21a   :  { %v2196_v15 = vmax.f32 %v2512_v11, 0.0 }
 0x21b   :  { %2197 = vst [vmem:[%s3956_s3] sm:$0xff] %v2195_v13 }
 0x21c   :  { %2198 = vst [vmem:[%s3956_s3 + $0x8] sm:$0xff] %v2196_v15 }

</bundles_post_ra>
